<compile_context>
chip_gen: v7x
topology: tpu7x:2x2x1
jax: 0.10.0
libtpu: 0.0.40
codegen_flags: <defaults>
</compile_context>

<pallas_src>
import math

import jax
import jax.numpy as jnp
from jax import lax
from jax.experimental import pallas as pl
from jax.experimental.pallas import tpu as pltpu

NUM_SUBSET = 3     # num_subset
KT = 9             # temporal kernel size
PAD = 4            # padding (4, 0) -> SAME along T
BN_EPS = 1e-5
VMEM_LIMIT = 64 * 1024 * 1024   # explicit scoped-VMEM limit (v5e default: 16 MiB)
# conv_ST11[i] / conv_ST12[i] in the PyTorch module: the ModuleList interleaves a
# 1x1 conv and a (9,1) conv per subset, but forward() only indexes [0..2], so the
# third attention branch is 1x1 for subsets 0 and 2, and (9,1) for subset 1.
ST_IS_TEMPORAL = (False, True, False)


# ----------------------------- Pallas kernels --------------------------------

def _make_k1_kernel(r1, r9, C, V, TV):
    """All channel contractions on x, lane-dense (T*V lanes); the 9 temporal taps
    of the (9,1) convs are fused in-kernel via shifted lane windows (no im2col)."""
    def kernel(xp_ref, w1_ref, b1_ref, w9_ref, b9_ref, o_ref):
        # fused 1x1 convs (conv_a/b, 1x1 conv_ST, bn*conv_d, down, residual):
        # the centre window of the padded input is the original x.
        x_c = xp_ref[:, pl.ds(PAD * V, TV)]
        o_ref[pl.ds(0, r1), :] = (
            jnp.dot(w1_ref[...], x_c, preferred_element_type=jnp.float32)
            + b1_ref[...])
        # fused (9,1) temporal convs (conv_T1/T2, (9,1) conv_ST): accumulate the
        # taps as matmuls over shifted lane windows of the once-padded input.
        acc = jnp.zeros((r9, TV), jnp.float32)
        for k in range(KT):                                     # static unroll
            acc = acc + jnp.dot(w9_ref[:, k * C:(k + 1) * C],
                                xp_ref[:, pl.ds(k * V, TV)],
                                preferred_element_type=jnp.float32)
        o_ref[pl.ds(r1, r9), :] = acc + b9_ref[...]
    return kernel


def _make_k2_kernel(off_v, it, ot, inv_den):
    """Attention matrices + graph aggregation (graph world: rows = (chan, t),
    lanes = V).  Register accumulator; one store with the gcn ReLU fused in."""
    def _softmax_rows(m):
        # nn.Softmax(-2): softmax over the rows of each (V, V) matrix.
        m = m - jnp.max(m, axis=0, keepdims=True)
        e = jnp.exp(m)
        return e * pl.reciprocal(jnp.sum(e, axis=0, keepdims=True), approx=True)

    def kernel(pv_ref, acat_ref, c1_ref, g_ref):
        # folded gcn bias (+ sum_i conv_d bias) + down path (computed in kernel 1)
        acc = c1_ref[...] + pv_ref[pl.ds(off_v['down'], ot), :]
        dims = (((0,), (0,)), ((), ()))
        for i in range(NUM_SUBSET):
            pa = pv_ref[pl.ds(off_v[f'a{i}'], it), :]
            pb = pv_ref[pl.ds(off_v[f'b{i}'], it), :]
            pt1 = pv_ref[pl.ds(off_v[f't1_{i}'], it), :]
            pt2 = pv_ref[pl.ds(off_v[f't2_{i}'], it), :]
            ps1 = pv_ref[pl.ds(off_v[f's1_{i}'], it), :]
            ps2 = pv_ref[pl.ds(off_v[f's2_{i}'], it), :]
            m1 = lax.dot_general(pa, pb, dims, preferred_element_type=jnp.float32) * inv_den
            m2 = lax.dot_general(pt1, pt2, dims, preferred_element_type=jnp.float32) * inv_den
            m3 = lax.dot_general(ps1, ps2, dims, preferred_element_type=jnp.float32) * inv_den
            af = acat_ref[i] + _softmax_rows(m1) + _softmax_rows(m2) + _softmax_rows(m3)
            # commuted conv_d (gcn-BN scale already folded into the weights in kernel 1)
            d = pv_ref[pl.ds(off_v[f'D{i}'], ot), :]
            acc = acc + jnp.dot(d, af, preferred_element_type=jnp.float32)
        g_ref[...] = jnp.maximum(acc, 0.0)          # gcn ReLU fused into the only store
    return kernel


def _make_k3_kernel(O, V, TV):
    """tcn1 ((9,1) conv + folded BN) with the 9 taps fused in-kernel, + residual
    + final ReLU.  Output store is lane-dense (O, T*V)."""
    def kernel(gp_ref, res_ref, wt_ref, c3_ref, o_ref):
        acc = res_ref[...] + c3_ref[...]
        for k in range(KT):                                     # static unroll
            acc = acc + jnp.dot(wt_ref[:, k * O:(k + 1) * O],
                                gp_ref[:, pl.ds(k * V, TV)],
                                preferred_element_type=jnp.float32)
        o_ref[...] = jnp.maximum(acc, 0.0)
    return kernel


# ------------------------------ helpers (glue) --------------------------------

def _fold_bn(gamma, beta, mean, var):
    s = gamma / jnp.sqrt(var + BN_EPS)
    return s, beta - mean * s


def _flat9(w):
    """(Cout, Cin, KT) -> (Cout, KT*Cin), tap-major: tap k at columns [k*Cin, (k+1)*Cin)."""
    co, ci, kt = w.shape
    return jnp.transpose(w, (0, 2, 1)).reshape(co, kt * ci)


def _pad_rows(mat, rows):
    if mat.shape[0] == rows:
        return mat
    return jnp.pad(mat, ((0, rows - mat.shape[0]),) + ((0, 0),) * (mat.ndim - 1))


def _pad_t(x4):
    """(N, C, T, V) -> (N, C, (T+2*PAD)*V): single zero pad along T, lane-flattened."""
    n, c, t, v = x4.shape
    return jnp.pad(x4, ((0, 0), (0, 0), (PAD, PAD), (0, 0))).reshape(n, c, (t + 2 * PAD) * v)


# ------------------------------ forward wrapper --------------------------------

def tcn_gcn_unit_7_forward(x, p):
    N, C, T, V = x.shape
    O = p['Wd'].shape[1]
    I = p['Wa'].shape[1]
    TV, IT, OT, TPV = T * V, I * T, O * T, (T + 2 * PAD) * V

    # ---- constant adjacency (matches unit_gtcn_7.__init__) ----
    A = p['A']
    eye = jnp.eye(V, dtype=jnp.float32)[None]
    a_ch4s = jax.nn.softmax((8.0 * A ** 4 - 4.0 * A ** 2 - 4.0 * A + eye) / V, axis=-2)
    a_ch3 = 4.0 * A ** 2 - A - 2.0 * eye
    acat = a_ch3 + a_ch4s + p['PA']                              # (3, V, V)

    # ---- eval-mode BatchNorm folds ----
    # TODO(synk): BatchNorms are folded in eval/inference mode; train-mode batch
    # statistics are not reproduced.
    s_bn, b_bn = _fold_bn(p['bn_g'], p['bn_b'], p['bn_m'], p['bn_v'])
    s_dn, b_dn = _fold_bn(p['dn_g'], p['dn_b'], p['dn_m'], p['dn_v'])
    s_tc, b_tc = _fold_bn(p['tc_g'], p['tc_b'], p['tc_m'], p['tc_v'])
    s_rs, b_rs = _fold_bn(p['rs_g'], p['rs_b'], p['rs_m'], p['rs_v'])
    wd_eff = p['Wd'] * s_bn[None, :, None]            # gcn-BN scale folded into conv_d
    wdn_eff = p['Wdn'] * s_dn[:, None]
    bdn_eff = s_dn * p['bdn'] + b_dn
    wres_eff = p['Wres'] * s_rs[:, None]
    bres_eff = s_rs * p['bres'] + b_rs
    wtcn_eff = p['Wtcn'] * s_tc[:, None, None]
    c1 = s_bn * jnp.sum(p['bd'], axis=0) + b_bn       # folded gcn bias, added once
    c1_col = jnp.repeat(c1, T)[:, None]               # (O*T, 1)
    c3_col = (s_tc * p['btcn'] + b_tc)[:, None]       # (O, 1)

    # ---- fused kernel-1 weight stacks + row/offset bookkeeping ----
    spec1, spec9 = [], []                             # 1x1 rows / (9,1) temporal rows
    zeros_o = jnp.zeros((O,), jnp.float32)
    for i in range(NUM_SUBSET):
        spec1.append((f'a{i}', p['Wa'][i], p['ba'][i]))
        spec1.append((f'b{i}', p['Wb'][i], p['bb'][i]))
        if ST_IS_TEMPORAL[i]:
            spec9.append((f's1_{i}', p['Wst1'][i], p['bst1'][i]))
            spec9.append((f's2_{i}', p['Wst2'][i], p['bst2'][i]))
        else:
            spec1.append((f's1_{i}', p['Wst1'][i], p['bst1'][i]))
            spec1.append((f's2_{i}', p['Wst2'][i], p['bst2'][i]))
        spec9.append((f't1_{i}', p['Wt1'][i], p['bt1'][i]))
        spec9.append((f't2_{i}', p['Wt2'][i], p['bt2'][i]))
    for i in range(NUM_SUBSET):
        spec1.append((f'D{i}', wd_eff[i], zeros_o))   # conv_d bias lives in c1_col
    spec1.append(('down', wdn_eff, bdn_eff))
    spec1.append(('res', wres_eff, bres_eff))

    off, r = {}, 0
    for name, w, _ in spec1:
        off[name] = r
        r += w.shape[0]
    r1 = r + (-r) % 8                                 # sublane-align the store split
    r = r1
    for name, w, _ in spec9:
        off[name] = r
        r += w.shape[0]
    r9 = (r - r1) + (-(r - r1)) % 8
    r_total = r1 + r9
    off_v = {k: v * T for k, v in off.items()}        # graph-world (row*T) offsets

    w1 = _pad_rows(jnp.concatenate([w for _, w, _ in spec1], axis=0), r1)            # (r1, C)
    b1 = _pad_rows(jnp.concatenate([b for _, _, b in spec1], axis=0)[:, None], r1)   # (r1, 1)
    w9 = _pad_rows(jnp.concatenate([_flat9(w) for _, w, _ in spec9], axis=0), r9)    # (r9, KT*C)
    b9 = _pad_rows(jnp.concatenate([b for _, _, b in spec9], axis=0)[:, None], r9)   # (r9, 1)

    cparams = pltpu.CompilerParams(dimension_semantics=("parallel",),
                                   vmem_limit_bytes=VMEM_LIMIT)

    # ---- kernel 1: fused lane-dense channel/temporal contractions ----
    xp = _pad_t(x)                                    # (N, C, (T+8)*V), no 9x im2col
    k1 = pl.pallas_call(
        _make_k1_kernel(r1, r9, C, V, TV),
        out_shape=jax.ShapeDtypeStruct((N, r_total, TV), jnp.float32),
        grid_spec=pltpu.PrefetchScalarGridSpec(
            num_scalar_prefetch=0,
            grid=(N,),
            in_specs=[
                pl.BlockSpec((None, C, TPV), lambda n: (n, 0, 0)),
                pl.BlockSpec(w1.shape, lambda n: (0, 0)),
                pl.BlockSpec(b1.shape, lambda n: (0, 0)),
                pl.BlockSpec(w9.shape, lambda n: (0, 0)),
                pl.BlockSpec(b9.shape, lambda n: (0, 0)),
            ],
            out_specs=pl.BlockSpec((None, r_total, TV), lambda n: (n, 0, 0)),
        ),
        compiler_params=cparams,
    )(xp, w1, b1, w9, b9)

    # ---- kernel 2: attention softmaxes + graph aggregation (register accumulator) ----
    pv = k1.reshape(N, r_total * T, V)                # free row-major HBM reshape
    g = pl.pallas_call(
        _make_k2_kernel(off_v, IT, OT, 1.0 / float(IT)),
        out_shape=jax.ShapeDtypeStruct((N, OT, V), jnp.float32),
        grid_spec=pltpu.PrefetchScalarGridSpec(
            num_scalar_prefetch=0,
            grid=(N,),
            in_specs=[
                pl.BlockSpec((None, r_total * T, V), lambda n: (n, 0, 0)),
                pl.BlockSpec(acat.shape, lambda n: (0, 0, 0)),
                pl.BlockSpec(c1_col.shape, lambda n: (0, 0)),
            ],
            out_specs=pl.BlockSpec((None, OT, V), lambda n: (n, 0, 0)),
        ),
        compiler_params=cparams,
    )(pv, acat, c1_col)

    # ---- kernel 3: tcn1 (9 taps fused in-kernel) + residual + ReLU, lane-dense ----
    gp = _pad_t(g.reshape(N, O, T, V))                # (N, O, (T+8)*V); no 9x im2col
    res = k1[:, off['res']:off['res'] + O, :]         # residual, already computed
    wtf = _flat9(wtcn_eff)                            # (O, KT*O)
    out = pl.pallas_call(
        _make_k3_kernel(O, V, TV),
        out_shape=jax.ShapeDtypeStruct((N, O, TV), jnp.float32),
        grid_spec=pltpu.PrefetchScalarGridSpec(
            num_scalar_prefetch=0,
            grid=(N,),
            in_specs=[
                pl.BlockSpec((None, O, TPV), lambda n: (n, 0, 0)),
                pl.BlockSpec((None, O, TV), lambda n: (n, 0, 0)),
                pl.BlockSpec(wtf.shape, lambda n: (0, 0)),
                pl.BlockSpec(c3_col.shape, lambda n: (0, 0)),
            ],
            out_specs=pl.BlockSpec((None, O, TV), lambda n: (n, 0, 0)),
        ),
        compiler_params=cparams,
    )(gp, res, wtf, c3_col)
    return out.reshape(N, O, T, V)


# ------------------------- deterministic parameters ---------------------------

def init_params(key, C, O, V):
    I = O // 4   # coff_embedding = 4
    ks = iter(jax.random.split(key, 48))

    def nrm(shape, scale):
        return (scale * jax.random.normal(next(ks), shape)).astype(jnp.float32)

    def unif(shape, lo, hi):
        return (lo + (hi - lo) * jax.random.uniform(next(ks), shape)).astype(jnp.float32)

    a_raw = jax.random.uniform(next(ks), (NUM_SUBSET, V, V))
    mask = (jax.random.uniform(next(ks), (NUM_SUBSET, V, V)) < 0.3).astype(jnp.float32)

    p = dict(
        A=(a_raw * mask).astype(jnp.float32),
        PA=jnp.full((NUM_SUBSET, V, V), 1e-6, jnp.float32),
        Wa=nrm((NUM_SUBSET, I, C), 0.3), ba=nrm((NUM_SUBSET, I), 0.1),
        Wb=nrm((NUM_SUBSET, I, C), 0.3), bb=nrm((NUM_SUBSET, I), 0.1),
        Wt1=nrm((NUM_SUBSET, I, C, KT), 0.1), bt1=nrm((NUM_SUBSET, I), 0.1),
        Wt2=nrm((NUM_SUBSET, I, C, KT), 0.1), bt2=nrm((NUM_SUBSET, I), 0.1),
        Wd=nrm((NUM_SUBSET, O, C), math.sqrt(2.0 / (O * C * NUM_SUBSET))),
        bd=nrm((NUM_SUBSET, O), 0.05),
        bst1=nrm((NUM_SUBSET, I), 0.1), bst2=nrm((NUM_SUBSET, I), 0.1),
        # conv_ST11[i] / conv_ST12[i]: 1x1 for subsets 0 and 2, (9,1) for subset 1
        Wst1=[nrm((I, C), 0.3), nrm((I, C, KT), 0.1), nrm((I, C), 0.3)],
        Wst2=[nrm((I, C), 0.3), nrm((I, C, KT), 0.1), nrm((I, C), 0.3)],
        # gcn main BatchNorm2d(out_channels)
        bn_g=unif((O,), 0.5, 1.5), bn_b=nrm((O,), 0.1), bn_m=nrm((O,), 0.1), bn_v=unif((O,), 0.5, 1.5),
        # down path (in_channels != out_channels): 1x1 conv + BN
        Wdn=nrm((O, C), 0.3), bdn=nrm((O,), 0.1),
        dn_g=unif((O,), 0.5, 1.5), dn_b=nrm((O,), 0.1), dn_m=nrm((O,), 0.1), dn_v=unif((O,), 0.5, 1.5),
        # tcn1: (9,1) conv + BN
        Wtcn=nrm((O, O, KT), math.sqrt(2.0 / (O * KT))), btcn=nrm((O,), 0.05),
        tc_g=unif((O,), 0.5, 1.5), tc_b=nrm((O,), 0.1), tc_m=nrm((O,), 0.1), tc_v=unif((O,), 0.5, 1.5),
        # residual branch: 1x1 conv + BN (in_channels != out_channels, stride=1)
        Wres=nrm((O, C), 0.3), bres=nrm((O,), 0.1),
        rs_g=unif((O,), 0.5, 1.5), rs_b=nrm((O,), 0.1), rs_m=nrm((O,), 0.1), rs_v=unif((O,), 0.5, 1.5),
    )
    return p


# ------------------------ pure-JAX reference (checker) ------------------------

def reference_forward(x, p):
    N, C, T, V = x.shape
    O = p['Wd'].shape[1]
    I = p['Wa'].shape[1]
    hp = lax.Precision.HIGHEST

    eye = jnp.eye(V, dtype=jnp.float32)[None]
    A = p['A']
    a_ch4s = jax.nn.softmax((8.0 * A ** 4 - 4.0 * A ** 2 - 4.0 * A + eye) / V, axis=-2)
    a_ch3 = 4.0 * A ** 2 - A - 2.0 * eye
    acat = a_ch3 + a_ch4s + p['PA']

    def conv1(w, b, u):
        return jnp.einsum('oc,nctv->notv', w, u, precision=hp) + b[None, :, None, None]

    def conv9(w, b, u):
        up = jnp.pad(u, ((0, 0), (0, 0), (PAD, PAD), (0, 0)))
        out = sum(jnp.einsum('oc,nctv->notv', w[:, :, k], up[:, :, k:k + T, :], precision=hp)
                  for k in range(KT))
        return out + b[None, :, None, None]

    def bn(u, g_, b_, m_, v_):
        s = g_ / jnp.sqrt(v_ + BN_EPS)
        return u * s[None, :, None, None] + (b_ - m_ * s)[None, :, None, None]

    y = 0.0
    for i in range(NUM_SUBSET):
        pa = conv1(p['Wa'][i], p['ba'][i], x)
        pb = conv1(p['Wb'][i], p['bb'][i], x)
        pt1 = conv9(p['Wt1'][i], p['bt1'][i], x)
        pt2 = conv9(p['Wt2'][i], p['bt2'][i], x)
        if ST_IS_TEMPORAL[i]:
            ps1 = conv9(p['Wst1'][i], p['bst1'][i], x)
            ps2 = conv9(p['Wst2'][i], p['bst2'][i], x)
        else:
            ps1 = conv1(p['Wst1'][i], p['bst1'][i], x)
            ps2 = conv1(p['Wst2'][i], p['bst2'][i], x)
        den = float(I * T)
        m1 = jax.nn.softmax(jnp.einsum('nctu,nctv->nuv', pa, pb, precision=hp) / den, axis=-2)
        m2 = jax.nn.softmax(jnp.einsum('nctu,nctv->nuv', pt1, pt2, precision=hp) / den, axis=-2)
        m3 = jax.nn.softmax(jnp.einsum('nctu,nctv->nuv', ps1, ps2, precision=hp) / den, axis=-2)
        af = acat[i][None] + m1 + m2 + m3
        xa = jnp.einsum('nctv,nvw->nctw', x, af, precision=hp)
        y = y + conv1(p['Wd'][i], p['bd'][i], xa)
    y = bn(y, p['bn_g'], p['bn_b'], p['bn_m'], p['bn_v'])
    dn = bn(conv1(p['Wdn'], p['bdn'], x), p['dn_g'], p['dn_b'], p['dn_m'], p['dn_v'])
    g = jnp.maximum(y + dn, 0.0)
    tc = bn(conv9(p['Wtcn'], p['btcn'], g), p['tc_g'], p['tc_b'], p['tc_m'], p['tc_v'])
    rs = bn(conv1(p['Wres'], p['bres'], x), p['rs_g'], p['rs_b'], p['rs_m'], p['rs_v'])
    return jnp.maximum(tc + rs, 0.0)


if __name__ == "__main__":
    key = jax.random.PRNGKey(0)
    kx, kp = jax.random.split(key)
    N, C, T, V = 2, 4, 16, 16     # batch, in_channels, frames, graph nodes
    O = 16                        # out_channels (inter_channels = 4)

    x = jax.random.normal(kx, (N, C, T, V), jnp.float32)
    p = init_params(kp, C, O, V)

    fwd = jax.jit(tcn_gcn_unit_7_forward)
    out = jax.block_until_ready(fwd(x, p))
    assert out.shape == (N, O, T, V)

    ref = reference_forward(x, p)
    # 5e-3 tolerance: accounts for pl.reciprocal(approx=True) in the softmax
    # denominators (EUP vrcp) vs. the HIGHEST-precision pure-JAX reference.
    if not jnp.allclose(out, ref, atol=5e-3, rtol=5e-3):
        raise AssertionError(
            f"mismatch vs reference: max abs err = {float(jnp.max(jnp.abs(out - ref)))}")
    print("KERNEL_OK")
</pallas_src>

<mosaic_0001>
module attributes {stable_mosaic.version = 11 : i64} {
  func.func @kernel(%arg0: i32, %arg1: memref<1x4x384xf32, #tpu.memory_space<vmem>>, %arg2: memref<120x4xf32, #tpu.memory_space<vmem>>, %arg3: memref<120x1xf32, #tpu.memory_space<vmem>>, %arg4: memref<32x36xf32, #tpu.memory_space<vmem>>, %arg5: memref<32x1xf32, #tpu.memory_space<vmem>>, %arg6: memref<1x152x256xf32, #tpu.memory_space<vmem>>) attributes {dimension_semantics = [#tpu.dimension_semantics<parallel>], iteration_bounds = array<i64: 2>, scalar_prefetch = 0 : i64, scratch_operands = 0 : i64, tpu.core_type = #tpu.core_type<tc>, window_params = [{transform_indices = @transform_0, window_bounds = array<i64: 1, 4, 384>}, {pipeline_mode = #tpu.pipeline_mode<synchronous>, transform_indices = @transform_1, window_bounds = array<i64: 120, 4>}, {pipeline_mode = #tpu.pipeline_mode<synchronous>, transform_indices = @transform_2, window_bounds = array<i64: 120, 1>}, {pipeline_mode = #tpu.pipeline_mode<synchronous>, transform_indices = @transform_3, window_bounds = array<i64: 32, 36>}, {pipeline_mode = #tpu.pipeline_mode<synchronous>, transform_indices = @transform_4, window_bounds = array<i64: 32, 1>}, {transform_indices = @transform_5, window_bounds = array<i64: 1, 152, 256>}]} {
    %c0 = arith.constant 0 : index
    %c0_0 = arith.constant 0 : index
    %c64 = arith.constant 64 : index
    %0 = vector.load %arg1[%c0, %c0_0, %c64] : memref<1x4x384xf32, #tpu.memory_space<vmem>>, vector<1x4x256xf32>
    %1 = vector.shape_cast %0 : vector<1x4x256xf32> to vector<4x256xf32>
    %c0_1 = arith.constant 0 : index
    %c0_2 = arith.constant 0 : index
    %2 = vector.load %arg2[%c0_1, %c0_2] : memref<120x4xf32, #tpu.memory_space<vmem>>, vector<120x4xf32>
    %cst = arith.constant dense<0.000000e+00> : vector<120x256xf32>
    %3 = tpu.matmul %2, %1, %cst {dimension_numbers = #tpu.dot_dimension_numbers<[1], [0], [0], [1], [0, 0, 1, 1], [], []>} : vector<120x4xf32>, vector<4x256xf32>, vector<120x256xf32> -> vector<120x256xf32>
    %c0_3 = arith.constant 0 : index
    %c0_4 = arith.constant 0 : index
    %4 = vector.load %arg3[%c0_3, %c0_4] : memref<120x1xf32, #tpu.memory_space<vmem>>, vector<120x1xf32>
    %5 = vector.broadcast %4 : vector<120x1xf32> to vector<120x256xf32>
    %6 = arith.addf %3, %5 : vector<120x256xf32>
    %c0_5 = arith.constant 0 : index
    %c0_6 = arith.constant 0 : index
    %c0_7 = arith.constant 0 : index
    %7 = vector.load %arg6[%c0_5, %c0_6, %c0_7] : memref<1x152x256xf32, #tpu.memory_space<vmem>>, vector<1x120x256xf32>
    %8 = vector.shape_cast %7 : vector<1x120x256xf32> to vector<120x256xf32>
    %9 = vector.shape_cast %6 : vector<120x256xf32> to vector<1x120x256xf32>
    tpu.vector_store %arg6[%c0_5, %c0_6, %c0_7], %9 {strides = array<i32>} : memref<1x152x256xf32, #tpu.memory_space<vmem>>, vector<1x120x256xf32>,
    %cst_8 = arith.constant 0.000000e+00 : f32
    %10 = vector.broadcast %cst_8 : f32 to vector<32x256xf32>
    %c0_9 = arith.constant 0 : index
    %c0_10 = arith.constant 0 : index
    %11 = vector.load %arg4[%c0_9, %c0_10] : memref<32x36xf32, #tpu.memory_space<vmem>>, vector<32x4xf32>
    %c0_11 = arith.constant 0 : index
    %c0_12 = arith.constant 0 : index
    %c0_13 = arith.constant 0 : index
    %12 = vector.load %arg1[%c0_11, %c0_12, %c0_13] : memref<1x4x384xf32, #tpu.memory_space<vmem>>, vector<1x4x256xf32>
    %13 = vector.shape_cast %12 : vector<1x4x256xf32> to vector<4x256xf32>
    %cst_14 = arith.constant dense<0.000000e+00> : vector<32x256xf32>
    %14 = tpu.matmul %11, %13, %cst_14 {dimension_numbers = #tpu.dot_dimension_numbers<[1], [0], [0], [1], [0, 0, 1, 1], [], []>} : vector<32x4xf32>, vector<4x256xf32>, vector<32x256xf32> -> vector<32x256xf32>
    %15 = arith.addf %10, %14 : vector<32x256xf32>
    %c0_15 = arith.constant 0 : index
    %c4 = arith.constant 4 : index
    %16 = vector.load %arg4[%c0_15, %c4] : memref<32x36xf32, #tpu.memory_space<vmem>>, vector<32x4xf32>
    %c0_16 = arith.constant 0 : index
    %c0_17 = arith.constant 0 : index
    %c16 = arith.constant 16 : index
    %17 = vector.load %arg1[%c0_16, %c0_17, %c16] : memref<1x4x384xf32, #tpu.memory_space<vmem>>, vector<1x4x256xf32>
    %18 = vector.shape_cast %17 : vector<1x4x256xf32> to vector<4x256xf32>
    %cst_18 = arith.constant dense<0.000000e+00> : vector<32x256xf32>
    %19 = tpu.matmul %16, %18, %cst_18 {dimension_numbers = #tpu.dot_dimension_numbers<[1], [0], [0], [1], [0, 0, 1, 1], [], []>} : vector<32x4xf32>, vector<4x256xf32>, vector<32x256xf32> -> vector<32x256xf32>
    %20 = arith.addf %15, %19 : vector<32x256xf32>
    %c0_19 = arith.constant 0 : index
    %c8 = arith.constant 8 : index
    %21 = vector.load %arg4[%c0_19, %c8] : memref<32x36xf32, #tpu.memory_space<vmem>>, vector<32x4xf32>
    %c0_20 = arith.constant 0 : index
    %c0_21 = arith.constant 0 : index
    %c32 = arith.constant 32 : index
    %22 = vector.load %arg1[%c0_20, %c0_21, %c32] : memref<1x4x384xf32, #tpu.memory_space<vmem>>, vector<1x4x256xf32>
    %23 = vector.shape_cast %22 : vector<1x4x256xf32> to vector<4x256xf32>
    %cst_22 = arith.constant dense<0.000000e+00> : vector<32x256xf32>
    %24 = tpu.matmul %21, %23, %cst_22 {dimension_numbers = #tpu.dot_dimension_numbers<[1], [0], [0], [1], [0, 0, 1, 1], [], []>} : vector<32x4xf32>, vector<4x256xf32>, vector<32x256xf32> -> vector<32x256xf32>
    %25 = arith.addf %20, %24 : vector<32x256xf32>
    %c0_23 = arith.constant 0 : index
    %c12 = arith.constant 12 : index
    %26 = vector.load %arg4[%c0_23, %c12] : memref<32x36xf32, #tpu.memory_space<vmem>>, vector<32x4xf32>
    %c0_24 = arith.constant 0 : index
    %c0_25 = arith.constant 0 : index
    %c48 = arith.constant 48 : index
    %27 = vector.load %arg1[%c0_24, %c0_25, %c48] : memref<1x4x384xf32, #tpu.memory_space<vmem>>, vector<1x4x256xf32>
    %28 = vector.shape_cast %27 : vector<1x4x256xf32> to vector<4x256xf32>
    %cst_26 = arith.constant dense<0.000000e+00> : vector<32x256xf32>
    %29 = tpu.matmul %26, %28, %cst_26 {dimension_numbers = #tpu.dot_dimension_numbers<[1], [0], [0], [1], [0, 0, 1, 1], [], []>} : vector<32x4xf32>, vector<4x256xf32>, vector<32x256xf32> -> vector<32x256xf32>
    %30 = arith.addf %25, %29 : vector<32x256xf32>
    %c0_27 = arith.constant 0 : index
    %c16_28 = arith.constant 16 : index
    %31 = vector.load %arg4[%c0_27, %c16_28] : memref<32x36xf32, #tpu.memory_space<vmem>>, vector<32x4xf32>
    %c0_29 = arith.constant 0 : index
    %c0_30 = arith.constant 0 : index
    %c64_31 = arith.constant 64 : index
    %32 = vector.load %arg1[%c0_29, %c0_30, %c64_31] : memref<1x4x384xf32, #tpu.memory_space<vmem>>, vector<1x4x256xf32>
    %33 = vector.shape_cast %32 : vector<1x4x256xf32> to vector<4x256xf32>
    %cst_32 = arith.constant dense<0.000000e+00> : vector<32x256xf32>
    %34 = tpu.matmul %31, %33, %cst_32 {dimension_numbers = #tpu.dot_dimension_numbers<[1], [0], [0], [1], [0, 0, 1, 1], [], []>} : vector<32x4xf32>, vector<4x256xf32>, vector<32x256xf32> -> vector<32x256xf32>
    %35 = arith.addf %30, %34 : vector<32x256xf32>
    %c0_33 = arith.constant 0 : index
    %c20 = arith.constant 20 : index
    %36 = vector.load %arg4[%c0_33, %c20] : memref<32x36xf32, #tpu.memory_space<vmem>>, vector<32x4xf32>
    %c0_34 = arith.constant 0 : index
    %c0_35 = arith.constant 0 : index
    %c80 = arith.constant 80 : index
    %37 = vector.load %arg1[%c0_34, %c0_35, %c80] : memref<1x4x384xf32, #tpu.memory_space<vmem>>, vector<1x4x256xf32>
    %38 = vector.shape_cast %37 : vector<1x4x256xf32> to vector<4x256xf32>
    %cst_36 = arith.constant dense<0.000000e+00> : vector<32x256xf32>
    %39 = tpu.matmul %36, %38, %cst_36 {dimension_numbers = #tpu.dot_dimension_numbers<[1], [0], [0], [1], [0, 0, 1, 1], [], []>} : vector<32x4xf32>, vector<4x256xf32>, vector<32x256xf32> -> vector<32x256xf32>
    %40 = arith.addf %35, %39 : vector<32x256xf32>
    %c0_37 = arith.constant 0 : index
    %c24 = arith.constant 24 : index
    %41 = vector.load %arg4[%c0_37, %c24] : memref<32x36xf32, #tpu.memory_space<vmem>>, vector<32x4xf32>
    %c0_38 = arith.constant 0 : index
    %c0_39 = arith.constant 0 : index
    %c96 = arith.constant 96 : index
    %42 = vector.load %arg1[%c0_38, %c0_39, %c96] : memref<1x4x384xf32, #tpu.memory_space<vmem>>, vector<1x4x256xf32>
    %43 = vector.shape_cast %42 : vector<1x4x256xf32> to vector<4x256xf32>
    %cst_40 = arith.constant dense<0.000000e+00> : vector<32x256xf32>
    %44 = tpu.matmul %41, %43, %cst_40 {dimension_numbers = #tpu.dot_dimension_numbers<[1], [0], [0], [1], [0, 0, 1, 1], [], []>} : vector<32x4xf32>, vector<4x256xf32>, vector<32x256xf32> -> vector<32x256xf32>
    %45 = arith.addf %40, %44 : vector<32x256xf32>
    %c0_41 = arith.constant 0 : index
    %c28 = arith.constant 28 : index
    %46 = vector.load %arg4[%c0_41, %c28] : memref<32x36xf32, #tpu.memory_space<vmem>>, vector<32x4xf32>
    %c0_42 = arith.constant 0 : index
    %c0_43 = arith.constant 0 : index
    %c112 = arith.constant 112 : index
    %47 = vector.load %arg1[%c0_42, %c0_43, %c112] : memref<1x4x384xf32, #tpu.memory_space<vmem>>, vector<1x4x256xf32>
    %48 = vector.shape_cast %47 : vector<1x4x256xf32> to vector<4x256xf32>
    %cst_44 = arith.constant dense<0.000000e+00> : vector<32x256xf32>
    %49 = tpu.matmul %46, %48, %cst_44 {dimension_numbers = #tpu.dot_dimension_numbers<[1], [0], [0], [1], [0, 0, 1, 1], [], []>} : vector<32x4xf32>, vector<4x256xf32>, vector<32x256xf32> -> vector<32x256xf32>
    %50 = arith.addf %45, %49 : vector<32x256xf32>
    %c0_45 = arith.constant 0 : index
    %c32_46 = arith.constant 32 : index
    %51 = vector.load %arg4[%c0_45, %c32_46] : memref<32x36xf32, #tpu.memory_space<vmem>>, vector<32x4xf32>
    %c0_47 = arith.constant 0 : index
    %c0_48 = arith.constant 0 : index
    %c128 = arith.constant 128 : index
    %52 = vector.load %arg1[%c0_47, %c0_48, %c128] : memref<1x4x384xf32, #tpu.memory_space<vmem>>, vector<1x4x256xf32>
    %53 = vector.shape_cast %52 : vector<1x4x256xf32> to vector<4x256xf32>
    %cst_49 = arith.constant dense<0.000000e+00> : vector<32x256xf32>
    %54 = tpu.matmul %51, %53, %cst_49 {dimension_numbers = #tpu.dot_dimension_numbers<[1], [0], [0], [1], [0, 0, 1, 1], [], []>} : vector<32x4xf32>, vector<4x256xf32>, vector<32x256xf32> -> vector<32x256xf32>
    %55 = arith.addf %50, %54 : vector<32x256xf32>
    %c0_50 = arith.constant 0 : index
    %c0_51 = arith.constant 0 : index
    %56 = vector.load %arg5[%c0_50, %c0_51] : memref<32x1xf32, #tpu.memory_space<vmem>>, vector<32x1xf32>
    %57 = vector.broadcast %56 : vector<32x1xf32> to vector<32x256xf32>
    %58 = arith.addf %55, %57 : vector<32x256xf32>
    %c0_52 = arith.constant 0 : index
    %c120 = arith.constant 120 : index
    %c0_53 = arith.constant 0 : index
    %59 = vector.load %arg6[%c0_52, %c120, %c0_53] : memref<1x152x256xf32, #tpu.memory_space<vmem>>, vector<1x32x256xf32>
    %60 = vector.shape_cast %59 : vector<1x32x256xf32> to vector<32x256xf32>
    %61 = vector.shape_cast %58 : vector<32x256xf32> to vector<1x32x256xf32>
    tpu.vector_store %arg6[%c0_52, %c120, %c0_53], %61 {strides = array<i32>} : memref<1x152x256xf32, #tpu.memory_space<vmem>>, vector<1x32x256xf32>,
    return
  }
  func.func @transform_0(%arg0: i32) -> (i32, i32, i32) {
    %c0_i32 = arith.constant 0 : i32
    %c0_i32_0 = arith.constant 0 : i32
    %c0_i32_1 = arith.constant 0 : i32
    return %arg0, %c0_i32, %c0_i32_0 : i32, i32, i32
  }
  func.func @transform_1(%arg0: i32) -> (i32, i32) {
    %c0_i32 = arith.constant 0 : i32
    %c0_i32_0 = arith.constant 0 : i32
    %c0_i32_1 = arith.constant 0 : i32
    return %c0_i32, %c0_i32_0 : i32, i32
  }
  func.func @transform_2(%arg0: i32) -> (i32, i32) {
    %c0_i32 = arith.constant 0 : i32
    %c0_i32_0 = arith.constant 0 : i32
    %c0_i32_1 = arith.constant 0 : i32
    return %c0_i32, %c0_i32_0 : i32, i32
  }
  func.func @transform_3(%arg0: i32) -> (i32, i32) {
    %c0_i32 = arith.constant 0 : i32
    %c0_i32_0 = arith.constant 0 : i32
    %c0_i32_1 = arith.constant 0 : i32
    return %c0_i32, %c0_i32_0 : i32, i32
  }
  func.func @transform_4(%arg0: i32) -> (i32, i32) {
    %c0_i32 = arith.constant 0 : i32
    %c0_i32_0 = arith.constant 0 : i32
    %c0_i32_1 = arith.constant 0 : i32
    return %c0_i32, %c0_i32_0 : i32, i32
  }
  func.func @transform_5(%arg0: i32) -> (i32, i32, i32) {
    %c0_i32 = arith.constant 0 : i32
    %c0_i32_0 = arith.constant 0 : i32
    %c0_i32_1 = arith.constant 0 : i32
    return %arg0, %c0_i32, %c0_i32_0 : i32, i32, i32
  }
}

module attributes {stable_mosaic.version = 11 : i64} {
  func.func @kernel(%arg0: i32, %arg1: memref<1x2432x16xf32, #tpu.memory_space<vmem>>, %arg2: memref<3x16x16xf32, #tpu.memory_space<vmem>>, %arg3: memref<256x1xf32, #tpu.memory_space<vmem>>, %arg4: memref<1x256x16xf32, #tpu.memory_space<vmem>>) attributes {dimension_semantics = [#tpu.dimension_semantics<parallel>], iteration_bounds = array<i64: 2>, scalar_prefetch = 0 : i64, scratch_operands = 0 : i64, tpu.core_type = #tpu.core_type<tc>, window_params = [{transform_indices = @transform_0, window_bounds = array<i64: 1, 2432, 16>}, {pipeline_mode = #tpu.pipeline_mode<synchronous>, transform_indices = @transform_1, window_bounds = array<i64: 3, 16, 16>}, {pipeline_mode = #tpu.pipeline_mode<synchronous>, transform_indices = @transform_2, window_bounds = array<i64: 256, 1>}, {transform_indices = @transform_3, window_bounds = array<i64: 1, 256, 16>}]} {
    %c0 = arith.constant 0 : index
    %c0_0 = arith.constant 0 : index
    %0 = vector.load %arg3[%c0, %c0_0] : memref<256x1xf32, #tpu.memory_space<vmem>>, vector<256x1xf32>
    %c0_1 = arith.constant 0 : index
    %c1408 = arith.constant 1408 : index
    %c0_2 = arith.constant 0 : index
    %1 = vector.load %arg1[%c0_1, %c1408, %c0_2] : memref<1x2432x16xf32, #tpu.memory_space<vmem>>, vector<1x256x16xf32>
    %2 = vector.shape_cast %1 : vector<1x256x16xf32> to vector<256x16xf32>
    %3 = vector.broadcast %0 : vector<256x1xf32> to vector<256x16xf32>
    %4 = arith.addf %3, %2 : vector<256x16xf32>
    %c0_3 = arith.constant 0 : index
    %c0_4 = arith.constant 0 : index
    %c0_5 = arith.constant 0 : index
    %5 = vector.load %arg1[%c0_3, %c0_4, %c0_5] : memref<1x2432x16xf32, #tpu.memory_space<vmem>>, vector<1x64x16xf32>
    %6 = vector.shape_cast %5 : vector<1x64x16xf32> to vector<64x16xf32>
    %c0_6 = arith.constant 0 : index
    %c64 = arith.constant 64 : index
    %c0_7 = arith.constant 0 : index
    %7 = vector.load %arg1[%c0_6, %c64, %c0_7] : memref<1x2432x16xf32, #tpu.memory_space<vmem>>, vector<1x64x16xf32>
    %8 = vector.shape_cast %7 : vector<1x64x16xf32> to vector<64x16xf32>
    %c0_8 = arith.constant 0 : index
    %c1920 = arith.constant 1920 : index
    %c0_9 = arith.constant 0 : index
    %9 = vector.load %arg1[%c0_8, %c1920, %c0_9] : memref<1x2432x16xf32, #tpu.memory_space<vmem>>, vector<1x64x16xf32>
    %10 = vector.shape_cast %9 : vector<1x64x16xf32> to vector<64x16xf32>
    %c0_10 = arith.constant 0 : index
    %c1984 = arith.constant 1984 : index
    %c0_11 = arith.constant 0 : index
    %11 = vector.load %arg1[%c0_10, %c1984, %c0_11] : memref<1x2432x16xf32, #tpu.memory_space<vmem>>, vector<1x64x16xf32>
    %12 = vector.shape_cast %11 : vector<1x64x16xf32> to vector<64x16xf32>
    %c0_12 = arith.constant 0 : index
    %c128 = arith.constant 128 : index
    %c0_13 = arith.constant 0 : index
    %13 = vector.load %arg1[%c0_12, %c128, %c0_13] : memref<1x2432x16xf32, #tpu.memory_space<vmem>>, vector<1x64x16xf32>
    %14 = vector.shape_cast %13 : vector<1x64x16xf32> to vector<64x16xf32>
    %c0_14 = arith.constant 0 : index
    %c192 = arith.constant 192 : index
    %c0_15 = arith.constant 0 : index
    %15 = vector.load %arg1[%c0_14, %c192, %c0_15] : memref<1x2432x16xf32, #tpu.memory_space<vmem>>, vector<1x64x16xf32>
    %16 = vector.shape_cast %15 : vector<1x64x16xf32> to vector<64x16xf32>
    %cst = arith.constant dense<0.000000e+00> : vector<16x16xf32>
    %17 = tpu.matmul %6, %8, %cst {dimension_numbers = #tpu.dot_dimension_numbers<[0], [0], [1], [1], [0, 1, 1, 1], [], []>} : vector<64x16xf32>, vector<64x16xf32>, vector<16x16xf32> -> vector<16x16xf32>
    %cst_16 = arith.constant 1.562500e-02 : f32
    %18 = vector.broadcast %cst_16 : f32 to vector<16x16xf32>
    %19 = arith.mulf %17, %18 : vector<16x16xf32>
    %cst_17 = arith.constant dense<0.000000e+00> : vector<16x16xf32>
    %20 = tpu.matmul %10, %12, %cst_17 {dimension_numbers = #tpu.dot_dimension_numbers<[0], [0], [1], [1], [0, 1, 1, 1], [], []>} : vector<64x16xf32>, vector<64x16xf32>, vector<16x16xf32> -> vector<16x16xf32>
    %cst_18 = arith.constant 1.562500e-02 : f32
    %21 = vector.broadcast %cst_18 : f32 to vector<16x16xf32>
    %22 = arith.mulf %20, %21 : vector<16x16xf32>
    %cst_19 = arith.constant dense<0.000000e+00> : vector<16x16xf32>
    %23 = tpu.matmul %14, %16, %cst_19 {dimension_numbers = #tpu.dot_dimension_numbers<[0], [0], [1], [1], [0, 1, 1, 1], [], []>} : vector<64x16xf32>, vector<64x16xf32>, vector<16x16xf32> -> vector<16x16xf32>
    %cst_20 = arith.constant 1.562500e-02 : f32
    %24 = vector.broadcast %cst_20 : f32 to vector<16x16xf32>
    %25 = arith.mulf %23, %24 : vector<16x16xf32>
    %c0_21 = arith.constant 0 : index
    %c0_22 = arith.constant 0 : index
    %c0_23 = arith.constant 0 : index
    %26 = vector.load %arg2[%c0_21, %c0_22, %c0_23] : memref<3x16x16xf32, #tpu.memory_space<vmem>>, vector<1x16x16xf32>
    %27 = vector.shape_cast %26 : vector<1x16x16xf32> to vector<16x16xf32>
    %cst_24 = arith.constant dense<0xFF800000> : vector<16xf32>
    %28 = vector.multi_reduction <maximumf>, %19, %cst_24 [0] : vector<16x16xf32> to vector<16xf32>
    %29 = vector.shape_cast %28 : vector<16xf32> to vector<1x16xf32>
    %30 = vector.broadcast %29 : vector<1x16xf32> to vector<16x16xf32>
    %31 = arith.subf %19, %30 : vector<16x16xf32>
    %32 = math.exp %31 : vector<16x16xf32>
    %cst_25 = arith.constant dense<0.000000e+00> : vector<16xf32>
    %33 = vector.multi_reduction <add>, %32, %cst_25 [0] : vector<16x16xf32> to vector<16xf32>
    %34 = vector.shape_cast %33 : vector<16xf32> to vector<1x16xf32>
    %35 = tpu.reciprocal %34 {approx = true} : vector<1x16xf32> -> vector<1x16xf32>
    %36 = vector.broadcast %35 : vector<1x16xf32> to vector<16x16xf32>
    %37 = arith.mulf %32, %36 : vector<16x16xf32>
    %38 = arith.addf %27, %37 : vector<16x16xf32>
    %cst_26 = arith.constant dense<0xFF800000> : vector<16xf32>
    %39 = vector.multi_reduction <maximumf>, %22, %cst_26 [0] : vector<16x16xf32> to vector<16xf32>
    %40 = vector.shape_cast %39 : vector<16xf32> to vector<1x16xf32>
    %41 = vector.broadcast %40 : vector<1x16xf32> to vector<16x16xf32>
    %42 = arith.subf %22, %41 : vector<16x16xf32>
    %43 = math.exp %42 : vector<16x16xf32>
    %cst_27 = arith.constant dense<0.000000e+00> : vector<16xf32>
    %44 = vector.multi_reduction <add>, %43, %cst_27 [0] : vector<16x16xf32> to vector<16xf32>
    %45 = vector.shape_cast %44 : vector<16xf32> to vector<1x16xf32>
    %46 = tpu.reciprocal %45 {approx = true} : vector<1x16xf32> -> vector<1x16xf32>
    %47 = vector.broadcast %46 : vector<1x16xf32> to vector<16x16xf32>
    %48 = arith.mulf %43, %47 : vector<16x16xf32>
    %49 = arith.addf %38, %48 : vector<16x16xf32>
    %cst_28 = arith.constant dense<0xFF800000> : vector<16xf32>
    %50 = vector.multi_reduction <maximumf>, %25, %cst_28 [0] : vector<16x16xf32> to vector<16xf32>
    %51 = vector.shape_cast %50 : vector<16xf32> to vector<1x16xf32>
    %52 = vector.broadcast %51 : vector<1x16xf32> to vector<16x16xf32>
    %53 = arith.subf %25, %52 : vector<16x16xf32>
    %54 = math.exp %53 : vector<16x16xf32>
    %cst_29 = arith.constant dense<0.000000e+00> : vector<16xf32>
    %55 = vector.multi_reduction <add>, %54, %cst_29 [0] : vector<16x16xf32> to vector<16xf32>
    %56 = vector.shape_cast %55 : vector<16xf32> to vector<1x16xf32>
    %57 = tpu.reciprocal %56 {approx = true} : vector<1x16xf32> -> vector<1x16xf32>
    %58 = vector.broadcast %57 : vector<1x16xf32> to vector<16x16xf32>
    %59 = arith.mulf %54, %58 : vector<16x16xf32>
    %60 = arith.addf %49, %59 : vector<16x16xf32>
    %c0_30 = arith.constant 0 : index
    %c640 = arith.constant 640 : index
    %c0_31 = arith.constant 0 : index
    %61 = vector.load %arg1[%c0_30, %c640, %c0_31] : memref<1x2432x16xf32, #tpu.memory_space<vmem>>, vector<1x256x16xf32>
    %62 = vector.shape_cast %61 : vector<1x256x16xf32> to vector<256x16xf32>
    %cst_32 = arith.constant dense<0.000000e+00> : vector<256x16xf32>
    %63 = tpu.matmul %62, %60, %cst_32 {dimension_numbers = #tpu.dot_dimension_numbers<[1], [0], [0], [1], [0, 0, 1, 1], [], []>} : vector<256x16xf32>, vector<16x16xf32>, vector<256x16xf32> -> vector<256x16xf32>
    %64 = arith.addf %4, %63 : vector<256x16xf32>
    %c0_33 = arith.constant 0 : index
    %c256 = arith.constant 256 : index
    %c0_34 = arith.constant 0 : index
    %65 = vector.load %arg1[%c0_33, %c256, %c0_34] : memref<1x2432x16xf32, #tpu.memory_space<vmem>>, vector<1x64x16xf32>
    %66 = vector.shape_cast %65 : vector<1x64x16xf32> to vector<64x16xf32>
    %c0_35 = arith.constant 0 : index
    %c320 = arith.constant 320 : index
    %c0_36 = arith.constant 0 : index
    %67 = vector.load %arg1[%c0_35, %c320, %c0_36] : memref<1x2432x16xf32, #tpu.memory_space<vmem>>, vector<1x64x16xf32>
    %68 = vector.shape_cast %67 : vector<1x64x16xf32> to vector<64x16xf32>
    %c0_37 = arith.constant 0 : index
    %c2176 = arith.constant 2176 : index
    %c0_38 = arith.constant 0 : index
    %69 = vector.load %arg1[%c0_37, %c2176, %c0_38] : memref<1x2432x16xf32, #tpu.memory_space<vmem>>, vector<1x64x16xf32>
    %70 = vector.shape_cast %69 : vector<1x64x16xf32> to vector<64x16xf32>
    %c0_39 = arith.constant 0 : index
    %c2240 = arith.constant 2240 : index
    %c0_40 = arith.constant 0 : index
    %71 = vector.load %arg1[%c0_39, %c2240, %c0_40] : memref<1x2432x16xf32, #tpu.memory_space<vmem>>, vector<1x64x16xf32>
    %72 = vector.shape_cast %71 : vector<1x64x16xf32> to vector<64x16xf32>
    %c0_41 = arith.constant 0 : index
    %c2048 = arith.constant 2048 : index
    %c0_42 = arith.constant 0 : index
    %73 = vector.load %arg1[%c0_41, %c2048, %c0_42] : memref<1x2432x16xf32, #tpu.memory_space<vmem>>, vector<1x64x16xf32>
    %74 = vector.shape_cast %73 : vector<1x64x16xf32> to vector<64x16xf32>
    %c0_43 = arith.constant 0 : index
    %c2112 = arith.constant 2112 : index
    %c0_44 = arith.constant 0 : index
    %75 = vector.load %arg1[%c0_43, %c2112, %c0_44] : memref<1x2432x16xf32, #tpu.memory_space<vmem>>, vector<1x64x16xf32>
    %76 = vector.shape_cast %75 : vector<1x64x16xf32> to vector<64x16xf32>
    %cst_45 = arith.constant dense<0.000000e+00> : vector<16x16xf32>
    %77 = tpu.matmul %66, %68, %cst_45 {dimension_numbers = #tpu.dot_dimension_numbers<[0], [0], [1], [1], [0, 1, 1, 1], [], []>} : vector<64x16xf32>, vector<64x16xf32>, vector<16x16xf32> -> vector<16x16xf32>
    %cst_46 = arith.constant 1.562500e-02 : f32
    %78 = vector.broadcast %cst_46 : f32 to vector<16x16xf32>
    %79 = arith.mulf %77, %78 : vector<16x16xf32>
    %cst_47 = arith.constant dense<0.000000e+00> : vector<16x16xf32>
    %80 = tpu.matmul %70, %72, %cst_47 {dimension_numbers = #tpu.dot_dimension_numbers<[0], [0], [1], [1], [0, 1, 1, 1], [], []>} : vector<64x16xf32>, vector<64x16xf32>, vector<16x16xf32> -> vector<16x16xf32>
    %cst_48 = arith.constant 1.562500e-02 : f32
    %81 = vector.broadcast %cst_48 : f32 to vector<16x16xf32>
    %82 = arith.mulf %80, %81 : vector<16x16xf32>
    %cst_49 = arith.constant dense<0.000000e+00> : vector<16x16xf32>
    %83 = tpu.matmul %74, %76, %cst_49 {dimension_numbers = #tpu.dot_dimension_numbers<[0], [0], [1], [1], [0, 1, 1, 1], [], []>} : vector<64x16xf32>, vector<64x16xf32>, vector<16x16xf32> -> vector<16x16xf32>
    %cst_50 = arith.constant 1.562500e-02 : f32
    %84 = vector.broadcast %cst_50 : f32 to vector<16x16xf32>
    %85 = arith.mulf %83, %84 : vector<16x16xf32>
    %c1 = arith.constant 1 : index
    %c0_51 = arith.constant 0 : index
    %c0_52 = arith.constant 0 : index
    %86 = vector.load %arg2[%c1, %c0_51, %c0_52] : memref<3x16x16xf32, #tpu.memory_space<vmem>>, vector<1x16x16xf32>
    %87 = vector.shape_cast %86 : vector<1x16x16xf32> to vector<16x16xf32>
    %cst_53 = arith.constant dense<0xFF800000> : vector<16xf32>
    %88 = vector.multi_reduction <maximumf>, %79, %cst_53 [0] : vector<16x16xf32> to vector<16xf32>
    %89 = vector.shape_cast %88 : vector<16xf32> to vector<1x16xf32>
    %90 = vector.broadcast %89 : vector<1x16xf32> to vector<16x16xf32>
    %91 = arith.subf %79, %90 : vector<16x16xf32>
    %92 = math.exp %91 : vector<16x16xf32>
    %cst_54 = arith.constant dense<0.000000e+00> : vector<16xf32>
    %93 = vector.multi_reduction <add>, %92, %cst_54 [0] : vector<16x16xf32> to vector<16xf32>
    %94 = vector.shape_cast %93 : vector<16xf32> to vector<1x16xf32>
    %95 = tpu.reciprocal %94 {approx = true} : vector<1x16xf32> -> vector<1x16xf32>
    %96 = vector.broadcast %95 : vector<1x16xf32> to vector<16x16xf32>
    %97 = arith.mulf %92, %96 : vector<16x16xf32>
    %98 = arith.addf %87, %97 : vector<16x16xf32>
    %cst_55 = arith.constant dense<0xFF800000> : vector<16xf32>
    %99 = vector.multi_reduction <maximumf>, %82, %cst_55 [0] : vector<16x16xf32> to vector<16xf32>
    %100 = vector.shape_cast %99 : vector<16xf32> to vector<1x16xf32>
    %101 = vector.broadcast %100 : vector<1x16xf32> to vector<16x16xf32>
    %102 = arith.subf %82, %101 : vector<16x16xf32>
    %103 = math.exp %102 : vector<16x16xf32>
    %cst_56 = arith.constant dense<0.000000e+00> : vector<16xf32>
    %104 = vector.multi_reduction <add>, %103, %cst_56 [0] : vector<16x16xf32> to vector<16xf32>
    %105 = vector.shape_cast %104 : vector<16xf32> to vector<1x16xf32>
    %106 = tpu.reciprocal %105 {approx = true} : vector<1x16xf32> -> vector<1x16xf32>
    %107 = vector.broadcast %106 : vector<1x16xf32> to vector<16x16xf32>
    %108 = arith.mulf %103, %107 : vector<16x16xf32>
    %109 = arith.addf %98, %108 : vector<16x16xf32>
    %cst_57 = arith.constant dense<0xFF800000> : vector<16xf32>
    %110 = vector.multi_reduction <maximumf>, %85, %cst_57 [0] : vector<16x16xf32> to vector<16xf32>
    %111 = vector.shape_cast %110 : vector<16xf32> to vector<1x16xf32>
    %112 = vector.broadcast %111 : vector<1x16xf32> to vector<16x16xf32>
    %113 = arith.subf %85, %112 : vector<16x16xf32>
    %114 = math.exp %113 : vector<16x16xf32>
    %cst_58 = arith.constant dense<0.000000e+00> : vector<16xf32>
    %115 = vector.multi_reduction <add>, %114, %cst_58 [0] : vector<16x16xf32> to vector<16xf32>
    %116 = vector.shape_cast %115 : vector<16xf32> to vector<1x16xf32>
    %117 = tpu.reciprocal %116 {approx = true} : vector<1x16xf32> -> vector<1x16xf32>
    %118 = vector.broadcast %117 : vector<1x16xf32> to vector<16x16xf32>
    %119 = arith.mulf %114, %118 : vector<16x16xf32>
    %120 = arith.addf %109, %119 : vector<16x16xf32>
    %c0_59 = arith.constant 0 : index
    %c896 = arith.constant 896 : index
    %c0_60 = arith.constant 0 : index
    %121 = vector.load %arg1[%c0_59, %c896, %c0_60] : memref<1x2432x16xf32, #tpu.memory_space<vmem>>, vector<1x256x16xf32>
    %122 = vector.shape_cast %121 : vector<1x256x16xf32> to vector<256x16xf32>
    %cst_61 = arith.constant dense<0.000000e+00> : vector<256x16xf32>
    %123 = tpu.matmul %122, %120, %cst_61 {dimension_numbers = #tpu.dot_dimension_numbers<[1], [0], [0], [1], [0, 0, 1, 1], [], []>} : vector<256x16xf32>, vector<16x16xf32>, vector<256x16xf32> -> vector<256x16xf32>
    %124 = arith.addf %64, %123 : vector<256x16xf32>
    %c0_62 = arith.constant 0 : index
    %c384 = arith.constant 384 : index
    %c0_63 = arith.constant 0 : index
    %125 = vector.load %arg1[%c0_62, %c384, %c0_63] : memref<1x2432x16xf32, #tpu.memory_space<vmem>>, vector<1x64x16xf32>
    %126 = vector.shape_cast %125 : vector<1x64x16xf32> to vector<64x16xf32>
    %c0_64 = arith.constant 0 : index
    %c448 = arith.constant 448 : index
    %c0_65 = arith.constant 0 : index
    %127 = vector.load %arg1[%c0_64, %c448, %c0_65] : memref<1x2432x16xf32, #tpu.memory_space<vmem>>, vector<1x64x16xf32>
    %128 = vector.shape_cast %127 : vector<1x64x16xf32> to vector<64x16xf32>
    %c0_66 = arith.constant 0 : index
    %c2304 = arith.constant 2304 : index
    %c0_67 = arith.constant 0 : index
    %129 = vector.load %arg1[%c0_66, %c2304, %c0_67] : memref<1x2432x16xf32, #tpu.memory_space<vmem>>, vector<1x64x16xf32>
    %130 = vector.shape_cast %129 : vector<1x64x16xf32> to vector<64x16xf32>
    %c0_68 = arith.constant 0 : index
    %c2368 = arith.constant 2368 : index
    %c0_69 = arith.constant 0 : index
    %131 = vector.load %arg1[%c0_68, %c2368, %c0_69] : memref<1x2432x16xf32, #tpu.memory_space<vmem>>, vector<1x64x16xf32>
    %132 = vector.shape_cast %131 : vector<1x64x16xf32> to vector<64x16xf32>
    %c0_70 = arith.constant 0 : index
    %c512 = arith.constant 512 : index
    %c0_71 = arith.constant 0 : index
    %133 = vector.load %arg1[%c0_70, %c512, %c0_71] : memref<1x2432x16xf32, #tpu.memory_space<vmem>>, vector<1x64x16xf32>
    %134 = vector.shape_cast %133 : vector<1x64x16xf32> to vector<64x16xf32>
    %c0_72 = arith.constant 0 : index
    %c576 = arith.constant 576 : index
    %c0_73 = arith.constant 0 : index
    %135 = vector.load %arg1[%c0_72, %c576, %c0_73] : memref<1x2432x16xf32, #tpu.memory_space<vmem>>, vector<1x64x16xf32>
    %136 = vector.shape_cast %135 : vector<1x64x16xf32> to vector<64x16xf32>
    %cst_74 = arith.constant dense<0.000000e+00> : vector<16x16xf32>
    %137 = tpu.matmul %126, %128, %cst_74 {dimension_numbers = #tpu.dot_dimension_numbers<[0], [0], [1], [1], [0, 1, 1, 1], [], []>} : vector<64x16xf32>, vector<64x16xf32>, vector<16x16xf32> -> vector<16x16xf32>
    %cst_75 = arith.constant 1.562500e-02 : f32
    %138 = vector.broadcast %cst_75 : f32 to vector<16x16xf32>
    %139 = arith.mulf %137, %138 : vector<16x16xf32>
    %cst_76 = arith.constant dense<0.000000e+00> : vector<16x16xf32>
    %140 = tpu.matmul %130, %132, %cst_76 {dimension_numbers = #tpu.dot_dimension_numbers<[0], [0], [1], [1], [0, 1, 1, 1], [], []>} : vector<64x16xf32>, vector<64x16xf32>, vector<16x16xf32> -> vector<16x16xf32>
    %cst_77 = arith.constant 1.562500e-02 : f32
    %141 = vector.broadcast %cst_77 : f32 to vector<16x16xf32>
    %142 = arith.mulf %140, %141 : vector<16x16xf32>
    %cst_78 = arith.constant dense<0.000000e+00> : vector<16x16xf32>
    %143 = tpu.matmul %134, %136, %cst_78 {dimension_numbers = #tpu.dot_dimension_numbers<[0], [0], [1], [1], [0, 1, 1, 1], [], []>} : vector<64x16xf32>, vector<64x16xf32>, vector<16x16xf32> -> vector<16x16xf32>
    %cst_79 = arith.constant 1.562500e-02 : f32
    %144 = vector.broadcast %cst_79 : f32 to vector<16x16xf32>
    %145 = arith.mulf %143, %144 : vector<16x16xf32>
    %c2 = arith.constant 2 : index
    %c0_80 = arith.constant 0 : index
    %c0_81 = arith.constant 0 : index
    %146 = vector.load %arg2[%c2, %c0_80, %c0_81] : memref<3x16x16xf32, #tpu.memory_space<vmem>>, vector<1x16x16xf32>
    %147 = vector.shape_cast %146 : vector<1x16x16xf32> to vector<16x16xf32>
    %cst_82 = arith.constant dense<0xFF800000> : vector<16xf32>
    %148 = vector.multi_reduction <maximumf>, %139, %cst_82 [0] : vector<16x16xf32> to vector<16xf32>
    %149 = vector.shape_cast %148 : vector<16xf32> to vector<1x16xf32>
    %150 = vector.broadcast %149 : vector<1x16xf32> to vector<16x16xf32>
    %151 = arith.subf %139, %150 : vector<16x16xf32>
    %152 = math.exp %151 : vector<16x16xf32>
    %cst_83 = arith.constant dense<0.000000e+00> : vector<16xf32>
    %153 = vector.multi_reduction <add>, %152, %cst_83 [0] : vector<16x16xf32> to vector<16xf32>
    %154 = vector.shape_cast %153 : vector<16xf32> to vector<1x16xf32>
    %155 = tpu.reciprocal %154 {approx = true} : vector<1x16xf32> -> vector<1x16xf32>
    %156 = vector.broadcast %155 : vector<1x16xf32> to vector<16x16xf32>
    %157 = arith.mulf %152, %156 : vector<16x16xf32>
    %158 = arith.addf %147, %157 : vector<16x16xf32>
    %cst_84 = arith.constant dense<0xFF800000> : vector<16xf32>
    %159 = vector.multi_reduction <maximumf>, %142, %cst_84 [0] : vector<16x16xf32> to vector<16xf32>
    %160 = vector.shape_cast %159 : vector<16xf32> to vector<1x16xf32>
    %161 = vector.broadcast %160 : vector<1x16xf32> to vector<16x16xf32>
    %162 = arith.subf %142, %161 : vector<16x16xf32>
    %163 = math.exp %162 : vector<16x16xf32>
    %cst_85 = arith.constant dense<0.000000e+00> : vector<16xf32>
    %164 = vector.multi_reduction <add>, %163, %cst_85 [0] : vector<16x16xf32> to vector<16xf32>
    %165 = vector.shape_cast %164 : vector<16xf32> to vector<1x16xf32>
    %166 = tpu.reciprocal %165 {approx = true} : vector<1x16xf32> -> vector<1x16xf32>
    %167 = vector.broadcast %166 : vector<1x16xf32> to vector<16x16xf32>
    %168 = arith.mulf %163, %167 : vector<16x16xf32>
    %169 = arith.addf %158, %168 : vector<16x16xf32>
    %cst_86 = arith.constant dense<0xFF800000> : vector<16xf32>
    %170 = vector.multi_reduction <maximumf>, %145, %cst_86 [0] : vector<16x16xf32> to vector<16xf32>
    %171 = vector.shape_cast %170 : vector<16xf32> to vector<1x16xf32>
    %172 = vector.broadcast %171 : vector<1x16xf32> to vector<16x16xf32>
    %173 = arith.subf %145, %172 : vector<16x16xf32>
    %174 = math.exp %173 : vector<16x16xf32>
    %cst_87 = arith.constant dense<0.000000e+00> : vector<16xf32>
    %175 = vector.multi_reduction <add>, %174, %cst_87 [0] : vector<16x16xf32> to vector<16xf32>
    %176 = vector.shape_cast %175 : vector<16xf32> to vector<1x16xf32>
    %177 = tpu.reciprocal %176 {approx = true} : vector<1x16xf32> -> vector<1x16xf32>
    %178 = vector.broadcast %177 : vector<1x16xf32> to vector<16x16xf32>
    %179 = arith.mulf %174, %178 : vector<16x16xf32>
    %180 = arith.addf %169, %179 : vector<16x16xf32>
    %c0_88 = arith.constant 0 : index
    %c1152 = arith.constant 1152 : index
    %c0_89 = arith.constant 0 : index
    %181 = vector.load %arg1[%c0_88, %c1152, %c0_89] : memref<1x2432x16xf32, #tpu.memory_space<vmem>>, vector<1x256x16xf32>
    %182 = vector.shape_cast %181 : vector<1x256x16xf32> to vector<256x16xf32>
    %cst_90 = arith.constant dense<0.000000e+00> : vector<256x16xf32>
    %183 = tpu.matmul %182, %180, %cst_90 {dimension_numbers = #tpu.dot_dimension_numbers<[1], [0], [0], [1], [0, 0, 1, 1], [], []>} : vector<256x16xf32>, vector<16x16xf32>, vector<256x16xf32> -> vector<256x16xf32>
    %184 = arith.addf %124, %183 : vector<256x16xf32>
    %cst_91 = arith.constant 0.000000e+00 : f32
    %185 = vector.broadcast %cst_91 : f32 to vector<256x16xf32>
    %186 = arith.maximumf %184, %185 : vector<256x16xf32>
    %c0_92 = arith.constant 0 : index
    %c0_93 = arith.constant 0 : index
    %c0_94 = arith.constant 0 : index
    %187 = vector.load %arg4[%c0_92, %c0_93, %c0_94] : memref<1x256x16xf32, #tpu.memory_space<vmem>>, vector<1x256x16xf32>
    %188 = vector.shape_cast %187 : vector<1x256x16xf32> to vector<256x16xf32>
    %189 = vector.shape_cast %186 : vector<256x16xf32> to vector<1x256x16xf32>
    tpu.vector_store %arg4[%c0_92, %c0_93, %c0_94], %189 {strides = array<i32>} : memref<1x256x16xf32, #tpu.memory_space<vmem>>, vector<1x256x16xf32>,
    return
  }
  func.func @transform_0(%arg0: i32) -> (i32, i32, i32) {
    %c0_i32 = arith.constant 0 : i32
    %c0_i32_0 = arith.constant 0 : i32
    %c0_i32_1 = arith.constant 0 : i32
    return %arg0, %c0_i32, %c0_i32_0 : i32, i32, i32
  }
  func.func @transform_1(%arg0: i32) -> (i32, i32, i32) {
    %c0_i32 = arith.constant 0 : i32
    %c0_i32_0 = arith.constant 0 : i32
    %c0_i32_1 = arith.constant 0 : i32
    %c0_i32_2 = arith.constant 0 : i32
    return %c0_i32, %c0_i32_0, %c0_i32_1 : i32, i32, i32
  }
  func.func @transform_2(%arg0: i32) -> (i32, i32) {
    %c0_i32 = arith.constant 0 : i32
    %c0_i32_0 = arith.constant 0 : i32
    %c0_i32_1 = arith.constant 0 : i32
    return %c0_i32, %c0_i32_0 : i32, i32
  }
  func.func @transform_3(%arg0: i32) -> (i32, i32, i32) {
    %c0_i32 = arith.constant 0 : i32
    %c0_i32_0 = arith.constant 0 : i32
    %c0_i32_1 = arith.constant 0 : i32
    return %arg0, %c0_i32, %c0_i32_0 : i32, i32, i32
  }
}

module attributes {stable_mosaic.version = 11 : i64} {
  func.func @kernel(%arg0: i32, %arg1: memref<1x16x384xf32, #tpu.memory_space<vmem>>, %arg2: memref<1x16x256xf32, #tpu.memory_space<vmem>>, %arg3: memref<16x144xf32, #tpu.memory_space<vmem>>, %arg4: memref<16x1xf32, #tpu.memory_space<vmem>>, %arg5: memref<1x16x256xf32, #tpu.memory_space<vmem>>) attributes {dimension_semantics = [#tpu.dimension_semantics<parallel>], iteration_bounds = array<i64: 2>, scalar_prefetch = 0 : i64, scratch_operands = 0 : i64, tpu.core_type = #tpu.core_type<tc>, window_params = [{transform_indices = @transform_0, window_bounds = array<i64: 1, 16, 384>}, {transform_indices = @transform_1, window_bounds = array<i64: 1, 16, 256>}, {pipeline_mode = #tpu.pipeline_mode<synchronous>, transform_indices = @transform_2, window_bounds = array<i64: 16, 144>}, {pipeline_mode = #tpu.pipeline_mode<synchronous>, transform_indices = @transform_3, window_bounds = array<i64: 16, 1>}, {transform_indices = @transform_4, window_bounds = array<i64: 1, 16, 256>}]} {
    %c0 = arith.constant 0 : index
    %c0_0 = arith.constant 0 : index
    %c0_1 = arith.constant 0 : index
    %0 = vector.load %arg2[%c0, %c0_0, %c0_1] : memref<1x16x256xf32, #tpu.memory_space<vmem>>, vector<1x16x256xf32>
    %1 = vector.shape_cast %0 : vector<1x16x256xf32> to vector<16x256xf32>
    %c0_2 = arith.constant 0 : index
    %c0_3 = arith.constant 0 : index
    %2 = vector.load %arg4[%c0_2, %c0_3] : memref<16x1xf32, #tpu.memory_space<vmem>>, vector<16x1xf32>
    %3 = vector.broadcast %2 : vector<16x1xf32> to vector<16x256xf32>
    %4 = arith.addf %1, %3 : vector<16x256xf32>
    %c0_4 = arith.constant 0 : index
    %c0_5 = arith.constant 0 : index
    %5 = vector.load %arg3[%c0_4, %c0_5] : memref<16x144xf32, #tpu.memory_space<vmem>>, vector<16x16xf32>
    %c0_6 = arith.constant 0 : index
    %c0_7 = arith.constant 0 : index
    %c0_8 = arith.constant 0 : index
    %6 = vector.load %arg1[%c0_6, %c0_7, %c0_8] : memref<1x16x384xf32, #tpu.memory_space<vmem>>, vector<1x16x256xf32>
    %7 = vector.shape_cast %6 : vector<1x16x256xf32> to vector<16x256xf32>
    %cst = arith.constant dense<0.000000e+00> : vector<16x256xf32>
    %8 = tpu.matmul %5, %7, %cst {dimension_numbers = #tpu.dot_dimension_numbers<[1], [0], [0], [1], [0, 0, 1, 1], [], []>} : vector<16x16xf32>, vector<16x256xf32>, vector<16x256xf32> -> vector<16x256xf32>
    %9 = arith.addf %4, %8 : vector<16x256xf32>
    %c0_9 = arith.constant 0 : index
    %c16 = arith.constant 16 : index
    %10 = vector.load %arg3[%c0_9, %c16] : memref<16x144xf32, #tpu.memory_space<vmem>>, vector<16x16xf32>
    %c0_10 = arith.constant 0 : index
    %c0_11 = arith.constant 0 : index
    %c16_12 = arith.constant 16 : index
    %11 = vector.load %arg1[%c0_10, %c0_11, %c16_12] : memref<1x16x384xf32, #tpu.memory_space<vmem>>, vector<1x16x256xf32>
    %12 = vector.shape_cast %11 : vector<1x16x256xf32> to vector<16x256xf32>
    %cst_13 = arith.constant dense<0.000000e+00> : vector<16x256xf32>
    %13 = tpu.matmul %10, %12, %cst_13 {dimension_numbers = #tpu.dot_dimension_numbers<[1], [0], [0], [1], [0, 0, 1, 1], [], []>} : vector<16x16xf32>, vector<16x256xf32>, vector<16x256xf32> -> vector<16x256xf32>
    %14 = arith.addf %9, %13 : vector<16x256xf32>
    %c0_14 = arith.constant 0 : index
    %c32 = arith.constant 32 : index
    %15 = vector.load %arg3[%c0_14, %c32] : memref<16x144xf32, #tpu.memory_space<vmem>>, vector<16x16xf32>
    %c0_15 = arith.constant 0 : index
    %c0_16 = arith.constant 0 : index
    %c32_17 = arith.constant 32 : index
    %16 = vector.load %arg1[%c0_15, %c0_16, %c32_17] : memref<1x16x384xf32, #tpu.memory_space<vmem>>, vector<1x16x256xf32>
    %17 = vector.shape_cast %16 : vector<1x16x256xf32> to vector<16x256xf32>
    %cst_18 = arith.constant dense<0.000000e+00> : vector<16x256xf32>
    %18 = tpu.matmul %15, %17, %cst_18 {dimension_numbers = #tpu.dot_dimension_numbers<[1], [0], [0], [1], [0, 0, 1, 1], [], []>} : vector<16x16xf32>, vector<16x256xf32>, vector<16x256xf32> -> vector<16x256xf32>
    %19 = arith.addf %14, %18 : vector<16x256xf32>
    %c0_19 = arith.constant 0 : index
    %c48 = arith.constant 48 : index
    %20 = vector.load %arg3[%c0_19, %c48] : memref<16x144xf32, #tpu.memory_space<vmem>>, vector<16x16xf32>
    %c0_20 = arith.constant 0 : index
    %c0_21 = arith.constant 0 : index
    %c48_22 = arith.constant 48 : index
    %21 = vector.load %arg1[%c0_20, %c0_21, %c48_22] : memref<1x16x384xf32, #tpu.memory_space<vmem>>, vector<1x16x256xf32>
    %22 = vector.shape_cast %21 : vector<1x16x256xf32> to vector<16x256xf32>
    %cst_23 = arith.constant dense<0.000000e+00> : vector<16x256xf32>
    %23 = tpu.matmul %20, %22, %cst_23 {dimension_numbers = #tpu.dot_dimension_numbers<[1], [0], [0], [1], [0, 0, 1, 1], [], []>} : vector<16x16xf32>, vector<16x256xf32>, vector<16x256xf32> -> vector<16x256xf32>
    %24 = arith.addf %19, %23 : vector<16x256xf32>
    %c0_24 = arith.constant 0 : index
    %c64 = arith.constant 64 : index
    %25 = vector.load %arg3[%c0_24, %c64] : memref<16x144xf32, #tpu.memory_space<vmem>>, vector<16x16xf32>
    %c0_25 = arith.constant 0 : index
    %c0_26 = arith.constant 0 : index
    %c64_27 = arith.constant 64 : index
    %26 = vector.load %arg1[%c0_25, %c0_26, %c64_27] : memref<1x16x384xf32, #tpu.memory_space<vmem>>, vector<1x16x256xf32>
    %27 = vector.shape_cast %26 : vector<1x16x256xf32> to vector<16x256xf32>
    %cst_28 = arith.constant dense<0.000000e+00> : vector<16x256xf32>
    %28 = tpu.matmul %25, %27, %cst_28 {dimension_numbers = #tpu.dot_dimension_numbers<[1], [0], [0], [1], [0, 0, 1, 1], [], []>} : vector<16x16xf32>, vector<16x256xf32>, vector<16x256xf32> -> vector<16x256xf32>
    %29 = arith.addf %24, %28 : vector<16x256xf32>
    %c0_29 = arith.constant 0 : index
    %c80 = arith.constant 80 : index
    %30 = vector.load %arg3[%c0_29, %c80] : memref<16x144xf32, #tpu.memory_space<vmem>>, vector<16x16xf32>
    %c0_30 = arith.constant 0 : index
    %c0_31 = arith.constant 0 : index
    %c80_32 = arith.constant 80 : index
    %31 = vector.load %arg1[%c0_30, %c0_31, %c80_32] : memref<1x16x384xf32, #tpu.memory_space<vmem>>, vector<1x16x256xf32>
    %32 = vector.shape_cast %31 : vector<1x16x256xf32> to vector<16x256xf32>
    %cst_33 = arith.constant dense<0.000000e+00> : vector<16x256xf32>
    %33 = tpu.matmul %30, %32, %cst_33 {dimension_numbers = #tpu.dot_dimension_numbers<[1], [0], [0], [1], [0, 0, 1, 1], [], []>} : vector<16x16xf32>, vector<16x256xf32>, vector<16x256xf32> -> vector<16x256xf32>
    %34 = arith.addf %29, %33 : vector<16x256xf32>
    %c0_34 = arith.constant 0 : index
    %c96 = arith.constant 96 : index
    %35 = vector.load %arg3[%c0_34, %c96] : memref<16x144xf32, #tpu.memory_space<vmem>>, vector<16x16xf32>
    %c0_35 = arith.constant 0 : index
    %c0_36 = arith.constant 0 : index
    %c96_37 = arith.constant 96 : index
    %36 = vector.load %arg1[%c0_35, %c0_36, %c96_37] : memref<1x16x384xf32, #tpu.memory_space<vmem>>, vector<1x16x256xf32>
    %37 = vector.shape_cast %36 : vector<1x16x256xf32> to vector<16x256xf32>
    %cst_38 = arith.constant dense<0.000000e+00> : vector<16x256xf32>
    %38 = tpu.matmul %35, %37, %cst_38 {dimension_numbers = #tpu.dot_dimension_numbers<[1], [0], [0], [1], [0, 0, 1, 1], [], []>} : vector<16x16xf32>, vector<16x256xf32>, vector<16x256xf32> -> vector<16x256xf32>
    %39 = arith.addf %34, %38 : vector<16x256xf32>
    %c0_39 = arith.constant 0 : index
    %c112 = arith.constant 112 : index
    %40 = vector.load %arg3[%c0_39, %c112] : memref<16x144xf32, #tpu.memory_space<vmem>>, vector<16x16xf32>
    %c0_40 = arith.constant 0 : index
    %c0_41 = arith.constant 0 : index
    %c112_42 = arith.constant 112 : index
    %41 = vector.load %arg1[%c0_40, %c0_41, %c112_42] : memref<1x16x384xf32, #tpu.memory_space<vmem>>, vector<1x16x256xf32>
    %42 = vector.shape_cast %41 : vector<1x16x256xf32> to vector<16x256xf32>
    %cst_43 = arith.constant dense<0.000000e+00> : vector<16x256xf32>
    %43 = tpu.matmul %40, %42, %cst_43 {dimension_numbers = #tpu.dot_dimension_numbers<[1], [0], [0], [1], [0, 0, 1, 1], [], []>} : vector<16x16xf32>, vector<16x256xf32>, vector<16x256xf32> -> vector<16x256xf32>
    %44 = arith.addf %39, %43 : vector<16x256xf32>
    %c0_44 = arith.constant 0 : index
    %c128 = arith.constant 128 : index
    %45 = vector.load %arg3[%c0_44, %c128] : memref<16x144xf32, #tpu.memory_space<vmem>>, vector<16x16xf32>
    %c0_45 = arith.constant 0 : index
    %c0_46 = arith.constant 0 : index
    %c128_47 = arith.constant 128 : index
    %46 = vector.load %arg1[%c0_45, %c0_46, %c128_47] : memref<1x16x384xf32, #tpu.memory_space<vmem>>, vector<1x16x256xf32>
    %47 = vector.shape_cast %46 : vector<1x16x256xf32> to vector<16x256xf32>
    %cst_48 = arith.constant dense<0.000000e+00> : vector<16x256xf32>
    %48 = tpu.matmul %45, %47, %cst_48 {dimension_numbers = #tpu.dot_dimension_numbers<[1], [0], [0], [1], [0, 0, 1, 1], [], []>} : vector<16x16xf32>, vector<16x256xf32>, vector<16x256xf32> -> vector<16x256xf32>
    %49 = arith.addf %44, %48 : vector<16x256xf32>
    %cst_49 = arith.constant 0.000000e+00 : f32
    %50 = vector.broadcast %cst_49 : f32 to vector<16x256xf32>
    %51 = arith.maximumf %49, %50 : vector<16x256xf32>
    %c0_50 = arith.constant 0 : index
    %c0_51 = arith.constant 0 : index
    %c0_52 = arith.constant 0 : index
    %52 = vector.load %arg5[%c0_50, %c0_51, %c0_52] : memref<1x16x256xf32, #tpu.memory_space<vmem>>, vector<1x16x256xf32>
    %53 = vector.shape_cast %52 : vector<1x16x256xf32> to vector<16x256xf32>
    %54 = vector.shape_cast %51 : vector<16x256xf32> to vector<1x16x256xf32>
    tpu.vector_store %arg5[%c0_50, %c0_51, %c0_52], %54 {strides = array<i32>} : memref<1x16x256xf32, #tpu.memory_space<vmem>>, vector<1x16x256xf32>,
    return
  }
  func.func @transform_0(%arg0: i32) -> (i32, i32, i32) {
    %c0_i32 = arith.constant 0 : i32
    %c0_i32_0 = arith.constant 0 : i32
    %c0_i32_1 = arith.constant 0 : i32
    return %arg0, %c0_i32, %c0_i32_0 : i32, i32, i32
  }
  func.func @transform_1(%arg0: i32) -> (i32, i32, i32) {
    %c0_i32 = arith.constant 0 : i32
    %c0_i32_0 = arith.constant 0 : i32
    %c0_i32_1 = arith.constant 0 : i32
    return %arg0, %c0_i32, %c0_i32_0 : i32, i32, i32
  }
  func.func @transform_2(%arg0: i32) -> (i32, i32) {
    %c0_i32 = arith.constant 0 : i32
    %c0_i32_0 = arith.constant 0 : i32
    %c0_i32_1 = arith.constant 0 : i32
    return %c0_i32, %c0_i32_0 : i32, i32
  }
  func.func @transform_3(%arg0: i32) -> (i32, i32) {
    %c0_i32 = arith.constant 0 : i32
    %c0_i32_0 = arith.constant 0 : i32
    %c0_i32_1 = arith.constant 0 : i32
    return %c0_i32, %c0_i32_0 : i32, i32
  }
  func.func @transform_4(%arg0: i32) -> (i32, i32, i32) {
    %c0_i32 = arith.constant 0 : i32
    %c0_i32_0 = arith.constant 0 : i32
    %c0_i32_1 = arith.constant 0 : i32
    return %arg0, %c0_i32, %c0_i32_0 : i32, i32, i32
  }
}

</mosaic_0001>

<bundles_post_ra>
// kernel: tcn_gcn_unit_7_forward.3
= control target key start
LH: loop header
LB: loop body
LE: loop exit
PB: predicated region body
PF: predicated region fallthrough
CT: control target
= control target key end

     0   :  { %10 = vsyncpa [#allocation3], 0  ;;  %s3121_s0 = inlined_call_operand.hbm [shape: f32[2,4,384], index: 0, kind: input, shape index: {}]   ;;  %s3122_s1 = inlined_call_operand.hbm [shape: f32[120,4], index: 1, kind: input, shape index: {}]   ;;  %s3123_s2 = inlined_call_operand.hbm [shape: f32[120,1], index: 2, kind: input, shape index: {}]   ;;  %s3124_s3 = inlined_call_operand.hbm [shape: f32[32,36], index: 3, kind: input, shape index: {}]   ;;  %s3125_s4 = inlined_call_operand.hbm [shape: f32[32,1], index: 4, kind: input, shape index: {}]   ;;  %s3126_s5 = inlined_call_operand.hbm [shape: f32[2,152,256], index: 5, kind: output, shape index: {}]  }
   0x1   :  { %12 = vsyncpa [#allocation3 + $0x1], 0 }
   0x2   :  { %13 = vsyncpa [#allocation6], 0 }
   0x3   :  { %14 = vsyncpa [#allocation9], 0 }
   0x4   :  { %15 = vsyncpa [#allocation4], 0 }
   0x5   :  { %17 = vsyncpa [#allocation4 + $0x1], 0  ;;  %s2554_s18 = smov 0   ;;  %s2556_s19 = smov 0  }
   0x6   :  { %s2558_s20 = smov 0   ;;  %s2560_s21 = smov 0  }
   0x7 LB: > { %s2500_s22 = smov [#allocation5]   ;;  %s2575_s24 = sadd.s32 4294967295, %s2498_s21   ;;  %s2498_s21 = sphi %s2560_s21, %s3149_s21   ;;  %s2494_s20 = sphi %s2558_s20, %s3148_s20   ;;  %s2490_s19 = sphi %s2556_s19, %s3147_s19   ;;  %s2486_s18 = sphi %s2554_s18, %s3146_s18  }
   0x8   : > { %s176_s23 = sshll.u32 %s2500_s22, 4  ;;  %p2016_p0 = scmp.ge.s32.totalorder %s2498_s21, 1  ;;  %s2580_s23 = int_to_ptr.vmem [resolvable:$true] %s176_s23 }
   0x9   : > { %p3127_p1 = scmp.eq.s32.totalorder %s2575_s24, 0  ;;  %p164_p2 = scmp.lt.s32.totalorder %s2498_s21, 3 }
   0xa   : > { %s2501_s26 = smov [#allocation8]   ;;  %s2502_s29 = smov [#allocation7]  }
   0xb   : > { %p2582_p3 = pnand %p2016_p0, %p164_p2  ;;  %s202_s27 = sshll.u32 %s2501_s26, 4  ;;  %s2595_s27 = int_to_ptr.vmem [resolvable:$true] %s202_s27 }
   0xc   : > { %s189_s30 = sshll.u32 %s2502_s29, 4  ;;  %s2282_s8 = scalar_lea.hbm %s3122_s1, 1920  ;;  %s2597_s30 = int_to_ptr.vmem [resolvable:$true] %s189_s30 }
   0xd   : > { %s3130_s25 = scalar_select %p2582_p3, 1, 0 }
   0xe   : > { %p2193_p5 = pneg %p2582_p3  ;;  %p2283_p7 = scmp.ne.s32.totalorder %s3122_s1, %s2282_s8 }
   0xf   : > { %p2289_p11 = scmp.lt.u32.totalorder %s2282_s8, %s3122_s1 }
  0x10   : > { %p2591_p6 = pnand %p2193_p5, %p3127_p1 }
  0x12   : > { %p2607_p8 = pneg %p2591_p6 }
  0x14   : > { %p2285_p9 = pnand %p2607_p8, %p2283_p7 }
  0x16   : > { %p2286_p10 = pneg %p2285_p9 }
  0x18   : > { %p2291_p12 = pnand %p2289_p11, %p2286_p10 }
  0x1a   : > { %2294 = shalt.err (!%p2291_p12)
}
  0x1b   : > { %s2295_s14 = scalar_lea.vmem %s2580_s23, 1920  ;;  %p2303_p5 = scmp.lt.s32.totalorder %s2580_s23, %s2580_s23 }
  0x1c   : > { %p2296_p13 = scmp.ne.s32.totalorder %s2580_s23, %s2295_s14  ;;  %p2304_p4 = scmp.lt.s32.totalorder %s2295_s14, %s2295_s14 }
  0x1e   : > { %p2298_p0 = pnand %p2296_p13, %p2607_p8  ;;  %p2305_p7 = por %p2304_p4, %p2303_p5 }
  0x20   : > { %p2299_p2 = pneg %p2298_p0 }
  0x22   : > { %p2306_p9 = pnand %p2305_p7, %p2299_p2 }
  0x24   : > { %2309 = shalt.err (!%p2306_p9)
}
  0x25   : > { %s2503_s15 = smov 128   ;;  %s2504_s16 = smov 8  }
  0x26   : > { %2196 = dma.hbm_to_vmem [thread:$0]  (!%p2591_p6), %s3122_s1, 1920, %s2580_s23, [#allocation6], %s2503_s15, %s2503_s15, %s2504_s16  }
  0x27   : > { %s2310_s6 = scalar_lea.hbm %s3124_s3, 512 }
  0x28   : > { %p2311_p4 = scmp.ne.s32.totalorder %s3124_s3, %s2310_s6  ;;  %p2317_p12 = scmp.lt.u32.totalorder %s2310_s6, %s3124_s3 }
  0x2a   : > { %p2313_p10 = pnand %p2311_p4, %p2607_p8 }
  0x2c   : > { %p2314_p11 = pneg %p2313_p10 }
  0x2e   : > { %p2319_p13 = pnand %p2317_p12, %p2314_p11 }
  0x30   : > { %2322 = shalt.err (!%p2319_p13)
}
  0x31   : > { %s2323_s23 = scalar_lea.vmem %s2595_s27, 512  ;;  %p2331_p7 = scmp.lt.s32.totalorder %s2595_s27, %s2595_s27 }
  0x32   : > { %p2324_p0 = scmp.ne.s32.totalorder %s2595_s27, %s2323_s23  ;;  %p2332_p9 = scmp.lt.s32.totalorder %s2323_s23, %s2323_s23 }
  0x34   : > { %p2326_p2 = pnand %p2324_p0, %p2607_p8  ;;  %p2333_p4 = por %p2332_p9, %p2331_p7 }
  0x36   : > { %p2327_p5 = pneg %p2326_p2 }
  0x38   : > { %p2334_p10 = pnand %p2333_p4, %p2327_p5 }
  0x3a   : > { %2337 = shalt.err (!%p2334_p10)
}
  0x3b   : > { %2202 = dma.hbm_to_vmem [thread:$0]  (!%p2591_p6), %s3124_s3, 512, %s2595_s27, [#allocation9], %s2503_s15, %s2503_s15, %s2504_s16  }
  0x3c   : > { %s2338_s22 = scalar_lea.hbm %s3123_s2, 1920 }
  0x3d   : > { %p2339_p11 = scmp.ne.s32.totalorder %s3123_s2, %s2338_s22  ;;  %p2345_p0 = scmp.lt.u32.totalorder %s2338_s22, %s3123_s2 }
  0x3f   : > { %p2341_p12 = pnand %p2339_p11, %p2607_p8 }
  0x41   : > { %p2342_p13 = pneg %p2341_p12 }
  0x43   : > { %p2347_p2 = pnand %p2345_p0, %p2342_p13 }
  0x45   : > { %2350 = shalt.err (!%p2347_p2)
}
  0x46   : > { %s2351_s27 = scalar_lea.vmem %s2597_s30, 1920  ;;  %p2359_p4 = scmp.lt.s32.totalorder %s2597_s30, %s2597_s30 }
  0x47   : > { %p2352_p5 = scmp.ne.s32.totalorder %s2597_s30, %s2351_s27  ;;  %p2360_p10 = scmp.lt.s32.totalorder %s2351_s27, %s2351_s27 }
  0x49   : > { %p2354_p7 = pnand %p2352_p5, %p2607_p8  ;;  %p2361_p11 = por %p2360_p10, %p2359_p4 }
  0x4b   : > { %p2355_p9 = pneg %p2354_p7 }
  0x4d   : > { %p2362_p12 = pnand %p2361_p11, %p2355_p9 }
  0x4f   : > { %2365 = shalt.err (!%p2362_p12)
}
  0x50   : > { %2199 = dma.hbm_to_vmem [thread:$0]  (!%p2591_p6), %s3123_s2, 1920, %s2597_s30, [#allocation6], %s2503_s15, %s2503_s15, %s2504_s16  }
  0x51   : > { %s2505_s10 = smov [#allocation10]   ;;  %s2366_s14 = scalar_lea.hbm %s3125_s4, 512 }
  0x52   : > { %s215_s23 = sshll.u32 %s2505_s10, 4  ;;  %p2367_p13 = scmp.ne.s32.totalorder %s3125_s4, %s2366_s14  ;;  %s216_s23 = int_to_ptr.vmem [resolvable:$true] %s215_s23 }
  0x53   : > { %p2373_p5 = scmp.lt.u32.totalorder %s2366_s14, %s3125_s4 }
  0x54   : > { %p2369_p0 = pnand %p2367_p13, %p2607_p8 }
  0x56   : > { %p2370_p2 = pneg %p2369_p0 }
  0x58   : > { %p2375_p7 = pnand %p2373_p5, %p2370_p2 }
  0x5a   : > { %2378 = shalt.err (!%p2375_p7)
}
  0x5b   : > { %s2379_s30 = scalar_lea.vmem %s216_s23, 512  ;;  %p2387_p11 = scmp.lt.s32.totalorder %s216_s23, %s216_s23 }
  0x5c   : > { %p2380_p9 = scmp.ne.s32.totalorder %s216_s23, %s2379_s30  ;;  %p2388_p12 = scmp.lt.s32.totalorder %s2379_s30, %s2379_s30 }
  0x5e   : > { %p2382_p4 = pnand %p2380_p9, %p2607_p8  ;;  %p2389_p1 = por %p2388_p12, %p2387_p11 }
  0x60   : > { %p2383_p10 = pneg %p2382_p4 }
  0x62   : > { %p2390_p3 = pnand %p2389_p1, %p2383_p10 }
  0x64   : > { %2393 = shalt.err (!%p2390_p3)
}
  0x65   : > { %2205 = dma.hbm_to_vmem [thread:$0]  (!%p2591_p6), %s3125_s4, 512, %s216_s23, [#allocation9], %s2503_s15, %s2503_s15, %s2504_s16  }
  0x66   : > { %s2015_s28 = sadd.s32 4294967294, %s2498_s21   ;;  %s2706_s11 = sadd.s32 1, %s2498_s21  }
  0x67   : > { %s27_s27 = ssub.s32 %s2498_s21, %s2706_s11  ;;  %s30_s8 = sadd.s32 1, %s2494_s20 }
  0x68   : > { %p28_p1 = scmp.eq.s32.totalorder %s27_s27, 0  ;;  %p37_p3 = scmp.ne.s32.totalorder %s2494_s20, %s2490_s19 }
  0x69   : > { %p38_p8 = scmp.eq.s32.totalorder %s2498_s21, 0  ;;  %p43_p13 = scmp.ne.s32.totalorder %s2490_s19, %s2486_s18 }
  0x6a   : > { %s2717_s9 = scalar_select %p28_p1, %s2494_s20, %s30_s8  }
  0x6b   : > { %p39_p0 = por %p38_p8, %p37_p3  ;;  %p3133_p2 = scmp.eq.s32.totalorder %s2575_s24, 0 }
  0x6c   : > { %p151_p6 = scmp.eq.s32.totalorder %s2575_s24, 1  ;;  %p157_p7 = scmp.eq.s32.totalorder %s2015_s28, 1 }
  0x6d   : > { %p2721_p5 = por %p3133_p2, %p43_p13  ;;  %p2218_p9 = scmp.lt.s32.totalorder %s2498_s21, 2 }
  0x6e   : > { %s229_s15 = sand.u32 1, %s2494_s20   ;;  %p2728_p4 = por %p151_p6, %p37_p3 }
  0x6f   : > { %p2732_p10 = por %p157_p7, %p43_p13  ;;  %s2168_s12 = smul.u32 12, %s229_s15 }
  0x70   : > { %s3135_s16 = scalar_select %p2728_p4, 1, 0 }
  0x71   : > { %s3136_s23 = scalar_select %p2732_p10, 1, 0 }
  0x72   : > { %s2169_s13 = smul.u32 192, %s2498_s21  ;;  %p2737_p11 = pnand %p2218_p9, %p39_p0 }
  0x73   : > { %s233_s29 = scalar_lea.vmem [#allocation2], %s2168_s12  ;;  %s230_s6 = scalar_lea.sflag [#allocation3], %s229_s15 }
  0x74   : > { %s2744_s26 = scalar_lea.hbm %s3121_s0, %s2169_s13  ;;  %s241_s30 = sshll.u32 %s233_s29, 4  ;;  %s2746_s30 = int_to_ptr.vmem [resolvable:$true] %s241_s30 }
  0x75   : > { %s2394_s7 = scalar_lea.hbm %s2744_s26, 192  ;;  %p2396_p1 = pneg %p2737_p11 }
  0x76   : > { %p2395_p12 = scmp.ne.s32.totalorder %s2744_s26, %s2394_s7  ;;  %s2399_s8 = scalar_lea.hbm %s3121_s0, 384 }
  0x77   : > { %p2400_p13 = scmp.lt.u32.totalorder %s2744_s26, %s3121_s0  ;;  %p2401_p0 = scmp.lt.u32.totalorder %s2399_s8, %s2394_s7 }
  0x78   : > { %p2397_p3 = pnand %p2396_p1, %p2395_p12  ;;  %p2403_p6 = scmp.lt.u32.totalorder %s2394_s7, %s2744_s26 }
  0x79   : > { %p2402_p2 = por %p2401_p0, %p2400_p13 }
  0x7a   : > { %p2398_p8 = pneg %p2397_p3 }
  0x7b   : > { %p2404_p7 = por %p2403_p6, %p2402_p2 }
  0x7d   : > { %p2405_p9 = pnand %p2404_p7, %p2398_p8 }
  0x7f   : > { %2408 = shalt.err (!%p2405_p9)
}
  0x80   : > { %s2409_s15 = scalar_lea.vmem %s2746_s30, 192  ;;  %s2506_s12 = smov [#allocation2]  }
  0x81   : > { %p2410_p12 = scmp.ne.s32.totalorder %s2746_s30, %s2409_s15  ;;  %s2414_s22 = sshll.u32 %s2506_s12, 4  ;;  %s2415_s22 = int_to_ptr.vmem [resolvable:$false] %s2414_s22 }
  0x82   : > { %s2416_s29 = scalar_lea.vmem %s2415_s22, 384  ;;  %p2417_p4 = scmp.lt.s32.totalorder %s2746_s30, %s2415_s22 }
  0x83   : > { %p2412_p3 = pnand %p2410_p12, %p2396_p1  ;;  %p2418_p13 = scmp.lt.s32.totalorder %s2416_s29, %s2409_s15 }
  0x85   : > { %p2413_p10 = pneg %p2412_p3  ;;  %p2419_p0 = por %p2418_p13, %p2417_p4 }
  0x87   : > { %p2420_p2 = pnand %p2419_p0, %p2413_p10 }
  0x89   : > { %2423 = shalt.err (!%p2420_p2)
}
  0x8a   : > { %2209 = dma.hbm_to_vmem [thread:$0]  (!%p2737_p11), %s2744_s26, 192, %s2746_s30, %s230_s6  }
  0x8b   : > { %p3138_p8 = scmp.ne.s32.totalorder %s3130_s25, 0 }
  0x8c   : > { %s2776_s7 = sand.u32 (!%p3138_p8), 1, %s2490_s19  }
  0x8d   : > { %250 = sbr.rel (%p3138_p8) target bundleno = 620 (0x26c), region = 40  ;;  %s253_s27 = scalar_lea.sflag (!%p3138_p8), [#allocation3], %s2776_s7 }
  0x8e   : > { %s2170_s28 = smul.u32 (!%p3138_p8), 12, %s2776_s7 }
  0x90   : > { %s2780_s8 = scalar_lea.vmem (!%p3138_p8), [#allocation2], %s2170_s28 }
  0x94   : > { %2469 = dma.done.wait (%p2721_p5), %s253_s27, 192  }
  0x95   : > { %2471 = vsyncadd (%p2721_p5), %s253_s27, 4294967104  ;;  %p3139_p4 = scmp.eq.s32.totalorder %s2575_s24, 0 }
  0x97   : > { %2473 = dma.done.wait (%p3139_p4), [#allocation6], 3840   ;;  %p3140_p10 = pmov %p3139_p4 }
  0x98   : > { %p3141_p11 = pmov %p3139_p4 }
  0x99   : > { %2475 = vsyncadd (%p3140_p10), [#allocation6], 4294963456 }
  0x9a   : > { %2477 = dma.done.wait (%p3141_p11), [#allocation9], 1024   ;;  %p3142_p1 = pmov %p3139_p4 }
  0x9b   : > { %v2507_v0 = vmov 0.0   ;;  %v300_v1 = vld [vmem:[%s2780_s8 + $0x8] sm:$0xf]  ;;  %v2798_v2 = vld [vmem:[%s2780_s8] sm:$0xff]  ;;  %s2508_s25 = smov 64   ;;  %s2509_s10 = smov 96  }
  0x9c   : > { %2479 = vsyncadd (%p3142_p1), [#allocation9], 4294966272  ;;  %533 = vmatprep.mubr.f32.mxu0 %v2507_v0  ;;  %1013 = vmatprep.mubr.f32.mxu1 %v2507_v0  ;;  %v894_v3 = vld [vmem:[%s2780_s8 + $0x8] sm:$0xf]  ;;  %v2806_v4 = vcombine.high %v2798_v2, %v2798_v2  ;;  %v2815_v5 = vld [vmem:[#allocation8 + $0x18] sm:$0xff]  ;;  %s2510_s14 = smov 80  }
  0x9d   : > { %413 = vrot.lane.b32.xlu0 %v300_v1, %s2508_s25  ;;  %409 = vrot.lane.b32.xlu1 %v2798_v2, %s2508_s25  ;;  %s2511_s26 = smov 120   ;;  %v1033_v6 = vld [vmem:[%s2780_s8 + $0x8] sm:$0xf]  ;;  %s2512_s30 = smov 116   ;;  %v2828_v9 = vld [vmem:[#allocation8 + $0x10] sm:$0xff]  ;;  %v2520_v15 = vmov 0  }
  0x9e   : > { %v2822_v7 = vld [vmem:[#allocation8 + $0x8] sm:$0xff]  ;;  %v2824_v8 = vld [vmem:[#allocation8] sm:$0xff]  ;;  %s2513_s6 = smov 112   ;;  %s2514_s13 = smov 48   ;;  %2278 = vset.pattern.permute.xlu0 %v2520_v15  ;;  %2279 = vset.pattern.permute.xlu1 %v2520_v15  ;;  %v317_v17 = vld [vmem:[#allocation7 + $0x8] sm:$0xff]  ;;  %vm415_vm0 = vcmask 523264  }
  0x9f   : > { %v1172_v10 = vld [vmem:[%s2780_s8 + $0x8] sm:$0xf]  ;;  %s2515_s17 = smov 108   ;;  %s2516_s15 = smov 32   ;;  %v318_v18 = vld [vmem:[#allocation7 + $0x10] sm:$0xff]  ;;  %v321_v23 = vld [vmem:[#allocation7 + $0x28] sm:$0xff] }
  0xa0   : > { %v1310_v11 = vld [vmem:[%s2780_s8 + $0x8] sm:$0xf]  ;;  %s2517_s12 = smov 104   ;;  %s2518_s22 = smov 124   ;;  %vm916_vm1 = vcmask 785408   ;;  %vm464_vm2 = vcmask 1043456  }
  0xa1   : > { %914 = vrot.lane.b32.xlu0 %v894_v3, %s2509_s10  ;;  %910 = vrot.lane.b32.xlu1 %v2798_v2, %s2509_s10  ;;  %v1449_v12 = vld [vmem:[%s2780_s8 + $0x8] sm:$0xf]  ;;  %s2519_s29 = smov 16   ;;  %s2521_s28 = smov 100   ;;  %vm418_vm3 = vcmask 31744   ;;  %v301_v32 = vld [vmem:[#allocation5] sm:$0xff] }
  0xa2   : > { %v660_v13 = vld [vmem:[%s2780_s8 + $0x8] sm:$0xf]  ;;  %v322_v33 = vld [vmem:[#allocation7 + $0x30] sm:$0xff]  ;;  %vm1055_vm4 = vcmask 654336   ;;  %v325_v39 = vld [vmem:[#allocation7 + $0x48] sm:$0xff]  ;;  %vm1332_vm5 = vcmask 392192  }
  0xa3   : > { %v1588_v14 = vld [vmem:[%s2780_s8 + $0x8] sm:$0xf]  ;;  %v302_v37 = vld [vmem:[#allocation5 + $0x8] sm:$0xff]  ;;  %v329_v51 = vld [vmem:[#allocation7 + $0x68] sm:$0xff]  ;;  %vm1471_vm6 = vcmask 261120   ;;  %vm682_vm7 = vcmask 916480  }
  0xa4   : > { %v316_v16 = vld [vmem:[#allocation7] sm:$0xff]  ;;  %v319_v19 = vld [vmem:[#allocation7 + $0x18] sm:$0xff]  ;;  %v326_v45 = vld [vmem:[#allocation7 + $0x50] sm:$0xff]  ;;  %vm1610_vm8 = vcmask 130048   ;;  %s2171_s27 = smul.u32 304, %s2776_s7  ;;  %p3143_p6 = scmp.ne.s32.totalorder %s3135_s16, 0 }
  0xa5   : > { %912 = vrot.lane.b32.xlu1 %v2806_v4, %s2509_s10  ;;  %411 = vrot.lane.b32.xlu0 %v2806_v4, %s2508_s25  ;;  %v320_v22 = vld [vmem:[#allocation7 + $0x20] sm:$0xff]  ;;  %v323_v34 = vld [vmem:[#allocation7 + $0x38] sm:$0xff]  ;;  %v305_v54 = vld [vmem:[#allocation5 + $0x20] sm:$0xff] }
  0xa6   : > { %v324_v38 = vld [vmem:[#allocation7 + $0x40] sm:$0xff]  ;;  %v303_v44 = vld [vmem:[#allocation5 + $0x10] sm:$0xff]  ;;  %v330_v55 = vld [vmem:[#allocation7 + $0x70] sm:$0xff] }
  0xa7   : > { %v327_v46 = vld [vmem:[#allocation7 + $0x58] sm:$0xff]  ;;  %v304_v49 = vld [vmem:[#allocation5 + $0x18] sm:$0xff]  ;;  %v306_v60 = vld [vmem:[#allocation5 + $0x28] sm:$0xff] }
  0xa8   : > { %v328_v50 = vld [vmem:[#allocation7 + $0x60] sm:$0xff]  ;;  %v1850_v58 = vld [vmem:[#allocation10] sm:$0xff]  ;;  %v1852_v1 = vld [vmem:[#allocation10 + $0x10] sm:$0xff] }
  0xa9   : > { %1051 = vrot.lane.b32.xlu1 %v2806_v4, %s2510_s14  ;;  %905 = vrot.lane.b32.xlu0 %v2815_v5, %s2511_s26  ;;  %v1851_v61 = vld [vmem:[#allocation10 + $0x8] sm:$0xff] }
  0xad   : > { %1049 = vrot.lane.b32.xlu1 %v2798_v2, %s2510_s14  ;;  %1053 = vrot.lane.b32.xlu0 %v1033_v6, %s2510_s14  ;;  %v307_v6 = vld [vmem:[#allocation5 + $0x30] sm:$0xff] }
  0xb1   : > { %1040 = vrot.lane.b32.xlu1 %v2822_v7, %s2512_s30  ;;  %1038 = vrot.lane.b32.xlu0 %v2824_v8, %s2512_s30 }
  0xb5   : > { %1044 = vrot.lane.b32.xlu1 %v2815_v5, %s2512_s30  ;;  %1042 = vrot.lane.b32.xlu0 %v2828_v9, %s2512_s30  ;;  %s1891_s30 = scalar_lea.sflag [#allocation4], %s2776_s7 }
  0xb9   : > { %1192 = vrot.lane.b32.xlu1 %v1172_v10, %s2508_s25  ;;  %1190 = vrot.lane.b32.xlu0 %v2806_v4, %s2508_s25  ;;  %v1853_v10 = vld [vmem:[#allocation10 + $0x18] sm:$0xff] }
  0xbd   : > { %1177 = vrot.lane.b32.xlu1 %v2824_v8, %s2513_s6  ;;  %1188 = vrot.lane.b32.xlu0 %v2798_v2, %s2508_s25  ;;  %s2172_s25 = smul.u32 4864, %s2575_s24 }
  0xc1   : > { %1181 = vrot.lane.b32.xlu1 %v2828_v9, %s2513_s6  ;;  %1179 = vrot.lane.b32.xlu0 %v2822_v7, %s2513_s6 }
  0xc5   : > { %1328 = vrot.lane.b32.xlu1 %v2806_v4, %s2514_s13  ;;  %1183 = vrot.lane.b32.xlu0 %v2815_v5, %s2513_s6 }
  0xc9   : > { %1326 = vrot.lane.b32.xlu1 %v2798_v2, %s2514_s13  ;;  %1330 = vrot.lane.b32.xlu0 %v1310_v11, %s2514_s13  ;;  %s2522_s13 = smov [#allocation11]  }
  0xcd   : > { %1317 = vrot.lane.b32.xlu1 %v2822_v7, %s2515_s17  ;;  %1315 = vrot.lane.b32.xlu0 %v2824_v8, %s2515_s17 }
  0xd1   : > { %1321 = vrot.lane.b32.xlu1 %v2815_v5, %s2515_s17  ;;  %1319 = vrot.lane.b32.xlu0 %v2828_v9, %s2515_s17  ;;  %s2428_s17 = sshll.u32 %s2522_s13, 4  ;;  %s2429_s17 = int_to_ptr.vmem [resolvable:$false] %s2428_s17 }
  0xd5   : > { %1469 = vrot.lane.b32.xlu1 %v1449_v12, %s2516_s15  ;;  %1467 = vrot.lane.b32.xlu0 %v2806_v4, %s2516_s15 }
  0xd9   : > { %1454 = vrot.lane.b32.xlu1 %v2824_v8, %s2517_s12  ;;  %1465 = vrot.lane.b32.xlu0 %v2798_v2, %s2516_s15  ;;  %s2430_s15 = scalar_lea.vmem %s2429_s17, 9728 }
  0xdd   : > { %680 = vrot.lane.b32.xlu1 %v660_v13, %s2513_s6  ;;  %678 = vrot.lane.b32.xlu0 %v2806_v4, %s2513_s6  ;;  %v308_v13 = vld [vmem:[#allocation5 + $0x38] sm:$0xff] }
  0xe1   : > { %665 = vrot.lane.b32.xlu1 %v2824_v8, %s2518_s22  ;;  %676 = vrot.lane.b32.xlu0 %v2798_v2, %s2513_s6 }
  0xe5   : > { %667 = vrot.lane.b32.xlu1 %v2822_v7, %s2518_s22  ;;  %1456 = vrot.lane.b32.xlu0 %v2822_v7, %s2517_s12 }
  0xe9   : > { %669 = vrot.lane.b32.xlu1 %v2828_v9, %s2518_s22  ;;  %1458 = vrot.lane.b32.xlu0 %v2828_v9, %s2517_s12 }
  0xed   : > { %1606 = vrot.lane.b32.xlu1 %v2806_v4, %s2519_s29  ;;  %1460 = vrot.lane.b32.xlu0 %v2815_v5, %s2517_s12 }
  0xf1   : > { %1604 = vrot.lane.b32.xlu1 %v2798_v2, %s2519_s29  ;;  %1608 = vrot.lane.b32.xlu0 %v1588_v14, %s2519_s29 }
  0xf5   : > { %1593 = vrot.lane.b32.xlu1 %v2824_v8, %s2521_s28  ;;  %671 = vrot.lane.b32.xlu0 %v2815_v5, %s2518_s22 }
  0xf9   : > { %1595 = vrot.lane.b32.xlu0 %v2822_v7, %s2521_s28  ;;  %1597 = vrot.lane.b32.xlu1 %v2828_v9, %s2521_s28 }
  0xfd   : > { %1599 = vrot.lane.b32.xlu0 %v2815_v5, %s2521_s28  ;;  %1731 = vrot.lane.b32.xlu1 %v2824_v8, %s2509_s10 }
 0x101   : > { %1733 = vrot.lane.b32.xlu1 %v2822_v7, %s2509_s10  ;;  %899 = vrot.lane.b32.xlu0 %v2824_v8, %s2511_s26 }
 0x105   : > { %1735 = vrot.lane.b32.xlu1 %v2828_v9, %s2509_s10  ;;  %901 = vrot.lane.b32.xlu0 %v2822_v7, %s2511_s26 }
 0x109   : > { %1737 = vrot.lane.b32.xlu1 %v2815_v5, %s2509_s10  ;;  %903 = vrot.lane.b32.xlu0 %v2828_v9, %s2511_s26  ;;  %s3070_s26 = scalar_lea.hbm %s3126_s5, %s2172_s25 }
 0x10d   : > { %333 = vperm.xlu0 %2278, %v316_v16   ;;  %338 = vperm.xlu1 %2279, %v317_v17   ;;  %v309_v16 = vld [vmem:[#allocation5 + $0x40] sm:$0xff] }
 0x10f   : > { %v414_v20 = vpop.permute.xlu0 %413  ;;  %v410_v21 = vpop.permute.xlu1 %409 }
 0x111   : > { %343 = vperm.xlu1 %2279, %v318_v18   ;;  %348 = vperm.xlu0 %2278, %v319_v19  }
 0x113   : > { %v915_v24 = vpop.permute.xlu0 %914  ;;  %v911_v25 = vpop.permute.xlu1 %910 }
 0x115   : > { %353 = vperm.xlu1 %2279, %v320_v22   ;;  %358 = vperm.xlu0 %2278, %v321_v23  }
 0x117   : > { %v913_v26 = vpop.permute.xlu1 %912  ;;  %v412_v27 = vpop.permute.xlu0 %411 }
 0x118   : > { %v417_v28 = vsel %vm415_vm0, %v412_v27, %v414_v20  ;;  %v2888_v29 = vsel %vm916_vm1, %v913_v26, %v915_v24  ;;  %v416_v30 = vsel %vm415_vm0, %v410_v21, %v412_v27  ;;  %v2891_v31 = vsel %vm916_vm1, %v911_v25, %v913_v26  ;;  %v310_v21 = vld [vmem:[#allocation5 + $0x48] sm:$0xff]  ;;  %v311_v24 = vld [vmem:[#allocation5 + $0x50] sm:$0xff]  ;;  %v312_v27 = vld [vmem:[#allocation5 + $0x58] sm:$0xff] }
 0x119   : > { %2028 = vmatprep.subr.msk.mxu0 %vm464_vm2, %v417_v28  ;;  %2102 = vmatprep.subr.msk.mxu1 %vm464_vm2, %v2888_v29 }
 0x11a   : > { %2029 = vmatpush1.msk.msra.mxu0 %vm464_vm2, %v416_v30  ;;  %2103 = vmatpush1.msk.msra.mxu1 %vm464_vm2, %v2891_v31 }
 0x11b   : > { %v1052_v35 = vpop.permute.xlu1 %1051  ;;  %2030 = vmatmul.mubr.msk.f32.vlgmr.msra.gmra.mrb[0].mxu0 %vm418_vm3, %v301_v32  ;;  %v906_v36 = vpop.permute.xlu0 %905  ;;  %363 = vperm.xlu1 %2279, %v322_v33   ;;  %v313_v33 = vld [vmem:[#allocation5 + $0x60] sm:$0xff] }
 0x11c   : > { %2062 = vmatmul.mubr.msk.f32.vlgmr.msra.gmra.mrb[0].mxu1 %vm418_vm3, %v906_v36  ;;  %539 = vmatprep.mubr.f32.mxu0 %v2507_v0 }
 0x11d   : > { %1134 = vmatprep.mubr.f32.mxu1 %v2507_v0  ;;  %368 = vperm.xlu0 %2278, %v323_v34  }
 0x11f   : > { %v1050_v40 = vpop.permute.xlu1 %1049  ;;  %2031 = vmatmul.mubr.msk.f32.gmra.mrb[2].mxu0 %vm418_vm3, %v302_v37  ;;  %v1054_v41 = vpop.permute.xlu0 %1053  ;;  %373 = vperm.xlu1 %2279, %v324_v38   ;;  %v314_v37 = vld [vmem:[#allocation5 + $0x68] sm:$0xff] }
 0x120   : > { %v1056_v42 = vsel %vm1055_vm4, %v1050_v40, %v1052_v35  ;;  %v1057_v43 = vsel %vm1055_vm4, %v1052_v35, %v1054_v41  ;;  %545 = vmatprep.mubr.f32.mxu0 %v2507_v0  ;;  %v315_v41 = vld [vmem:[#allocation5 + $0x70] sm:$0xff] }
 0x121   : > { %2063 = vmatprep.subr.msk.mxu1 %vm464_vm2, %v1057_v43  ;;  %378 = vperm.xlu0 %2278, %v325_v39  }
 0x122   : > { %2064 = vmatpush1.msk.msra.mxu1 %vm464_vm2, %v1056_v42 }
 0x123   : > { %v1041_v47 = vpop.permute.xlu1 %1040  ;;  %2032 = vmatmul.mubr.msk.f32.gmra.mrb[4].mxu0 %vm418_vm3, %v303_v44  ;;  %v1039_v48 = vpop.permute.xlu0 %1038  ;;  %383 = vperm.xlu1 %2279, %v326_v45  }
 0x124   : > { %2065 = vmatmul.mubr.msk.f32.vlgmr.msra.gmra.mrb[2].mxu1 %vm418_vm3, %v1039_v48  ;;  %551 = vmatprep.mubr.f32.mxu0 %v2507_v0 }
 0x125   : > { %1140 = vmatprep.mubr.f32.mxu1 %v2507_v0  ;;  %388 = vperm.xlu0 %2278, %v327_v46  }
 0x127   : > { %v1045_v52 = vpop.permute.xlu1 %1044  ;;  %2033 = vmatmul.mubr.msk.f32.gmra.mrb[6].mxu0 %vm418_vm3, %v304_v49  ;;  %v1043_v53 = vpop.permute.xlu0 %1042  ;;  %393 = vperm.xlu1 %2279, %v328_v50  }
 0x128   : > { %2066 = vmatmul.mubr.msk.f32.gmra.mrb[4].mxu1 %vm418_vm3, %v1041_v47  ;;  %557 = vmatprep.mubr.f32.mxu0 %v2507_v0 }
 0x129   : > { %1146 = vmatprep.mubr.f32.mxu1 %v2507_v0  ;;  %398 = vperm.xlu0 %2278, %v329_v51  }
 0x12b   : > { %v1193_v56 = vpop.permute.xlu1 %1192  ;;  %2034 = vmatmul.mubr.msk.f32.gmra.mrb[8].mxu0 %vm418_vm3, %v305_v54  ;;  %v1191_v57 = vpop.permute.xlu0 %1190  ;;  %403 = vperm.xlu1 %2279, %v330_v55  }
 0x12c   : > { %v1195_v59 = vsel %vm415_vm0, %v1191_v57, %v1193_v56  ;;  %2067 = vmatmul.mubr.msk.f32.gmra.mrb[6].mxu1 %vm418_vm3, %v1043_v53  ;;  %563 = vmatprep.mubr.f32.mxu0 %v2507_v0 }
 0x12d   : > { %2069 = vmatprep.subr.msk.mxu1 %vm464_vm2, %v1195_v59  ;;  %1152 = vmatprep.mubr.f32.mxu1 %v2507_v0 }
 0x12e   : > { %1856 = vperm.xlu0 %2278, %v1850_v58  }
 0x12f   : > { %v1178_v62 = vpop.permute.xlu1 %1177  ;;  %2035 = vmatmul.mubr.msk.f32.gmra.mrb[10].mxu0 %vm418_vm3, %v306_v60  ;;  %v1189_v63 = vpop.permute.xlu0 %1188  ;;  %1861 = vperm.xlu1 %2279, %v1851_v61  }
 0x130   : > { %v1194_v3 = vsel %vm415_vm0, %v1189_v63, %v1191_v57  ;;  %2068 = vmatmul.mubr.msk.f32.gmra.mrb[0].mxu1 %vm418_vm3, %v1045_v52  ;;  %569 = vmatprep.mubr.f32.mxu0 %v2507_v0 }
 0x131   : > { %2070 = vmatpush1.msk.msra.mxu1 %vm464_vm2, %v1194_v3  ;;  %1272 = vmatprep.mubr.f32.mxu1 %v2507_v0 }
 0x132   : > { %1866 = vperm.xlu0 %2278, %v1852_v1  }
 0x133   : > { %v1182_v11 = vpop.permute.xlu1 %1181  ;;  %2036 = vmatmul.mubr.msk.f32.gmra.mrb[12].mxu0 %vm418_vm3, %v307_v6  ;;  %v1180_v12 = vpop.permute.xlu0 %1179  ;;  %1871 = vperm.xlu1 %2279, %v1853_v10  }
 0x134   : > { %2071 = vmatmul.mubr.msk.f32.vlgmr.msra.gmra.mrb[2].mxu1 %vm418_vm3, %v1178_v62  ;;  %575 = vmatprep.mubr.f32.mxu0 %v2507_v0 }
 0x135   : > { %1278 = vmatprep.mubr.f32.mxu1 %v2507_v0 }
 0x137   : > { %v1329_v14 = vpop.permute.xlu1 %1328  ;;  %2037 = vmatmul.mubr.msk.f32.gmra.mrb[14].mxu0 %vm418_vm3, %v308_v13  ;;  %v1184_v15 = vpop.permute.xlu0 %1183 }
 0x138   : > { %2072 = vmatmul.mubr.msk.f32.gmra.mrb[4].mxu1 %vm418_vm3, %v1180_v12  ;;  %581 = vmatprep.mubr.f32.mxu0 %v2507_v0 }
 0x139   : > { %1284 = vmatprep.mubr.f32.mxu1 %v2507_v0 }
 0x13b   : > { %v1327_v17 = vpop.permute.xlu1 %1326  ;;  %2038 = vmatmul.mubr.msk.f32.gmra.mrb[16].mxu0 %vm418_vm3, %v309_v16  ;;  %v1331_v18 = vpop.permute.xlu0 %1330 }
 0x13c   : > { %v1333_v19 = vsel %vm1332_vm5, %v1327_v17, %v1329_v14  ;;  %v1334_v20 = vsel %vm1332_vm5, %v1329_v14, %v1331_v18  ;;  %2073 = vmatmul.mubr.msk.f32.gmra.mrb[6].mxu1 %vm418_vm3, %v1182_v11  ;;  %587 = vmatprep.mubr.f32.mxu0 %v2507_v0 }
 0x13d   : > { %2075 = vmatprep.subr.msk.mxu1 %vm464_vm2, %v1334_v20  ;;  %1290 = vmatprep.mubr.f32.mxu1 %v2507_v0 }
 0x13e   : > { %2076 = vmatpush1.msk.msra.mxu1 %vm464_vm2, %v1333_v19 }
 0x13f   : > { %v1318_v22 = vpop.permute.xlu1 %1317  ;;  %2039 = vmatmul.mubr.msk.f32.gmra.mrb[18].mxu0 %vm418_vm3, %v310_v21  ;;  %v1316_v23 = vpop.permute.xlu0 %1315 }
 0x140   : > { %2074 = vmatmul.mubr.msk.f32.gmra.mrb[0].mxu1 %vm418_vm3, %v1184_v15  ;;  %593 = vmatprep.mubr.f32.mxu0 %v2507_v0 }
 0x141   : > { %1411 = vmatprep.mubr.f32.mxu1 %v2507_v0 }
 0x143   : > { %v1322_v25 = vpop.permute.xlu1 %1321  ;;  %2040 = vmatmul.mubr.msk.f32.gmra.mrb[20].mxu0 %vm418_vm3, %v311_v24  ;;  %v1320_v26 = vpop.permute.xlu0 %1319 }
 0x144   : > { %2077 = vmatmul.mubr.msk.f32.vlgmr.msra.gmra.mrb[2].mxu1 %vm418_vm3, %v1316_v23  ;;  %599 = vmatprep.mubr.f32.mxu0 %v2507_v0 }
 0x145   : > { %1417 = vmatprep.mubr.f32.mxu1 %v2507_v0 }
 0x147   : > { %v1470_v28 = vpop.permute.xlu1 %1469  ;;  %2041 = vmatmul.mubr.msk.f32.gmra.mrb[22].mxu0 %vm418_vm3, %v312_v27  ;;  %v1468_v30 = vpop.permute.xlu0 %1467 }
 0x148   : > { %v1473_v32 = vsel %vm1471_vm6, %v1468_v30, %v1470_v28  ;;  %2078 = vmatmul.mubr.msk.f32.gmra.mrb[4].mxu1 %vm418_vm3, %v1318_v22  ;;  %605 = vmatprep.mubr.f32.mxu0 %v2507_v0 }
 0x149   : > { %2081 = vmatprep.subr.msk.mxu1 %vm464_vm2, %v1473_v32  ;;  %1423 = vmatprep.mubr.f32.mxu1 %v2507_v0 }
 0x14b   : > { %v1455_v34 = vpop.permute.xlu1 %1454  ;;  %2042 = vmatmul.mubr.msk.f32.gmra.mrb[24].mxu0 %vm418_vm3, %v313_v33  ;;  %v1466_v35 = vpop.permute.xlu0 %1465 }
 0x14c   : > { %v1472_v36 = vsel %vm1471_vm6, %v1466_v35, %v1468_v30  ;;  %2079 = vmatmul.mubr.msk.f32.gmra.mrb[6].mxu1 %vm418_vm3, %v1320_v26  ;;  %611 = vmatprep.mubr.f32.mxu0 %v2507_v0 }
 0x14d   : > { %2082 = vmatpush1.msk.msra.mxu1 %vm464_vm2, %v1472_v36  ;;  %1429 = vmatprep.mubr.f32.mxu1 %v2507_v0 }
 0x14f   : > { %v681_v38 = vpop.permute.xlu1 %680  ;;  %2043 = vmatmul.mubr.msk.f32.gmra.mrb[26].mxu0 %vm418_vm3, %v314_v37  ;;  %v679_v39 = vpop.permute.xlu0 %678 }
 0x150   : > { %v684_v40 = vsel %vm682_vm7, %v679_v39, %v681_v38  ;;  %2080 = vmatmul.mubr.msk.f32.gmra.mrb[0].mxu1 %vm418_vm3, %v1322_v25  ;;  %617 = vmatprep.mubr.f32.mxu0 %v2507_v0 }
 0x151   : > { %2045 = vmatprep.subr.msk.mxu0 %vm464_vm2, %v684_v40  ;;  %1550 = vmatprep.mubr.f32.mxu1 %v2507_v0 }
 0x153   : > { %v666_v42 = vpop.permute.xlu1 %665  ;;  %2044 = vmatmul.mubr.msk.f32.gmra.mrb[28].mxu0 %vm418_vm3, %v315_v41  ;;  %v677_v43 = vpop.permute.xlu0 %676 }
 0x154   : > { %v683_v44 = vsel %vm682_vm7, %v677_v43, %v679_v39  ;;  %2083 = vmatmul.mubr.msk.f32.vlgmr.msra.gmra.mrb[2].mxu1 %vm418_vm3, %v1455_v34  ;;  %761 = vmatprep.mubr.f32.mxu0 %v2507_v0 }
 0x155   : > { %2046 = vmatpush1.msk.msra.mxu0 %vm464_vm2, %v683_v44  ;;  %1556 = vmatprep.mubr.f32.mxu1 %v2507_v0 }
 0x156   : > { %2051 = vmatprep.subr.msk.mxu0 %vm464_vm2, %v2806_v4 }
 0x157   : > { %v668_v45 = vpop.permute.xlu1 %667  ;;  %2047 = vmatmul.mubr.msk.f32.vlgmr.msra.gmra.mrb[30].mxu0 %vm418_vm3, %v666_v42  ;;  %v1457_v46 = vpop.permute.xlu0 %1456 }
 0x158   : > { %2052 = vmatpush1.msk.msra.mxu0 %vm464_vm2, %v2798_v2  ;;  %2084 = vmatmul.mubr.msk.f32.gmra.mrb[4].mxu1 %vm418_vm3, %v1457_v46 }
 0x159   : > { %2057 = vmatprep.subr.msk.mxu0 %vm464_vm2, %v2888_v29  ;;  %767 = vmatprep.mubr.f32.mxu0 %v2507_v0  ;;  %v1726_v29 = vld [vmem:[%s2780_s8 + $0x4] sm:$0xff]  ;;  %s3029_s8 = scalar_lea.vmem [#allocation11], %s2171_s27 }
 0x15a   : > { %1562 = vmatprep.mubr.f32.mxu1 %v2507_v0  ;;  %v1740_v51 = vcombine.high %v1726_v29, %v1726_v29  ;;  %s1904_s10 = sshll.u32 %s3029_s8, 4  ;;  %s3072_s10 = int_to_ptr.vmem [resolvable:$true] %s1904_s10 }
 0x15b   : > { %v670_v47 = vpop.permute.xlu1 %669  ;;  %v1459_v48 = vpop.permute.xlu0 %1458  ;;  %2048 = vmatmul.mubr.msk.f32.gmra.mrb[32].mxu0 %vm418_vm3, %v668_v45  ;;  %s2424_s6 = scalar_lea.vmem %s3072_s10, 4864  ;;  %p2431_p12 = scmp.lt.s32.totalorder %s3072_s10, %s2429_s17 }
 0x15c   : > { %2085 = vmatmul.mubr.msk.f32.gmra.mrb[6].mxu1 %vm418_vm3, %v1459_v48  ;;  %773 = vmatprep.mubr.f32.mxu0 %v2507_v0  ;;  %p2425_p5 = scmp.ne.s32.totalorder %s3072_s10, %s2424_s6  ;;  %p2432_p3 = scmp.lt.s32.totalorder %s2430_s15, %s2424_s6 }
 0x15d   : > { %1568 = vmatprep.mubr.f32.mxu1 %v2507_v0 }
 0x15e   : > { %p2426_p7 = pnand %p2425_p5, %p3143_p6  ;;  %p2433_p13 = por %p2432_p3, %p2431_p12 }
 0x15f   : > { %v1607_v2 = vpop.permute.xlu1 %1606  ;;  %v1461_v4 = vpop.permute.xlu0 %1460  ;;  %2049 = vmatmul.mubr.msk.f32.gmra.mrb[34].mxu0 %vm418_vm3, %v670_v47 }
 0x160   : > { %2086 = vmatmul.mubr.msk.f32.gmra.mrb[0].mxu1 %vm418_vm3, %v1461_v4  ;;  %779 = vmatprep.mubr.f32.mxu0 %v2507_v0  ;;  %p2427_p9 = pneg %p2426_p7 }
 0x161   : > { %1689 = vmatprep.mubr.f32.mxu1 %v2507_v0 }
 0x162   : > { %p2434_p0 = pnand %p2433_p13, %p2427_p9 }
 0x163   : > { %v1605_v49 = vpop.permute.xlu1 %1604  ;;  %v1609_v50 = vpop.permute.xlu0 %1608 }
 0x164   : > { %v1611_v52 = vsel %vm1610_vm8, %v1605_v49, %v1607_v2  ;;  %v1612_v53 = vsel %vm1610_vm8, %v1607_v2, %v1609_v50 }
 0x165   : > { %2087 = vmatprep.subr.msk.mxu1 %vm464_vm2, %v1612_v53 }
 0x166   : > { %2088 = vmatpush1.msk.msra.mxu1 %vm464_vm2, %v1611_v52 }
 0x167   : > { %v1594_v54 = vpop.permute.xlu1 %1593  ;;  %v672_v55 = vpop.permute.xlu0 %671  ;;  %2093 = vmatprep.subr.msk.mxu1 %vm464_vm2, %v1740_v51 }
 0x168   : > { %2050 = vmatmul.mubr.msk.f32.gmra.mrb[36].mxu0 %vm418_vm3, %v672_v55  ;;  %2089 = vmatmul.mubr.msk.f32.vlgmr.msra.gmra.mrb[2].mxu1 %vm418_vm3, %v1594_v54 }
 0x169   : > { %864 = vmatprep.mubr.f32.mxu0 %v2507_v0  ;;  %1695 = vmatprep.mubr.f32.mxu1 %v2507_v0 }
 0x16a   : > { %2094 = vmatpush1.msk.msra.mxu1 %vm464_vm2, %v1726_v29 }
 0x16b   : > { %v1596_v56 = vpop.permute.xlu0 %1595  ;;  %v1598_v57 = vpop.permute.xlu1 %1597 }
 0x16c   : > { %2053 = vmatmul.mubr.msk.f32.vlgmr.msra.gmra.mrb[30].mxu0 %vm418_vm3, %v2824_v8  ;;  %2090 = vmatmul.mubr.msk.f32.gmra.mrb[4].mxu1 %vm418_vm3, %v1596_v56 }
 0x16d   : > { %2058 = vmatpush1.msk.msra.mxu0 %vm464_vm2, %v2891_v31  ;;  %870 = vmatprep.mubr.f32.mxu0 %v2507_v0 }
 0x16e   : > { %1701 = vmatprep.mubr.f32.mxu1 %v2507_v0 }
 0x16f   : > { %v1732_v58 = vpop.permute.xlu1 %1731  ;;  %v1600_v8 = vpop.permute.xlu0 %1599 }
 0x170   : > { %2054 = vmatmul.mubr.msk.f32.gmra.mrb[32].mxu0 %vm418_vm3, %v2822_v7  ;;  %2091 = vmatmul.mubr.msk.f32.gmra.mrb[6].mxu1 %vm418_vm3, %v1598_v57 }
 0x171   : > { %876 = vmatprep.mubr.f32.mxu0 %v2507_v0  ;;  %1707 = vmatprep.mubr.f32.mxu1 %v2507_v0 }
 0x173   : > { %v1734_v31 = vpop.permute.xlu1 %1733  ;;  %v900_v59 = vpop.permute.xlu0 %899 }
 0x174   : > { %2055 = vmatmul.mubr.msk.f32.gmra.mrb[34].mxu0 %vm418_vm3, %v2828_v9  ;;  %2092 = vmatmul.mubr.msk.f32.gmra.mrb[0].mxu1 %vm418_vm3, %v1600_v8 }
 0x175   : > { %882 = vmatprep.mubr.f32.mxu0 %v2507_v0  ;;  %1817 = vmatprep.mubr.f32.mxu1 %v2507_v0 }
 0x177   : > { %v1736_v7 = vpop.permute.xlu1 %1735  ;;  %v902_v9 = vpop.permute.xlu0 %901 }
 0x178   : > { %2056 = vmatmul.mubr.msk.f32.gmra.mrb[36].mxu0 %vm418_vm3, %v2815_v5  ;;  %2095 = vmatmul.mubr.msk.f32.vlgmr.msra.gmra.mrb[2].mxu1 %vm418_vm3, %v1732_v58 }
 0x179   : > { %995 = vmatprep.mubr.f32.mxu0 %v2507_v0  ;;  %1823 = vmatprep.mubr.f32.mxu1 %v2507_v0 }
 0x17b   : > { %v1738_v5 = vpop.permute.xlu1 %1737  ;;  %v904_v60 = vpop.permute.xlu0 %903 }
 0x17c   : > { %2059 = vmatmul.mubr.msk.f32.vlgmr.msra.gmra.mrb[30].mxu0 %vm418_vm3, %v900_v59  ;;  %2096 = vmatmul.mubr.msk.f32.gmra.mrb[4].mxu1 %vm418_vm3, %v1734_v31 }
 0x17d   : > { %1001 = vmatprep.mubr.f32.mxu0 %v2507_v0  ;;  %1829 = vmatprep.mubr.f32.mxu1 %v2507_v0 }
 0x180   : > { %2060 = vmatmul.mubr.msk.f32.gmra.mrb[32].mxu0 %vm418_vm3, %v902_v9  ;;  %2097 = vmatmul.mubr.msk.f32.gmra.mrb[6].mxu1 %vm418_vm3, %v1736_v7 }
 0x181   : > { %1007 = vmatprep.mubr.f32.mxu0 %v2507_v0  ;;  %1835 = vmatprep.mubr.f32.mxu1 %v2507_v0 }
 0x184   : > { %2061 = vmatmul.mubr.msk.f32.gmra.mrb[34].mxu0 %vm418_vm3, %v904_v60  ;;  %2098 = vmatmul.mubr.msk.f32.gmra.mrb[0].mxu1 %vm418_vm3, %v1738_v5 }
 0x18c   : > { %v334_v61 = vpop.permute.xlu0 %333  ;;  %v339_v63 = vpop.permute.xlu1 %338 }
 0x190   : > { %v344_v13 = vpop.permute.xlu1 %343  ;;  %v349_v18 = vpop.permute.xlu0 %348 }
 0x194   : > { %v354_v23 = vpop.permute.xlu1 %353  ;;  %v359_v28 = vpop.permute.xlu0 %358 }
 0x19a   : > { %v364_v35 = vpop.permute.xlu1 %363 }
 0x19c   : > { %v369_v40 = vpop.permute.xlu0 %368 }
 0x19e   : > { %v374_v45 = vpop.permute.xlu1 %373 }
 0x1a0   : > { %v379_v4 = vpop.permute.xlu0 %378 }
 0x1a2   : > { %v384_v52 = vpop.permute.xlu1 %383 }
 0x1a4   : > { %v389_v57 = vpop.permute.xlu0 %388 }
 0x1a6   : > { %v394_v7 = vpop.permute.xlu1 %393 }
 0x1ee   : > { %v535_v62 = vpop.f32.mrb[0].mxu0 }
 0x1ef   : > { %v537_v1 = vpop.f32.mrb[1].mxu0  ;;  %v536_v3 = vadd.f32 %v535_v62, %v334_v61  ;;  %v399_v62 = vpop.permute.xlu0 %398 }
 0x1f0   : > { %v538_v6 = vadd.f32 %v537_v1, %v334_v61 }
 0x1f1   : > { %624 = vst [vmem:[%s3029_s8] sm:$0xff] %v536_v3 }
 0x1f2   : > { %625 = vst [vmem:[%s3029_s8 + $0x8] sm:$0xff] %v538_v6  ;;  %v541_v0 = vpop.f32.mrb[2].mxu0 }
 0x1f3   : > { %v542_v10 = vadd.f32 %v541_v0, %v339_v63  ;;  %v543_v11 = vpop.f32.mrb[3].mxu0  ;;  %v404_v0 = vpop.permute.xlu1 %403 }
 0x1f4   : > { %v544_v12 = vadd.f32 %v543_v11, %v339_v63 }
 0x1f5   : > { %626 = vst [vmem:[%s3029_s8 + $0x10] sm:$0xff] %v542_v10 }
 0x1f6   : > { %627 = vst [vmem:[%s3029_s8 + $0x18] sm:$0xff] %v544_v12  ;;  %v547_v14 = vpop.f32.mrb[4].mxu0 }
 0x1f7   : > { %v548_v15 = vadd.f32 %v547_v14, %v344_v13  ;;  %v549_v16 = vpop.f32.mrb[5].mxu0 }
 0x1f8   : > { %v550_v17 = vadd.f32 %v549_v16, %v344_v13 }
 0x1f9   : > { %628 = vst [vmem:[%s3029_s8 + $0x20] sm:$0xff] %v548_v15 }
 0x1fa   : > { %629 = vst [vmem:[%s3029_s8 + $0x28] sm:$0xff] %v550_v17  ;;  %v553_v19 = vpop.f32.mrb[6].mxu0 }
 0x1fb   : > { %v555_v20 = vpop.f32.mrb[7].mxu0  ;;  %v554_v21 = vadd.f32 %v553_v19, %v349_v18 }
 0x1fc   : > { %v556_v22 = vadd.f32 %v555_v20, %v349_v18 }
 0x1fd   : > { %630 = vst [vmem:[%s3029_s8 + $0x30] sm:$0xff] %v554_v21 }
 0x1fe   : > { %631 = vst [vmem:[%s3029_s8 + $0x38] sm:$0xff] %v556_v22  ;;  %v559_v24 = vpop.f32.mrb[8].mxu0 }
 0x1ff   : > { %v560_v25 = vadd.f32 %v559_v24, %v354_v23  ;;  %v561_v26 = vpop.f32.mrb[9].mxu0  ;;  %v1857_v24 = vpop.permute.xlu0 %1856 }
 0x200   : > { %v562_v27 = vadd.f32 %v561_v26, %v354_v23  ;;  %v1862_v26 = vpop.permute.xlu1 %1861 }
 0x201   : > { %632 = vst [vmem:[%s3029_s8 + $0x40] sm:$0xff] %v560_v25 }
 0x202   : > { %633 = vst [vmem:[%s3029_s8 + $0x48] sm:$0xff] %v562_v27  ;;  %v565_v30 = vpop.f32.mrb[10].mxu0 }
 0x203   : > { %v567_v32 = vpop.f32.mrb[11].mxu0  ;;  %v566_v33 = vadd.f32 %v565_v30, %v359_v28 }
 0x204   : > { %v568_v34 = vadd.f32 %v567_v32, %v359_v28 }
 0x205   : > { %634 = vst [vmem:[%s3029_s8 + $0x50] sm:$0xff] %v566_v33 }
 0x206   : > { %v571_v36 = vpop.f32.mrb[12].mxu0  ;;  %635 = vst [vmem:[%s3029_s8 + $0x58] sm:$0xff] %v568_v34 }
 0x207   : > { %v573_v37 = vpop.f32.mrb[13].mxu0  ;;  %v572_v38 = vadd.f32 %v571_v36, %v364_v35 }
 0x208   : > { %v574_v39 = vadd.f32 %v573_v37, %v364_v35 }
 0x209   : > { %636 = vst [vmem:[%s3029_s8 + $0x60] sm:$0xff] %v572_v38 }
 0x20a   : > { %v577_v41 = vpop.f32.mrb[14].mxu0  ;;  %637 = vst [vmem:[%s3029_s8 + $0x68] sm:$0xff] %v574_v39 }
 0x20b   : > { %v579_v42 = vpop.f32.mrb[15].mxu0  ;;  %v578_v43 = vadd.f32 %v577_v41, %v369_v40 }
 0x20c   : > { %v580_v44 = vadd.f32 %v579_v42, %v369_v40 }
 0x20d   : > { %638 = vst [vmem:[%s3029_s8 + $0x70] sm:$0xff] %v578_v43 }
 0x20e   : > { %v583_v46 = vpop.f32.mrb[16].mxu0  ;;  %639 = vst [vmem:[%s3029_s8 + $0x78] sm:$0xff] %v580_v44 }
 0x20f   : > { %v585_v47 = vpop.f32.mrb[17].mxu0  ;;  %v584_v48 = vadd.f32 %v583_v46, %v374_v45  ;;  %v1872_v46 = vpop.permute.xlu1 %1871 }
 0x210   : > { %v586_v2 = vadd.f32 %v585_v47, %v374_v45  ;;  %v1867_v47 = vpop.permute.xlu0 %1866 }
 0x211   : > { %640 = vst [vmem:[%s3029_s8 + $0x80] sm:$0xff] %v584_v48 }
 0x212   : > { %v589_v29 = vpop.f32.mrb[18].mxu0  ;;  %641 = vst [vmem:[%s3029_s8 + $0x88] sm:$0xff] %v586_v2 }
 0x213   : > { %v591_v49 = vpop.f32.mrb[19].mxu0  ;;  %v590_v50 = vadd.f32 %v589_v29, %v379_v4 }
 0x214   : > { %v592_v51 = vadd.f32 %v591_v49, %v379_v4 }
 0x215   : > { %642 = vst [vmem:[%s3029_s8 + $0x90] sm:$0xff] %v590_v50 }
 0x216   : > { %v595_v53 = vpop.f32.mrb[20].mxu0  ;;  %643 = vst [vmem:[%s3029_s8 + $0x98] sm:$0xff] %v592_v51 }
 0x217   : > { %v597_v54 = vpop.f32.mrb[21].mxu0  ;;  %v596_v55 = vadd.f32 %v595_v53, %v384_v52 }
 0x218   : > { %v598_v56 = vadd.f32 %v597_v54, %v384_v52 }
 0x219   : > { %644 = vst [vmem:[%s3029_s8 + $0xa0] sm:$0xff] %v596_v55 }
 0x21a   : > { %v601_v58 = vpop.f32.mrb[22].mxu0  ;;  %645 = vst [vmem:[%s3029_s8 + $0xa8] sm:$0xff] %v598_v56 }
 0x21b   : > { %v603_v8 = vpop.f32.mrb[23].mxu0  ;;  %v602_v31 = vadd.f32 %v601_v58, %v389_v57 }
 0x21c   : > { %v604_v59 = vadd.f32 %v603_v8, %v389_v57 }
 0x21d   : > { %646 = vst [vmem:[%s3029_s8 + $0xb0] sm:$0xff] %v602_v31 }
 0x21e   : > { %v607_v9 = vpop.f32.mrb[24].mxu0  ;;  %647 = vst [vmem:[%s3029_s8 + $0xb8] sm:$0xff] %v604_v59 }
 0x21f   : > { %v609_v5 = vpop.f32.mrb[25].mxu0  ;;  %v608_v60 = vadd.f32 %v607_v9, %v394_v7 }
 0x220   : > { %v610_v61 = vadd.f32 %v609_v5, %v394_v7 }
 0x221   : > { %648 = vst [vmem:[%s3029_s8 + $0xc0] sm:$0xff] %v608_v60 }
 0x222   : > { %v613_v63 = vpop.f32.mrb[26].mxu0  ;;  %649 = vst [vmem:[%s3029_s8 + $0xc8] sm:$0xff] %v610_v61 }
 0x223   : > { %v615_v1 = vpop.f32.mrb[27].mxu0  ;;  %v614_v3 = vadd.f32 %v613_v63, %v399_v62 }
 0x224   : > { %v616_v6 = vadd.f32 %v615_v1, %v399_v62 }
 0x225   : > { %650 = vst [vmem:[%s3029_s8 + $0xd0] sm:$0xff] %v614_v3 }
 0x226   : > { %v619_v10 = vpop.f32.mrb[28].mxu0  ;;  %651 = vst [vmem:[%s3029_s8 + $0xd8] sm:$0xff] %v616_v6 }
 0x227   : > { %v621_v11 = vpop.f32.mrb[29].mxu0  ;;  %v620_v12 = vadd.f32 %v619_v10, %v404_v0 }
 0x228   : > { %v622_v13 = vadd.f32 %v621_v11, %v404_v0 }
 0x229   : > { %652 = vst [vmem:[%s3029_s8 + $0xe0] sm:$0xff] %v620_v12 }
 0x22a   : > { %653 = vst [vmem:[%s3029_s8 + $0xe8] sm:$0xff] %v622_v13 }
 0x24b   : > { %v1819_v14 = vpop.f32.mrb[2].mxu1  ;;  %v884_v15 = vpop.f32.mrb[36].mxu0 }
 0x24c   : > { %v1821_v16 = vpop.f32.mrb[3].mxu1  ;;  %v886_v17 = vpop.f32.mrb[37].mxu0 }
 0x24f   : > { %v997_v18 = vpop.f32.mrb[30].mxu0  ;;  %v1825_v19 = vpop.f32.mrb[4].mxu1 }
 0x250   : > { %v2104_v20 = vadd.f32 %v1819_v14, %v997_v18  ;;  %v999_v21 = vpop.f32.mrb[31].mxu0  ;;  %v1827_v22 = vpop.f32.mrb[5].mxu1 }
 0x251   : > { %v2105_v23 = vadd.f32 %v1821_v16, %v999_v21 }
 0x252   : > { %v1874_v25 = vadd.f32 %v2104_v20, %v1857_v24 }
 0x253   : > { %v1875_v27 = vadd.f32 %v2105_v23, %v1857_v24  ;;  %v1003_v28 = vpop.f32.mrb[32].mxu0  ;;  %v1831_v30 = vpop.f32.mrb[6].mxu1 }
 0x254   : > { %1882 = vst [vmem:[%s3029_s8 + $0xf0] sm:$0xff] %v1874_v25  ;;  %v2106_v32 = vadd.f32 %v1825_v19, %v1003_v28  ;;  %v1005_v33 = vpop.f32.mrb[33].mxu0  ;;  %v1833_v34 = vpop.f32.mrb[7].mxu1 }
 0x255   : > { %1883 = vst [vmem:[%s3029_s8 + $0xf8] sm:$0xff] %v1875_v27  ;;  %v2107_v35 = vadd.f32 %v1827_v22, %v1005_v33 }
 0x256   : > { %v1876_v36 = vadd.f32 %v2106_v32, %v1862_v26 }
 0x257   : > { %v1877_v37 = vadd.f32 %v2107_v35, %v1862_v26  ;;  %v1009_v38 = vpop.f32.mrb[34].mxu0  ;;  %v1837_v39 = vpop.f32.mrb[0].mxu1 }
 0x258   : > { %1884 = vst [vmem:[%s3029_s8 + $0x100] sm:$0xff] %v1876_v36  ;;  %v2108_v40 = vadd.f32 %v1831_v30, %v1009_v38  ;;  %v2110_v41 = vadd.f32 %v1837_v39, %v884_v15  ;;  %v1011_v42 = vpop.f32.mrb[35].mxu0  ;;  %v1839_v43 = vpop.f32.mrb[1].mxu1 }
 0x259   : > { %1885 = vst [vmem:[%s3029_s8 + $0x108] sm:$0xff] %v1877_v37  ;;  %v2109_v44 = vadd.f32 %v1833_v34, %v1011_v42  ;;  %v2111_v45 = vadd.f32 %v1839_v43, %v886_v17 }
 0x25a   : > { %v1880_v48 = vadd.f32 %v2110_v41, %v1872_v46  ;;  %v1878_v2 = vadd.f32 %v2108_v40, %v1867_v47 }
 0x25b   : > { %v1881_v4 = vadd.f32 %v2111_v45, %v1872_v46  ;;  %v1879_v29 = vadd.f32 %v2109_v44, %v1867_v47 }
 0x25c   : > { %1888 = vst [vmem:[%s3029_s8 + $0x120] sm:$0xff] %v1880_v48  ;;  %1886 = vst [vmem:[%s3029_s8 + $0x110] sm:$0xff] %v1878_v2 }
 0x25d   : > { %1889 = vst [vmem:[%s3029_s8 + $0x128] sm:$0xff] %v1881_v4  ;;  %1887 = vst [vmem:[%s3029_s8 + $0x118] sm:$0xff] %v1879_v29 }
 0x25e   : > { %2437 = shalt.err (!%p2434_p0)
}
 0x25f   : > { %s2438_s12 = scalar_lea.hbm %s3070_s26, 4864  ;;  %s2442_s27 = scalar_lea.hbm %s3126_s5, 9728 }
 0x260   : > { %p2439_p2 = scmp.ne.s32.totalorder %s3070_s26, %s2438_s12  ;;  %p2443_p10 = scmp.lt.u32.totalorder %s3070_s26, %s3126_s5 }
 0x261   : > { %p2444_p11 = scmp.lt.u32.totalorder %s2442_s27, %s2438_s12  ;;  %p2446_p5 = scmp.lt.u32.totalorder %s2438_s12, %s3070_s26 }
 0x262   : > { %p2440_p8 = pnand %p2439_p2, %p3143_p6 }
 0x263   : > { %p2445_p1 = por %p2444_p11, %p2443_p10 }
 0x264   : > { %p2441_p4 = pneg %p2440_p8 }
 0x265   : > { %p2447_p7 = por %p2446_p5, %p2445_p1 }
 0x267   : > { %p2448_p9 = pnand %p2447_p7, %p2441_p4 }
 0x269   : > { %2451 = shalt.err (!%p2448_p9)
}
 0x26a   : > { %s2523_s24 = smov 256  }
 0x26b   : > { %2191 = dma.vmem_to_hbm [thread:$0]  (%p3143_p6), %s3072_s10, 4864, %s3070_s26, %s1891_s30, %s2523_s24, %s2523_s24, %s2519_s29  }
 0x26c PF: > { %s1919_s14 = sand.u32 1, %s2486_s18   ;;  %p3144_p12 = scmp.ne.s32.totalorder %s3136_s23, 0 }
 0x26d   : > { %p3145_p3 = scmp.ge.s32.totalorder %s2498_s21, 2  ;;  %s1920_s6 = scalar_lea.sflag [#allocation4], %s1919_s14 }
 0x26f   : > { %p2211_p13 = pnand %p3145_p3, %p3144_p12 }
 0x271   : > { %2481 = dma.done.wait (!%p2211_p13), %s1920_s6, 4864  }
 0x272   : > { %2483 = vsyncadd (!%p2211_p13), %s1920_s6, 4294962432  ;;  %p20_p0 = scmp.ge.s32.totalorder %s2706_s11, 4   ;;  %s3146_s18 = smov %s2490_s19 }
 0x273   : > { %s3147_s19 = smov %s2494_s20  ;;  %s3148_s20 = smov %s2717_s9 }
 0x274   : > { %s3149_s21 = smov %s2706_s11  ;;  %22 = sbr.rel (!%p20_p0) target bundleno = 7 (0x7), region = 101 }
 0x27b   :  { %1925 = vsyncpa [#allocation3], 1 }
 0x27c   :  { %1927 = vsyncpa [#allocation3 + $0x1], 1 }
 0x27d   :  { %1928 = vsyncpa [#allocation6], 1 }
 0x27e   :  { %1929 = vsyncpa [#allocation9], 1 }
 0x27f   :  { %1930 = vsyncpa [#allocation4], 1 }
 0x280   :  { %1932 = vsyncpa [#allocation4 + $0x1], 1 }

// kernel: tcn_gcn_unit_7_forward.5
= control target key start
LH: loop header
LB: loop body
LE: loop exit
PB: predicated region body
PF: predicated region fallthrough
CT: control target
= control target key end

     0   :  { %s2342_s0 = inlined_call_operand.hbm [shape: f32[2,16,384], index: 0, kind: input, shape index: {}]   ;;  %s2343_s1 = inlined_call_operand.hbm [shape: f32[2,16,256], index: 1, kind: input, shape index: {}]   ;;  %s2344_s2 = inlined_call_operand.hbm [shape: f32[16,144], index: 2, kind: input, shape index: {}]   ;;  %s2345_s3 = inlined_call_operand.hbm [shape: f32[16,1], index: 3, kind: input, shape index: {}]   ;;  %s2346_s4 = inlined_call_operand.hbm [shape: f32[2,16,256], index: 4, kind: output, shape index: {}]  }
   0x1   :  { %2352 = sst [smem:[#allocation16_spill]] %s2342_s0 }
   0x2   :  { %2353 = sst [smem:[#allocation17_spill]] %s2344_s2 }
   0x3   :  { %9 = vsyncpa [#allocation3], 0 }
   0x4   :  { %11 = vsyncpa [#allocation3 + $0x1], 0 }
   0x5   :  { %12 = vsyncpa [#allocation6], 0 }
   0x6   :  { %14 = vsyncpa [#allocation6 + $0x1], 0 }
   0x7   :  { %15 = vsyncpa [#allocation9], 0 }
   0x8   :  { %16 = vsyncpa [#allocation4], 0 }
   0x9   :  { %18 = vsyncpa [#allocation4 + $0x1], 0  ;;  %s1959_s15 = smov 0   ;;  %s1961_s16 = smov 0  }
   0xa   :  { %s1963_s17 = smov 0   ;;  %s1965_s18 = smov 0  }
   0xb LB: > { %s1980_s19 = sadd.s32 4294967295, %s1911_s18   ;;  %s1406_s20 = sadd.s32 4294967294, %s1911_s18   ;;  %s1911_s18 = sphi %s1965_s18, %s2376_s18   ;;  %s1907_s17 = sphi %s1963_s17, %s2375_s17   ;;  %s1903_s16 = sphi %s1961_s16, %s2374_s16   ;;  %s1899_s15 = sphi %s1959_s15, %s2373_s15  }
   0xc   : > { %p44_p0 = scmp.ne.s32.totalorder %s1903_s16, %s1899_s15  ;;  %p2347_p1 = scmp.eq.s32.totalorder %s1980_s19, 0 }
   0xd   : > { %p142_p3 = scmp.eq.s32.totalorder %s1406_s20, 1  ;;  %p1407_p5 = scmp.ge.s32.totalorder %s1911_s18, 1 }
   0xe   : > { %p1989_p4 = por %p2347_p1, %p44_p0  ;;  %p149_p7 = scmp.lt.s32.totalorder %s1911_s18, 3 }
   0xf   : > { %p1994_p6 = por %p142_p3, %p44_p0  ;;  %s1913_s24 = smov [#allocation7]  }
  0x10   : > { %s2354_s21 = scalar_select %p1989_p4, 1, 0 }
  0x11   : > { %s2355_s22 = scalar_select %p1994_p6, 1, 0 }
  0x12   : > { %p1999_p8 = pnand %p1407_p5, %p149_p7  ;;  %s161_s25 = sshll.u32 %s1913_s24, 4  ;;  %s2003_s25 = int_to_ptr.vmem [resolvable:$true] %s161_s25 }
  0x13   : > { %s1914_s27 = smov [#allocation8]   ;;  %s2358_s2 = sld [smem:[#allocation17_spill]] }
  0x14   : > { %p1536_p9 = pneg %p1999_p8  ;;  %s174_s28 = sshll.u32 %s1914_s27, 4  ;;  %s2014_s28 = int_to_ptr.vmem [resolvable:$true] %s174_s28 }
  0x16   : > { %p2010_p11 = pnand %p1536_p9, %p2347_p1 }
  0x18   : > { %p1719_p13 = pneg %p2010_p11 }
  0x19   : > { %s1717_s5 = scalar_lea.hbm %s2358_s2, 512 }
  0x1a   : > { %p1718_p12 = scmp.ne.s32.totalorder %s2358_s2, %s1717_s5  ;;  %p1724_p5 = scmp.lt.u32.totalorder %s1717_s5, %s2358_s2 }
  0x1c   : > { %p1720_p0 = pnand %p1719_p13, %p1718_p12 }
  0x1e   : > { %p1721_p3 = pneg %p1720_p0 }
  0x20   : > { %p1726_p7 = pnand %p1724_p5, %p1721_p3 }
  0x22   : > { %1729 = shalt.err (!%p1726_p7)
}
  0x23   : > { %s1730_s10 = scalar_lea.vmem %s2003_s25, 512  ;;  %p1738_p2 = scmp.lt.s32.totalorder %s2003_s25, %s2003_s25 }
  0x24   : > { %p1731_p9 = scmp.ne.s32.totalorder %s2003_s25, %s1730_s10  ;;  %p1739_p12 = scmp.lt.s32.totalorder %s1730_s10, %s1730_s10 }
  0x26   : > { %p1733_p10 = pnand %p1731_p9, %p1719_p13  ;;  %p1740_p0 = por %p1739_p12, %p1738_p2 }
  0x28   : > { %p1734_p1 = pneg %p1733_p10 }
  0x2a   : > { %p1741_p6 = pnand %p1740_p0, %p1734_p1 }
  0x2c   : > { %1744 = shalt.err (!%p1741_p6)
}
  0x2d   : > { %s2348_s11 = smov 256   ;;  %s2351_s12 = smov 16  }
  0x2e   : > { %1539 = dma.hbm_to_vmem [thread:$0]  (!%p2010_p11), %s2358_s2, 512, %s2003_s25, [#allocation6], %s2348_s11, %s2348_s11, %s2351_s12  }
  0x2f   : > { %s1745_s27 = scalar_lea.hbm %s2345_s3, 256 }
  0x30   : > { %p1746_p1 = scmp.ne.s32.totalorder %s2345_s3, %s1745_s27  ;;  %p1752_p10 = scmp.lt.u32.totalorder %s1745_s27, %s2345_s3 }
  0x32   : > { %p1748_p2 = pnand %p1746_p1, %p1719_p13 }
  0x34   : > { %p1749_p6 = pneg %p1748_p2 }
  0x36   : > { %p1754_p3 = pnand %p1752_p10, %p1749_p6 }
  0x38   : > { %1757 = shalt.err (!%p1754_p3)
}
  0x39   : > { %s1758_s25 = scalar_lea.vmem %s2014_s28, 256  ;;  %p1766_p12 = scmp.lt.s32.totalorder %s2014_s28, %s2014_s28 }
  0x3a   : > { %p1759_p5 = scmp.ne.s32.totalorder %s2014_s28, %s1758_s25  ;;  %p1767_p0 = scmp.lt.s32.totalorder %s1758_s25, %s1758_s25 }
  0x3c   : > { %p1761_p7 = pnand %p1759_p5, %p1719_p13  ;;  %p1768_p1 = por %p1767_p0, %p1766_p12 }
  0x3e   : > { %p1762_p9 = pneg %p1761_p7 }
  0x40   : > { %p1769_p2 = pnand %p1768_p1, %p1762_p9 }
  0x42   : > { %1772 = shalt.err (!%p1769_p2)
}
  0x43   : > { %s1917_s7 = smov 128   ;;  %s1918_s8 = smov 8  }
  0x44   : > { %1542 = dma.hbm_to_vmem [thread:$0]  (!%p2010_p11), %s2345_s3, 256, %s2014_s28, [#allocation9], %s1917_s7, %s1917_s7, %s1918_s8  }
  0x45   : > { %s2072_s13 = sadd.s32 1, %s1911_s18   ;;  %s31_s20 = sadd.s32 1, %s1907_s17 }
  0x46   : > { %s28_s14 = ssub.s32 %s1911_s18, %s2072_s13  ;;  %p38_p6 = scmp.ne.s32.totalorder %s1907_s17, %s1903_s16 }
  0x47   : > { %p29_p13 = scmp.eq.s32.totalorder %s28_s14, 0  ;;  %p39_p10 = scmp.eq.s32.totalorder %s1911_s18, 0 }
  0x48   : > { %p2359_p5 = scmp.eq.s32.totalorder %s1980_s19, 1  ;;  %p1556_p9 = scmp.lt.s32.totalorder %s1911_s18, 2 }
  0x49   : > { %s2081_s24 = scalar_select %p29_p13, %s1907_s17, %s31_s20  }
  0x4a   : > { %p40_p3 = por %p39_p10, %p38_p6  ;;  %p2085_p7 = por %p2359_p5, %p38_p6 }
  0x4b   : > { %s2091_s26 = sand.u32 1, %s1907_s17   ;;  %s1520_s29 = smul.u32 768, %s1911_s18 }
  0x4c   : > { %s2360_s27 = scalar_select %p2085_p7, 1, 0 }
  0x4d   : > { %s1519_s28 = smul.u32 48, %s2091_s26  ;;  %p2095_p11 = pnand %p1556_p9, %p40_p3 }
  0x4e   : > { %s2362_s0 = sld [smem:[#allocation16_spill]]  ;;  %s209_s9 = sand.u32 1, %s1911_s18  }
  0x4f   : > { %s192_s7 = scalar_lea.vmem [#allocation2], %s1519_s28  ;;  %s189_s10 = scalar_lea.sflag [#allocation3], %s2091_s26 }
  0x50   : > { %s199_s8 = sshll.u32 %s192_s7, 4  ;;  %p1775_p0 = pneg %p2095_p11  ;;  %s2104_s8 = int_to_ptr.vmem [resolvable:$true] %s199_s8 }
  0x54   : > { %s2102_s25 = scalar_lea.hbm %s2362_s0, %s1520_s29  ;;  %s1778_s5 = scalar_lea.hbm %s2362_s0, 1536 }
  0x55   : > { %s1773_s14 = scalar_lea.hbm %s2102_s25, 768  ;;  %p1779_p13 = scmp.lt.u32.totalorder %s2102_s25, %s2362_s0 }
  0x56   : > { %p1774_p12 = scmp.ne.s32.totalorder %s2102_s25, %s1773_s14  ;;  %p1780_p6 = scmp.lt.u32.totalorder %s1778_s5, %s1773_s14 }
  0x57   : > { %p1782_p3 = scmp.lt.u32.totalorder %s1773_s14, %s2102_s25 }
  0x58   : > { %p1776_p1 = pnand %p1775_p0, %p1774_p12  ;;  %p1781_p10 = por %p1780_p6, %p1779_p13 }
  0x5a   : > { %p1777_p2 = pneg %p1776_p1  ;;  %p1783_p5 = por %p1782_p3, %p1781_p10 }
  0x5c   : > { %p1784_p9 = pnand %p1783_p5, %p1777_p2 }
  0x5e   : > { %1787 = shalt.err (!%p1784_p9)
}
  0x5f   : > { %s1788_s28 = scalar_lea.vmem %s2104_s8, 768  ;;  %s1919_s7 = smov [#allocation2]  }
  0x60   : > { %p1789_p12 = scmp.ne.s32.totalorder %s2104_s8, %s1788_s28  ;;  %s1793_s20 = sshll.u32 %s1919_s7, 4  ;;  %s1794_s20 = int_to_ptr.vmem [resolvable:$false] %s1793_s20 }
  0x61   : > { %s1795_s11 = scalar_lea.vmem %s1794_s20, 1536  ;;  %p1796_p4 = scmp.lt.s32.totalorder %s2104_s8, %s1794_s20 }
  0x62   : > { %p1791_p1 = pnand %p1789_p12, %p1775_p0  ;;  %p1797_p13 = scmp.lt.s32.totalorder %s1795_s11, %s1788_s28 }
  0x64   : > { %p1792_p7 = pneg %p1791_p1  ;;  %p1798_p6 = por %p1797_p13, %p1796_p4 }
  0x66   : > { %p1799_p10 = pnand %p1798_p6, %p1792_p7 }
  0x68   : > { %1802 = shalt.err (!%p1799_p10)
}
  0x69   : > { %s1920_s14 = smov 384   ;;  %s1921_s29 = smov 24  }
  0x6a   : > { %1546 = dma.hbm_to_vmem [thread:$0]  (!%p2095_p11), %s2102_s25, 768, %s2104_s8, %s189_s10, %s1920_s14, %s1920_s14, %s1921_s29  }
  0x6b   : > { %s1412_s5 = sshll.u32 %s2091_s26, 5  ;;  %s1443_s6 = sshll.u32 %s1911_s18, 9 }
  0x6c   : > { %s2140_s20 = scalar_lea.hbm %s2343_s1, %s1443_s6  ;;  %s213_s11 = scalar_lea.vmem [#allocation5], %s1412_s5 }
  0x6d   : > { %s220_s12 = sshll.u32 %s213_s11, 4  ;;  %s2146_s0 = scalar_lea.sflag [#allocation6], %s209_s9  ;;  %s2142_s12 = int_to_ptr.vmem [resolvable:$true] %s220_s12 }
  0x6e   : > { %s1803_s2 = scalar_lea.hbm %s2140_s20, 512  ;;  %s1808_s8 = scalar_lea.hbm %s2343_s1, 1024 }
  0x6f   : > { %p1804_p4 = scmp.ne.s32.totalorder %s2140_s20, %s1803_s2  ;;  %p1809_p3 = scmp.lt.u32.totalorder %s2140_s20, %s2343_s1 }
  0x70   : > { %p1810_p5 = scmp.lt.u32.totalorder %s1808_s8, %s1803_s2  ;;  %p1812_p12 = scmp.lt.u32.totalorder %s1803_s2, %s2140_s20 }
  0x71   : > { %p1806_p7 = pnand %p1804_p4, %p1775_p0 }
  0x72   : > { %p1811_p9 = por %p1810_p5, %p1809_p3 }
  0x73   : > { %p1807_p2 = pneg %p1806_p7 }
  0x74   : > { %p1813_p1 = por %p1812_p12, %p1811_p9 }
  0x76   : > { %p1814_p13 = pnand %p1813_p1, %p1807_p2 }
  0x78   : > { %1817 = shalt.err (!%p1814_p13)
}
  0x79   : > { %s1818_s9 = scalar_lea.vmem %s2142_s12, 512  ;;  %s1922_s29 = smov [#allocation5]  }
  0x7a   : > { %p1819_p6 = scmp.ne.s32.totalorder %s2142_s12, %s1818_s9  ;;  %s1823_s5 = sshll.u32 %s1922_s29, 4  ;;  %s1824_s5 = int_to_ptr.vmem [resolvable:$false] %s1823_s5 }
  0x7b   : > { %s1825_s6 = scalar_lea.vmem %s1824_s5, 1024  ;;  %p1826_p7 = scmp.lt.s32.totalorder %s2142_s12, %s1824_s5 }
  0x7c   : > { %p1821_p10 = pnand %p1819_p6, %p1775_p0  ;;  %p1827_p3 = scmp.lt.s32.totalorder %s1825_s6, %s1818_s9 }
  0x7e   : > { %p1822_p4 = pneg %p1821_p10  ;;  %p1828_p5 = por %p1827_p3, %p1826_p7 }
  0x80   : > { %p1829_p9 = pnand %p1828_p5, %p1822_p4 }
  0x82   : > { %1832 = shalt.err (!%p1829_p9)
}
  0x83   : > { %s2363_s2 = smov 16   ;;  %s2364_s7 = smov 256  }
  0x84   : > { %1549 = dma.hbm_to_vmem [thread:$0]  (!%p2095_p11), %s2140_s20, 512, %s2142_s12, %s2146_s0, %s2364_s7, %s2364_s7, %s2363_s2  }
  0x85   : > { %232 = sbr.rel (%p1999_p8) target bundleno = 576 (0x240), region = 36  ;;  %s2178_s28 = sand.u32 (!%p1999_p8), 1, %s1903_s16  }
  0x86   : > { %s1521_s11 = smul.u32 (!%p1999_p8), 48, %s2178_s28  ;;  %s235_s26 = scalar_lea.sflag (!%p1999_p8), [#allocation3], %s2178_s28 }
  0x87   : > { %p2365_p0 = scmp.ne.s32.totalorder (!%p1999_p8), %s2354_s21, 0 }
  0x88   : > { %s238_s25 = scalar_lea.vmem (!%p1999_p8), [#allocation2], %s1521_s11 }
  0x8c   : > { %1878 = dma.done.wait (%p2365_p0), %s235_s26, 768  }
  0x8d   : > { %1880 = vsyncadd (%p2365_p0), %s235_s26, 4294966528  ;;  %s243_s0 = sand.u32 1, %s1980_s19   ;;  %s1416_s23 = sshll.u32 %s2178_s28, 5 }
  0x8e   : > { %s244_s12 = scalar_lea.sflag [#allocation6], %s243_s0  ;;  %s2190_s30 = scalar_lea.vmem [#allocation5], %s1416_s23 }
  0x8f   : > { %1882 = dma.done.wait (%p2365_p0), %s244_s12, 512  }
  0x90   : > { %1884 = vsyncadd (%p2365_p0), %s244_s12, 4294966784  ;;  %p2366_p8 = scmp.eq.s32.totalorder %s1980_s19, 0 }
  0x92   : > { %1886 = dma.done.wait (%p2366_p8), [#allocation6], 512   ;;  %p2367_p11 = pmov %p2366_p8 }
  0x93   : > { %p2368_p2 = pmov %p2366_p8 }
  0x94   : > { %1888 = vsyncadd (%p2367_p11), [#allocation6], 4294966784 }
  0x95   : > { %1890 = dma.done.wait (%p2368_p2), [#allocation9], 256   ;;  %p2369_p12 = pmov %p2368_p2 }
  0x96   : > { %v400_v0 = vld [vmem:[%s238_s25 + $0x8] sm:$0xff]  ;;  %v2204_v1 = vld [vmem:[%s238_s25 + $0x10] sm:$0xff]  ;;  %v399_v2 = vld [vmem:[%s238_s25] sm:$0xff]  ;;  %v1923_v10 = vmov 0.0   ;;  %s1924_s21 = smov 64   ;;  %vm311_vm0 = vcmask 130048  }
  0x97   : > { %1892 = vsyncadd (%p2369_p12), [#allocation9], 4294967040  ;;  %v1610_v3 = vpack.i.bf16 %v2204_v1, %v400_v0  ;;  %v402_v4 = vld [vmem:[%s238_s25 + $0x18] sm:$0xff]  ;;  %v403_v5 = vld [vmem:[%s238_s25 + $0x20] sm:$0xff]  ;;  %382 = vmatprep.mubr.f32.mxu1 %v1923_v10  ;;  %834 = vmatprep.mubr.f32.mxu0 %v1923_v10  ;;  %s1925_s20 = smov 112   ;;  %s1926_s8 = smov 48  }
  0x98   : > { %v2207_v6 = vld [vmem:[%s238_s25 + $0x28] sm:$0xff]  ;;  %v1620_v7 = vpack.i.bf16 %v402_v4, %v399_v2  ;;  %v2209_v8 = vpack.c.bf16 %v403_v5, %v400_v0  ;;  %v1447_v9 = vpack.c.bf16 %v402_v4, %v399_v2  ;;  %v305_v12 = vld [vmem:[#allocation7] sm:$0xff]  ;;  %v306_v13 = vld [vmem:[#allocation7 + $0x10] sm:$0xff]  ;;  %s1927_s10 = smov 96   ;;  %s1928_s14 = smov 32   ;;  %v1931_v15 = vmov 0  }
  0x99   : > { %1611 = vrot.lane.b32.xlu0 %v1610_v3, %s1924_s21  ;;  %v1615_v11 = vpack.i.bf16 %v2207_v6, %v403_v5  ;;  %s1929_s9 = smov 80   ;;  %s1930_s29 = smov 16   ;;  %v1477_v14 = vpack.c.bf16 %v2207_v6, %v2204_v1  ;;  %1715 = vset.pattern.permute.xlu1 %v1931_v15  ;;  %v289_v16 = vld [vmem:[#allocation8] sm:$0xff]  ;;  %v290_v17 = vld [vmem:[#allocation8 + $0x8] sm:$0xff]  ;;  %vm757_vm1 = vcmask 523264   ;;  %vm427_vm2 = vcmask 916480  }
  0x9a   : > { %1621 = vrot.lane.b32.xlu1 %v1620_v7, %s1924_s21  ;;  %1446 = vmatprep.subr.bf16.mxu1 %v2209_v8  ;;  %vm867_vm3 = vcmask 392192   ;;  %vm537_vm4 = vcmask 785408   ;;  %vm977_vm5 = vcmask 261120   ;;  %vm647_vm6 = vcmask 654336   ;;  %v1180_v1 = vld [vmem:[#allocation7 + $0x8] sm:$0xff]  ;;  %v1181_v6 = vld [vmem:[#allocation7 + $0x18] sm:$0xff] }
  0x9b   : > { %1448 = vmatpush1.bf16.msra.mxu1 %v1447_v9  ;;  %1716 = vset.pattern.permute.xlu0 %v1931_v15  ;;  %s284_s5 = scalar_lea.vmem [#allocation10], %s1416_s23  ;;  %s1444_s2 = sshll.u32 %s1980_s19, 9 }
  0x9c   : > { %s1291_s6 = sshll.u32 %s284_s5, 4  ;;  %s2297_s26 = scalar_lea.hbm %s2346_s4, %s1444_s2  ;;  %s2292_s6 = int_to_ptr.vmem [resolvable:$true] %s1291_s6 }
  0x9d   : > { %1616 = vrot.lane.b32.xlu0 %v1615_v11, %s1924_s21  ;;  %s1278_s25 = scalar_lea.sflag [#allocation4], %s2178_s28  ;;  %s1833_s0 = scalar_lea.vmem %s2292_s6, 512 }
  0x9e   : > { %1626 = vrot.lane.b32.xlu1 %v1610_v3, %s1925_s20  ;;  %1420 = vmatmul.mubr.msk.f32.vlgmr.msra.gmra.mrb[0].mxu1 %vm311_vm0, %v305_v12  ;;  %p1834_p1 = scmp.ne.s32.totalorder %s2292_s6, %s1833_s0  ;;  %p2370_p13 = scmp.ne.s32.totalorder %s2360_s27, 0 }
  0x9f   : > { %388 = vmatprep.mubr.f32.mxu1 %v1923_v10  ;;  %s1932_s19 = smov [#allocation10]  }
  0xa0   : > { %p1835_p6 = pnand %p1834_p1, %p2370_p13  ;;  %s1837_s23 = sshll.u32 %s1932_s19, 4  ;;  %s1838_s23 = int_to_ptr.vmem [resolvable:$false] %s1837_s23 }
  0xa1   : > { %1631 = vrot.lane.b32.xlu0 %v1615_v11, %s1925_s20  ;;  %s1839_s12 = scalar_lea.vmem %s1838_s23, 1024  ;;  %p1840_p4 = scmp.lt.s32.totalorder %s2292_s6, %s1838_s23 }
  0xa2   : > { %1636 = vrot.lane.b32.xlu1 %v1620_v7, %s1925_s20  ;;  %1421 = vmatmul.mubr.msk.f32.gmra.mrb[2].mxu1 %vm311_vm0, %v306_v13  ;;  %p1836_p10 = pneg %p1835_p6  ;;  %p1841_p7 = scmp.lt.s32.totalorder %s1839_s12, %s1833_s0 }
  0xa3   : > { %504 = vmatprep.mubr.f32.mxu1 %v1923_v10 }
  0xa4   : > { %p1842_p3 = por %p1841_p7, %p1840_p4 }
  0xa5   : > { %741 = vrot.lane.b32.xlu0 %v305_v12, %s1924_s21 }
  0xa6   : > { %1641 = vrot.lane.b32.xlu1 %v1610_v3, %s1926_s8  ;;  %p1843_p5 = pnand %p1842_p3, %p1836_p10 }
  0xa9   : > { %1646 = vrot.lane.b32.xlu0 %v1615_v11, %s1926_s8 }
  0xaa   : > { %1651 = vrot.lane.b32.xlu1 %v1620_v7, %s1926_s8 }
  0xad   : > { %405 = vrot.lane.b32.xlu0 %v305_v12, %s1925_s20 }
  0xae   : > { %1656 = vrot.lane.b32.xlu1 %v1610_v3, %s1927_s10 }
  0xb1   : > { %1661 = vrot.lane.b32.xlu0 %v1615_v11, %s1927_s10 }
  0xb2   : > { %1666 = vrot.lane.b32.xlu1 %v1620_v7, %s1927_s10 }
  0xb5   : > { %851 = vrot.lane.b32.xlu0 %v305_v12, %s1926_s8 }
  0xb6   : > { %1671 = vrot.lane.b32.xlu1 %v1610_v3, %s1928_s14 }
  0xb9   : > { %1676 = vrot.lane.b32.xlu0 %v1615_v11, %s1928_s14 }
  0xba   : > { %407 = vrot.lane.b32.xlu1 %v306_v13, %s1925_s20 }
  0xbd   : > { %1681 = vrot.lane.b32.xlu0 %v1620_v7, %s1928_s14 }
  0xbe   : > { %853 = vrot.lane.b32.xlu1 %v306_v13, %s1926_s8 }
  0xc1   : > { %521 = vrot.lane.b32.xlu0 %v305_v12, %s1927_s10 }
  0xc2   : > { %1686 = vrot.lane.b32.xlu1 %v1610_v3, %s1929_s9 }
  0xc5   : > { %1691 = vrot.lane.b32.xlu0 %v1615_v11, %s1929_s9 }
  0xc6   : > { %1696 = vrot.lane.b32.xlu1 %v1620_v7, %s1929_s9 }
  0xc9   : > { %961 = vrot.lane.b32.xlu0 %v305_v12, %s1928_s14 }
  0xca   : > { %1701 = vrot.lane.b32.xlu1 %v1610_v3, %s1930_s29 }
  0xcd   : > { %1706 = vrot.lane.b32.xlu0 %v1615_v11, %s1930_s29 }
  0xce   : > { %523 = vrot.lane.b32.xlu1 %v306_v13, %s1927_s10 }
  0xd1   : > { %1711 = vrot.lane.b32.xlu0 %v1620_v7, %s1930_s29 }
  0xd2   : > { %963 = vrot.lane.b32.xlu1 %v306_v13, %s1928_s14 }
  0xd5   : > { %631 = vrot.lane.b32.xlu0 %v305_v12, %s1929_s9 }
  0xd6   : > { %1071 = vrot.lane.b32.xlu1 %v305_v12, %s1930_s29 }
  0xd9   : > { %633 = vrot.lane.b32.xlu0 %v306_v13, %s1929_s9 }
  0xda   : > { %1073 = vrot.lane.b32.xlu1 %v306_v13, %s1930_s29 }
  0xdd   : > { %743 = vrot.lane.b32.xlu0 %v306_v13, %s1924_s21 }
  0xde   : > { %293 = vperm.xlu1 %1715, %v289_v16  }
  0xe1   : > { %298 = vperm.xlu0 %1716, %v290_v17  }
 0x10b   : > { %v1612_v18 = vpop.permute.xlu0 %1611 }
 0x10c   : > { %v1622_v19 = vpop.permute.xlu1 %1621  ;;  %v1614_v20 = vunpack.i.h.bf16 %v1612_v18  ;;  %v1613_v21 = vunpack.i.l.bf16 %v1612_v18 }
 0x10d   : > { %v1624_v22 = vunpack.i.h.bf16 %v1622_v19  ;;  %v1623_v23 = vunpack.i.l.bf16 %v1622_v19 }
 0x10e   : > { %v759_v30 = vsel %vm757_vm1, %v1613_v21, %v1614_v20 }
 0x10f   : > { %v1617_v24 = vpop.permute.xlu0 %1616  ;;  %v758_v32 = vsel %vm757_vm1, %v1623_v23, %v1613_v21 }
 0x110   : > { %v1619_v25 = vunpack.i.h.bf16 %v1617_v24  ;;  %v1618_v26 = vunpack.i.l.bf16 %v1617_v24  ;;  %v1627_v27 = vpop.permute.xlu1 %1626 }
 0x111   : > { %v1629_v28 = vunpack.i.h.bf16 %v1627_v27  ;;  %v1628_v29 = vunpack.i.l.bf16 %v1627_v27 }
 0x112   : > { %v761_v31 = vsel %vm757_vm1, %v1618_v26, %v1619_v25  ;;  %v760_v33 = vsel %vm757_vm1, %v1624_v22, %v1618_v26 }
 0x113   : > { %v1632_v34 = vpop.permute.xlu0 %1631  ;;  %v2231_v35 = vpack.c.bf16 %v761_v31, %v759_v30  ;;  %v2233_v36 = vpack.c.bf16 %v760_v33, %v758_v32  ;;  %v429_v40 = vsel %vm427_vm2, %v1628_v29, %v1629_v28 }
 0x114   : > { %v1634_v37 = vunpack.i.h.bf16 %v1632_v34  ;;  %v1633_v38 = vunpack.i.l.bf16 %v1632_v34  ;;  %v1637_v39 = vpop.permute.xlu1 %1636 }
 0x115   : > { %v1639_v41 = vunpack.i.h.bf16 %v1637_v39  ;;  %v1638_v42 = vunpack.i.l.bf16 %v1637_v39  ;;  %1462 = vmatprep.subr.bf16.mxu0 %v2231_v35 }
 0x116   : > { %1464 = vmatpush1.bf16.msra.mxu0 %v2233_v36  ;;  %v431_v43 = vsel %vm427_vm2, %v1633_v38, %v1634_v37 }
 0x117   : > { %v430_v44 = vsel %vm427_vm2, %v1639_v41, %v1633_v38  ;;  %v428_v45 = vsel %vm427_vm2, %v1638_v42, %v1628_v29  ;;  %v742_v46 = vpop.permute.xlu0 %741  ;;  %v1449_v47 = vpack.c.bf16 %v431_v43, %v429_v40 }
 0x118   : > { %v1451_v48 = vpack.c.bf16 %v430_v44, %v428_v45  ;;  %v1642_v49 = vpop.permute.xlu1 %1641 }
 0x119   : > { %v1644_v50 = vunpack.i.h.bf16 %v1642_v49  ;;  %v1643_v51 = vunpack.i.l.bf16 %v1642_v49  ;;  %1450 = vmatprep.subr.bf16.mxu1 %v1449_v47  ;;  %1428 = vmatmul.mubr.msk.f32.vlgmr.msra.gmra.mrb[0].mxu0 %vm311_vm0, %v742_v46 }
 0x11a   : > { %1452 = vmatpush1.bf16.msra.mxu1 %v1451_v48  ;;  %944 = vmatprep.mubr.f32.mxu0 %v1923_v10 }
 0x11b   : > { %v1647_v52 = vpop.permute.xlu0 %1646  ;;  %v869_v56 = vsel %vm867_vm3, %v1643_v51, %v1644_v50 }
 0x11c   : > { %v1652_v53 = vpop.permute.xlu1 %1651  ;;  %v1649_v54 = vunpack.i.h.bf16 %v1647_v52  ;;  %v1648_v55 = vunpack.i.l.bf16 %v1647_v52 }
 0x11d   : > { %v1654_v57 = vunpack.i.h.bf16 %v1652_v53  ;;  %v1653_v58 = vunpack.i.l.bf16 %v1652_v53 }
 0x11e   : > { %v871_v59 = vsel %vm867_vm3, %v1648_v55, %v1649_v54 }
 0x11f   : > { %v868_v60 = vsel %vm867_vm3, %v1653_v58, %v1643_v51  ;;  %v870_v61 = vsel %vm867_vm3, %v1654_v57, %v1648_v55  ;;  %v406_v62 = vpop.permute.xlu0 %405  ;;  %v1465_v63 = vpack.c.bf16 %v871_v59, %v869_v56 }
 0x120   : > { %v1467_v0 = vpack.c.bf16 %v870_v61, %v868_v60  ;;  %v1657_v2 = vpop.permute.xlu1 %1656  ;;  %1422 = vmatmul.mubr.msk.f32.vlgmr.msra.gmra.mrb[0].mxu1 %vm311_vm0, %v406_v62 }
 0x121   : > { %v1659_v3 = vunpack.i.h.bf16 %v1657_v2  ;;  %v1658_v4 = vunpack.i.l.bf16 %v1657_v2  ;;  %1466 = vmatprep.subr.bf16.mxu0 %v1465_v63  ;;  %510 = vmatprep.mubr.f32.mxu1 %v1923_v10 }
 0x122   : > { %1468 = vmatpush1.bf16.msra.mxu0 %v1467_v0 }
 0x123   : > { %v1662_v5 = vpop.permute.xlu0 %1661  ;;  %v539_v12 = vsel %vm537_vm4, %v1658_v4, %v1659_v3 }
 0x124   : > { %v1667_v7 = vpop.permute.xlu1 %1666  ;;  %v1664_v9 = vunpack.i.h.bf16 %v1662_v5  ;;  %v1663_v11 = vunpack.i.l.bf16 %v1662_v5 }
 0x125   : > { %v1669_v13 = vunpack.i.h.bf16 %v1667_v7  ;;  %v1668_v15 = vunpack.i.l.bf16 %v1667_v7 }
 0x126   : > { %v541_v16 = vsel %vm537_vm4, %v1663_v11, %v1664_v9 }
 0x127   : > { %v538_v17 = vsel %vm537_vm4, %v1668_v15, %v1658_v4  ;;  %v540_v18 = vsel %vm537_vm4, %v1669_v13, %v1663_v11  ;;  %v852_v19 = vpop.permute.xlu0 %851  ;;  %v1453_v20 = vpack.c.bf16 %v541_v16, %v539_v12 }
 0x128   : > { %v1455_v21 = vpack.c.bf16 %v540_v18, %v538_v17  ;;  %v1672_v22 = vpop.permute.xlu1 %1671  ;;  %1430 = vmatmul.mubr.msk.f32.vlgmr.msra.gmra.mrb[0].mxu0 %vm311_vm0, %v852_v19 }
 0x129   : > { %v1674_v23 = vunpack.i.h.bf16 %v1672_v22  ;;  %v1673_v24 = vunpack.i.l.bf16 %v1672_v22  ;;  %1454 = vmatprep.subr.bf16.mxu1 %v1453_v20  ;;  %950 = vmatprep.mubr.f32.mxu0 %v1923_v10  ;;  %v285_v20 = vld [vmem:[%s2190_s30] sm:$0xff] }
 0x12a   : > { %1456 = vmatpush1.bf16.msra.mxu1 %v1455_v21  ;;  %v286_v21 = vld [vmem:[%s2190_s30 + $0x8] sm:$0xff] }
 0x12b   : > { %v1677_v25 = vpop.permute.xlu0 %1676  ;;  %v979_v29 = vsel %vm977_vm5, %v1673_v24, %v1674_v23 }
 0x12c   : > { %v408_v26 = vpop.permute.xlu1 %407  ;;  %v1679_v27 = vunpack.i.h.bf16 %v1677_v25  ;;  %v1678_v28 = vunpack.i.l.bf16 %v1677_v25  ;;  %v287_v25 = vld [vmem:[%s2190_s30 + $0x10] sm:$0xff] }
 0x12d   : > { %1423 = vmatmul.mubr.msk.f32.gmra.mrb[2].mxu1 %vm311_vm0, %v408_v26  ;;  %v288_v26 = vld [vmem:[%s2190_s30 + $0x18] sm:$0xff] }
 0x12e   : > { %v981_v30 = vsel %vm977_vm5, %v1678_v28, %v1679_v27  ;;  %614 = vmatprep.mubr.f32.mxu1 %v1923_v10 }
 0x12f   : > { %v1682_v31 = vpop.permute.xlu0 %1681  ;;  %v1469_v32 = vpack.c.bf16 %v981_v30, %v979_v29 }
 0x130   : > { %v854_v33 = vpop.permute.xlu1 %853  ;;  %v1684_v34 = vunpack.i.h.bf16 %v1682_v31  ;;  %v1683_v37 = vunpack.i.l.bf16 %v1682_v31 }
 0x131   : > { %1470 = vmatprep.subr.bf16.mxu0 %v1469_v32  ;;  %1431 = vmatmul.mubr.msk.f32.gmra.mrb[2].mxu0 %vm311_vm0, %v854_v33 }
 0x132   : > { %v978_v38 = vsel %vm977_vm5, %v1683_v37, %v1673_v24  ;;  %v980_v39 = vsel %vm977_vm5, %v1684_v34, %v1678_v28  ;;  %1054 = vmatprep.mubr.f32.mxu0 %v1923_v10 }
 0x133   : > { %v1471_v40 = vpack.c.bf16 %v980_v39, %v978_v38  ;;  %v522_v41 = vpop.permute.xlu0 %521 }
 0x134   : > { %v1687_v42 = vpop.permute.xlu1 %1686  ;;  %1424 = vmatmul.mubr.msk.f32.vlgmr.msra.gmra.mrb[0].mxu1 %vm311_vm0, %v522_v41 }
 0x135   : > { %v1689_v43 = vunpack.i.h.bf16 %v1687_v42  ;;  %v1688_v44 = vunpack.i.l.bf16 %v1687_v42  ;;  %1472 = vmatpush1.bf16.msra.mxu0 %v1471_v40  ;;  %620 = vmatprep.mubr.f32.mxu1 %v1923_v10 }
 0x137   : > { %v1692_v45 = vpop.permute.xlu0 %1691  ;;  %v649_v49 = vsel %vm647_vm6, %v1688_v44, %v1689_v43 }
 0x138   : > { %v1697_v46 = vpop.permute.xlu1 %1696  ;;  %v1694_v47 = vunpack.i.h.bf16 %v1692_v45  ;;  %v1693_v48 = vunpack.i.l.bf16 %v1692_v45 }
 0x139   : > { %v1699_v50 = vunpack.i.h.bf16 %v1697_v46  ;;  %v1698_v51 = vunpack.i.l.bf16 %v1697_v46 }
 0x13a   : > { %v651_v52 = vsel %vm647_vm6, %v1693_v48, %v1694_v47 }
 0x13b   : > { %v648_v53 = vsel %vm647_vm6, %v1698_v51, %v1688_v44  ;;  %v650_v54 = vsel %vm647_vm6, %v1699_v50, %v1693_v48  ;;  %v962_v55 = vpop.permute.xlu0 %961  ;;  %v1457_v56 = vpack.c.bf16 %v651_v52, %v649_v49 }
 0x13c   : > { %v1459_v57 = vpack.c.bf16 %v650_v54, %v648_v53  ;;  %1432 = vmatmul.mubr.msk.f32.vlgmr.msra.gmra.mrb[0].mxu0 %vm311_vm0, %v962_v55  ;;  %v1702_v58 = vpop.permute.xlu1 %1701 }
 0x13d   : > { %1458 = vmatprep.subr.bf16.mxu1 %v1457_v56  ;;  %v1704_v59 = vunpack.i.h.bf16 %v1702_v58  ;;  %v1703_v60 = vunpack.i.l.bf16 %v1702_v58  ;;  %1060 = vmatprep.mubr.f32.mxu0 %v1923_v10 }
 0x13e   : > { %1460 = vmatpush1.bf16.msra.mxu1 %v1459_v57 }
 0x13f   : > { %v1707_v61 = vpop.permute.xlu0 %1706  ;;  %1481 = vmatprep.subr.bf16.mxu1 %v2231_v35  ;;  %v1088_v2 = vsel %vm311_vm0, %v1703_v60, %v1704_v59 }
 0x140   : > { %v1709_v62 = vunpack.i.h.bf16 %v1707_v61  ;;  %v1708_v63 = vunpack.i.l.bf16 %v1707_v61  ;;  %v524_v0 = vpop.permute.xlu1 %523 }
 0x141   : > { %1425 = vmatmul.mubr.msk.f32.gmra.mrb[2].mxu1 %vm311_vm0, %v524_v0 }
 0x142   : > { %v1090_v3 = vsel %vm311_vm0, %v1708_v63, %v1709_v62  ;;  %724 = vmatprep.mubr.f32.mxu1 %v1923_v10 }
 0x143   : > { %v1712_v4 = vpop.permute.xlu0 %1711  ;;  %v1473_v5 = vpack.c.bf16 %v1090_v3, %v1088_v2 }
 0x144   : > { %v1714_v7 = vunpack.i.h.bf16 %v1712_v4  ;;  %v1713_v9 = vunpack.i.l.bf16 %v1712_v4  ;;  %v964_v11 = vpop.permute.xlu1 %963 }
 0x145   : > { %1474 = vmatprep.subr.bf16.mxu0 %v1473_v5  ;;  %1433 = vmatmul.mubr.msk.f32.gmra.mrb[2].mxu0 %vm311_vm0, %v964_v11 }
 0x146   : > { %v1087_v35 = vsel %vm311_vm0, %v1713_v9, %v1703_v60  ;;  %v1089_v12 = vsel %vm311_vm0, %v1714_v7, %v1708_v63  ;;  %1163 = vmatprep.mubr.f32.mxu0 %v1923_v10 }
 0x147   : > { %v1475_v13 = vpack.c.bf16 %v1089_v12, %v1087_v35  ;;  %v632_v15 = vpop.permute.xlu0 %631 }
 0x148   : > { %1426 = vmatmul.mubr.msk.f32.vlgmr.msra.gmra.mrb[0].mxu1 %vm311_vm0, %v632_v15  ;;  %v1072_v16 = vpop.permute.xlu1 %1071 }
 0x149   : > { %1482 = vmatpush1.bf16.msra.mxu1 %v2233_v36  ;;  %1476 = vmatpush1.bf16.msra.mxu0 %v1475_v13 }
 0x14a   : > { %730 = vmatprep.mubr.f32.mxu1 %v1923_v10  ;;  %1478 = vmatprep.subr.bf16.mxu0 %v1477_v14 }
 0x14b   : > { %v634_v17 = vpop.permute.xlu0 %633 }
 0x14c   : > { %1427 = vmatmul.mubr.msk.f32.gmra.mrb[2].mxu1 %vm311_vm0, %v634_v17  ;;  %1434 = vmatmul.mubr.msk.f32.vlgmr.msra.gmra.mrb[0].mxu0 %vm311_vm0, %v1072_v16  ;;  %v1074_v18 = vpop.permute.xlu1 %1073 }
 0x14d   : > { %1169 = vmatprep.mubr.f32.mxu0 %v1923_v10  ;;  %1480 = vmatpush1.bf16.msra.mxu0 %v2209_v8 }
 0x14e   : > { %840 = vmatprep.mubr.f32.mxu1 %v1923_v10 }
 0x14f   : > { %v744_v36 = vpop.permute.xlu0 %743 }
 0x150   : > { %1435 = vmatmul.mubr.msk.f32.gmra.mrb[2].mxu0 %vm311_vm0, %v1074_v18 }
 0x151   : > { %1252 = vmatprep.mubr.f32.mxu0 %v1923_v10 }
 0x154   : > { %1429 = vmatmul.mubr.msk.f32.vlgmr.msra.gmra.mrb[2].mxu1 %vm311_vm0, %v744_v36  ;;  %1436 = vmatmul.mubr.msk.f32.vlgmr.msra.gmra.mrb[0].mxu0 %vm311_vm0, %v1180_v1 }
 0x155   : > { %1258 = vmatprep.mubr.f32.mxu0 %v1923_v10 }
 0x158   : > { %1437 = vmatmul.mubr.msk.f32.gmra.mrb[2].mxu0 %vm311_vm0, %v1181_v6 }
 0x15d   : > { %v294_v19 = vpop.permute.xlu1 %293 }
 0x15e   : > { %v301_v22 = vadd.f32 %v294_v19, %v285_v20  ;;  %v302_v23 = vadd.f32 %v294_v19, %v286_v21 }
 0x160   : > { %v299_v24 = vpop.permute.xlu0 %298 }
 0x161   : > { %v303_v28 = vadd.f32 %v299_v24, %v287_v25  ;;  %v304_v30 = vadd.f32 %v299_v24, %v288_v26 }
 0x21b   : > { %v726_v8 = vpop.f32.mrb[0].mxu1 }
 0x21c   : > { %v728_v14 = vpop.f32.mrb[1].mxu1  ;;  %v1483_v27 = vadd.f32 %v726_v8, %v301_v22 }
 0x21d   : > { %v1485_v29 = vadd.f32 %v728_v14, %v302_v23 }
 0x227   : > { %v842_v31 = vpop.f32.mrb[2].mxu1  ;;  %v1254_v10 = vpop.f32.mrb[0].mxu0 }
 0x228   : > { %v1484_v32 = vadd.f32 %v1483_v27, %v1254_v10  ;;  %v844_v33 = vpop.f32.mrb[3].mxu1  ;;  %v1256_v34 = vpop.f32.mrb[1].mxu0  ;;  %v1487_v38 = vadd.f32 %v842_v31, %v303_v28 }
 0x229   : > { %v1486_v37 = vadd.f32 %v1485_v29, %v1256_v34  ;;  %v1489_v40 = vadd.f32 %v844_v33, %v304_v30 }
 0x22a   : > { %v1269_v39 = vmax.f32 %v1484_v32, 0.0 }
 0x22b   : > { %v1270_v41 = vmax.f32 %v1486_v37, 0.0  ;;  %v1260_v42 = vpop.f32.mrb[2].mxu0 }
 0x22c   : > { %1273 = vst [vmem:[%s284_s5] sm:$0xff] %v1269_v39  ;;  %v1488_v43 = vadd.f32 %v1487_v38, %v1260_v42  ;;  %v1262_v44 = vpop.f32.mrb[3].mxu0 }
 0x22d   : > { %1274 = vst [vmem:[%s284_s5 + $0x8] sm:$0xff] %v1270_v41  ;;  %v1490_v45 = vadd.f32 %v1489_v40, %v1262_v44 }
 0x22e   : > { %v1271_v46 = vmax.f32 %v1488_v43, 0.0 }
 0x22f   : > { %v1272_v47 = vmax.f32 %v1490_v45, 0.0 }
 0x230   : > { %1275 = vst [vmem:[%s284_s5 + $0x10] sm:$0xff] %v1271_v46 }
 0x231   : > { %1276 = vst [vmem:[%s284_s5 + $0x18] sm:$0xff] %v1272_v47 }
 0x232   : > { %1846 = shalt.err (!%p1843_p5)
}
 0x233   : > { %s1847_s30 = scalar_lea.hbm %s2297_s26, 512  ;;  %s1851_s8 = scalar_lea.hbm %s2346_s4, 1024 }
 0x234   : > { %p1848_p9 = scmp.ne.s32.totalorder %s2297_s26, %s1847_s30  ;;  %p1852_p11 = scmp.lt.u32.totalorder %s2297_s26, %s2346_s4 }
 0x235   : > { %p1853_p2 = scmp.lt.u32.totalorder %s1851_s8, %s1847_s30  ;;  %p1855_p1 = scmp.lt.u32.totalorder %s1847_s30, %s2297_s26 }
 0x236   : > { %p1849_p0 = pnand %p1848_p9, %p2370_p13 }
 0x237   : > { %p1854_p12 = por %p1853_p2, %p1852_p11 }
 0x238   : > { %p1850_p8 = pneg %p1849_p0 }
 0x239   : > { %p1856_p6 = por %p1855_p1, %p1854_p12 }
 0x23b   : > { %p1857_p10 = pnand %p1856_p6, %p1850_p8 }
 0x23d   : > { %1860 = shalt.err (!%p1857_p10)
}
 0x23e   : > { %s1933_s9 = smov 256  }
 0x23f   : > { %1534 = dma.vmem_to_hbm [thread:$0]  (%p2370_p13), %s2292_s6, 512, %s2297_s26, %s1278_s25, %s1933_s9, %s1933_s9, %s1930_s29  }
 0x240 PF: > { %s1306_s5 = sand.u32 1, %s1899_s15   ;;  %p2371_p4 = scmp.ne.s32.totalorder %s2355_s22, 0 }
 0x241   : > { %p2372_p7 = scmp.ge.s32.totalorder %s1911_s18, 2  ;;  %s1307_s2 = scalar_lea.sflag [#allocation4], %s1306_s5 }
 0x243   : > { %p1551_p3 = pnand %p2372_p7, %p2371_p4 }
 0x245   : > { %1894 = dma.done.wait (!%p1551_p3), %s1307_s2, 512  }
 0x246   : > { %1896 = vsyncadd (!%p1551_p3), %s1307_s2, 4294966784  ;;  %p21_p5 = scmp.ge.s32.totalorder %s2072_s13, 4   ;;  %s2373_s15 = smov %s1903_s16 }
 0x247   : > { %s2374_s16 = smov %s1907_s17  ;;  %s2375_s17 = smov %s2081_s24 }
 0x248   : > { %s2376_s18 = smov %s2072_s13  ;;  %23 = sbr.rel (!%p21_p5) target bundleno = 11 (0xb), region = 102 }
 0x24f   :  { %1312 = vsyncpa [#allocation3], 1 }
 0x250   :  { %1314 = vsyncpa [#allocation3 + $0x1], 1 }
 0x251   :  { %1315 = vsyncpa [#allocation6], 1 }
 0x252   :  { %1317 = vsyncpa [#allocation6 + $0x1], 1 }
 0x253   :  { %1318 = vsyncpa [#allocation9], 1 }
 0x254   :  { %1319 = vsyncpa [#allocation4], 1 }
 0x255   :  { %1321 = vsyncpa [#allocation4 + $0x1], 1 }

// kernel: tcn_gcn_unit_7_forward.4
= control target key start
LH: loop header
LB: loop body
LE: loop exit
PB: predicated region body
PF: predicated region fallthrough
CT: control target
= control target key end

     0   :  { %8 = vsyncpa [#allocation3], 0  ;;  %s5311_s0 = inlined_call_operand.hbm [shape: f32[2,2432,16], index: 0, kind: input, shape index: {}]   ;;  %s5312_s1 = inlined_call_operand.hbm [shape: f32[3,16,16], index: 1, kind: input, shape index: {}]   ;;  %s5313_s2 = inlined_call_operand.hbm [shape: f32[256,1], index: 2, kind: input, shape index: {}]   ;;  %s5314_s3 = inlined_call_operand.hbm [shape: f32[2,256,16], index: 3, kind: output, shape index: {}]  }
   0x1   :  { %10 = vsyncpa [#allocation3 + $0x1], 0 }
   0x2   :  { %11 = vsyncpa [#allocation6], 0 }
   0x3   :  { %12 = vsyncpa [#allocation4], 0 }
   0x4   :  { %14 = vsyncpa [#allocation4 + $0x1], 0  ;;  %s4471_s12 = smov 0   ;;  %s4473_s13 = smov 0  }
   0x5   :  { %s4475_s14 = smov 0   ;;  %s4477_s15 = smov 0  }
   0x6 LB: > { %s4492_s16 = sadd.s32 4294967295, %s4440_s15   ;;  %s3249_s17 = sadd.s32 4294967294, %s4440_s15   ;;  %s4440_s15 = sphi %s4477_s15, %s5334_s15   ;;  %s4436_s14 = sphi %s4475_s14, %s5333_s14   ;;  %s4432_s13 = sphi %s4473_s13, %s5332_s13   ;;  %s4428_s12 = sphi %s4471_s12, %s5331_s12  }
   0x7   : > { %p40_p0 = scmp.ne.s32.totalorder %s4432_s13, %s4428_s12  ;;  %p5315_p1 = scmp.eq.s32.totalorder %s4492_s16, 0 }
   0x8   : > { %p112_p3 = scmp.eq.s32.totalorder %s3249_s17, 1  ;;  %p3250_p5 = scmp.ge.s32.totalorder %s4440_s15, 1 }
   0x9   : > { %p4501_p4 = por %p5315_p1, %p40_p0  ;;  %p119_p7 = scmp.lt.s32.totalorder %s4440_s15, 3 }
   0xa   : > { %p4506_p6 = por %p112_p3, %p40_p0  ;;  %s4442_s21 = smov [#allocation5]  }
   0xb   : > { %s5318_s18 = scalar_select %p4501_p4, 1, 0 }
   0xc   : > { %s5319_s19 = scalar_select %p4506_p6, 1, 0 }
   0xd   : > { %p4511_p8 = pnand %p3250_p5, %p119_p7  ;;  %s131_s22 = sshll.u32 %s4442_s21, 4  ;;  %s4515_s22 = int_to_ptr.vmem [resolvable:$true] %s131_s22 }
   0xe   : > { %s4443_s24 = smov [#allocation7]   ;;  %s4284_s28 = scalar_lea.hbm %s5312_s1, 768 }
   0xf   : > { %p4167_p9 = pneg %p4511_p8  ;;  %s144_s25 = sshll.u32 %s4443_s24, 4  ;;  %s4526_s25 = int_to_ptr.vmem [resolvable:$true] %s144_s25 }
  0x10   : > { %p4285_p12 = scmp.ne.s32.totalorder %s5312_s1, %s4284_s28  ;;  %p4291_p5 = scmp.lt.u32.totalorder %s4284_s28, %s5312_s1 }
  0x11   : > { %p4522_p11 = pnand %p4167_p9, %p5315_p1 }
  0x13   : > { %p4286_p13 = pneg %p4522_p11 }
  0x15   : > { %p4287_p0 = pnand %p4286_p13, %p4285_p12 }
  0x17   : > { %p4288_p3 = pneg %p4287_p0 }
  0x19   : > { %p4293_p7 = pnand %p4291_p5, %p4288_p3 }
  0x1b   : > { %4296 = shalt.err (!%p4293_p7)
}
  0x1c   : > { %s4297_s6 = scalar_lea.vmem %s4515_s22, 768  ;;  %p4305_p2 = scmp.lt.s32.totalorder %s4515_s22, %s4515_s22 }
  0x1d   : > { %p4298_p9 = scmp.ne.s32.totalorder %s4515_s22, %s4297_s6  ;;  %p4306_p12 = scmp.lt.s32.totalorder %s4297_s6, %s4297_s6 }
  0x1f   : > { %p4300_p10 = pnand %p4298_p9, %p4286_p13  ;;  %p4307_p0 = por %p4306_p12, %p4305_p2 }
  0x21   : > { %p4301_p1 = pneg %p4300_p10 }
  0x23   : > { %p4308_p6 = pnand %p4307_p0, %p4301_p1 }
  0x25   : > { %4311 = shalt.err (!%p4308_p6)
}
  0x26   : > { %s4444_s7 = smov 128   ;;  %s4445_s8 = smov 8  }
  0x27   : > { %4170 = dma.hbm_to_vmem [thread:$0]  (!%p4522_p11), %s5312_s1, 768, %s4515_s22, [#allocation6], %s4444_s7, %s4444_s7, %s4445_s8  }
  0x28   : > { %s4312_s21 = scalar_lea.hbm %s5313_s2, 4096 }
  0x29   : > { %p4313_p1 = scmp.ne.s32.totalorder %s5313_s2, %s4312_s21  ;;  %p4319_p10 = scmp.lt.u32.totalorder %s4312_s21, %s5313_s2 }
  0x2b   : > { %p4315_p2 = pnand %p4313_p1, %p4286_p13 }
  0x2d   : > { %p4316_p6 = pneg %p4315_p2 }
  0x2f   : > { %p4321_p3 = pnand %p4319_p10, %p4316_p6 }
  0x31   : > { %4324 = shalt.err (!%p4321_p3)
}
  0x32   : > { %s4325_s22 = scalar_lea.vmem %s4526_s25, 4096  ;;  %p4333_p12 = scmp.lt.s32.totalorder %s4526_s25, %s4526_s25 }
  0x33   : > { %p4326_p5 = scmp.ne.s32.totalorder %s4526_s25, %s4325_s22  ;;  %p4334_p0 = scmp.lt.s32.totalorder %s4325_s22, %s4325_s22 }
  0x35   : > { %p4328_p7 = pnand %p4326_p5, %p4286_p13  ;;  %p4335_p1 = por %p4334_p0, %p4333_p12 }
  0x37   : > { %p4329_p9 = pneg %p4328_p7 }
  0x39   : > { %p4336_p2 = pnand %p4335_p1, %p4329_p9 }
  0x3b   : > { %4339 = shalt.err (!%p4336_p2)
}
  0x3c   : > { %4173 = dma.hbm_to_vmem [thread:$0]  (!%p4522_p11), %s5313_s2, 4096, %s4526_s25, [#allocation6], %s4444_s7, %s4444_s7, %s4445_s8  }
  0x3d   : > { %s4587_s23 = sadd.s32 1, %s4440_s15   ;;  %s27_s4 = sadd.s32 1, %s4436_s14 }
  0x3e   : > { %s24_s5 = ssub.s32 %s4440_s15, %s4587_s23  ;;  %p34_p13 = scmp.ne.s32.totalorder %s4436_s14, %s4432_s13 }
  0x3f   : > { %p25_p6 = scmp.eq.s32.totalorder %s24_s5, 0  ;;  %p35_p10 = scmp.eq.s32.totalorder %s4440_s15, 0 }
  0x40   : > { %p5322_p3 = scmp.eq.s32.totalorder %s4492_s16, 1  ;;  %p4184_p7 = scmp.lt.s32.totalorder %s4440_s15, 2 }
  0x41   : > { %s4603_s9 = scalar_select %p25_p6, %s4436_s14, %s27_s4  }
  0x42   : > { %p4597_p5 = por %p5322_p3, %p34_p13  ;;  %p36_p9 = por %p35_p10, %p34_p13 }
  0x43   : > { %s158_s10 = sand.u32 1, %s4436_s14   ;;  %s4153_s25 = smul.u32 38912, %s4440_s15 }
  0x44   : > { %s5323_s6 = scalar_select %p4597_p5, 1, 0 }
  0x45   : > { %s4152_s11 = smul.u32 2432, %s158_s10  ;;  %p4607_p11 = pnand %p4184_p7, %p36_p9 }
  0x46   : > { %s4614_s26 = scalar_lea.hbm %s5311_s0, %s4153_s25  ;;  %s4618_s22 = scalar_lea.sflag [#allocation3], %s158_s10 }
  0x47   : > { %s162_s27 = scalar_lea.vmem [#allocation2], %s4152_s11  ;;  %s4340_s29 = scalar_lea.hbm %s4614_s26, 38912 }
  0x48   : > { %s169_s28 = sshll.u32 %s162_s27, 4  ;;  %p4341_p12 = scmp.ne.s32.totalorder %s4614_s26, %s4340_s29  ;;  %s4616_s28 = int_to_ptr.vmem [resolvable:$true] %s169_s28 }
  0x49   : > { %p4342_p0 = pneg %p4607_p11  ;;  %s4345_s5 = scalar_lea.hbm %s5311_s0, 77824 }
  0x4a   : > { %p4346_p13 = scmp.lt.u32.totalorder %s4614_s26, %s5311_s0  ;;  %p4347_p6 = scmp.lt.u32.totalorder %s4345_s5, %s4340_s29 }
  0x4b   : > { %p4343_p1 = pnand %p4342_p0, %p4341_p12  ;;  %p4349_p3 = scmp.lt.u32.totalorder %s4340_s29, %s4614_s26 }
  0x4c   : > { %p4348_p10 = por %p4347_p6, %p4346_p13 }
  0x4d   : > { %p4344_p2 = pneg %p4343_p1 }
  0x4e   : > { %p4350_p7 = por %p4349_p3, %p4348_p10 }
  0x50   : > { %p4351_p9 = pnand %p4350_p7, %p4344_p2 }
  0x52   : > { %4354 = shalt.err (!%p4351_p9)
}
  0x53   : > { %s4355_s10 = scalar_lea.vmem %s4616_s28, 38912  ;;  %s4446_s11 = smov [#allocation2]  }
  0x54   : > { %p4356_p12 = scmp.ne.s32.totalorder %s4616_s28, %s4355_s10  ;;  %s4360_s24 = sshll.u32 %s4446_s11, 4  ;;  %s4361_s24 = int_to_ptr.vmem [resolvable:$false] %s4360_s24 }
  0x55   : > { %s4362_s27 = scalar_lea.vmem %s4361_s24, 77824  ;;  %p4363_p4 = scmp.lt.s32.totalorder %s4616_s28, %s4361_s24 }
  0x56   : > { %p4358_p1 = pnand %p4356_p12, %p4342_p0  ;;  %p4364_p13 = scmp.lt.s32.totalorder %s4362_s27, %s4355_s10 }
  0x58   : > { %p4359_p5 = pneg %p4358_p1  ;;  %p4365_p6 = por %p4364_p13, %p4363_p4 }
  0x5a   : > { %p4366_p10 = pnand %p4365_p6, %p4359_p5 }
  0x5c   : > { %4369 = shalt.err (!%p4366_p10)
}
  0x5d   : > { %4177 = dma.hbm_to_vmem [thread:$0]  (!%p4607_p11), %s4614_s26, 38912, %s4616_s28, %s4618_s22, %s4444_s7, %s4444_s7, %s4445_s8  }
  0x5e   : > { %181 = sbr.rel (%p4511_p8) target bundleno = 1268 (0x4f4), region = 32  ;;  %s4652_s29 = sand.u32 (!%p4511_p8), 1, %s4432_s13  }
  0x5f   : > { %s4154_s30 = smul.u32 (!%p4511_p8), 2432, %s4652_s29  ;;  %s184_s4 = scalar_lea.sflag (!%p4511_p8), [#allocation3], %s4652_s29 }
  0x60   : > { %p5325_p4 = scmp.ne.s32.totalorder (!%p4511_p8), %s5318_s18, 0 }
  0x61   : > { %s4656_s5 = scalar_lea.vmem (!%p4511_p8), [#allocation2], %s4154_s30 }
  0x65   : > { %4415 = dma.done.wait (%p5325_p4), %s184_s4, 38912  }
  0x66   : > { %4417 = vsyncadd (%p5325_p4), %s184_s4, 4294928384  ;;  %p5326_p5 = scmp.eq.s32.totalorder %s4492_s16, 0 }
  0x68   : > { %4419 = dma.done.wait (%p5326_p5), [#allocation6], 4864   ;;  %p5327_p8 = pmov %p5326_p5 }
  0x69   : > { %v490_v0 = vld [vmem:[%s4656_s5 + $0x780] sm:$0xff]  ;;  %v491_v2 = vld [vmem:[%s4656_s5 + $0x788] sm:$0xff]  ;;  %v492_v4 = vld [vmem:[%s4656_s5 + $0x790] sm:$0xff]  ;;  %vm554_vm0 = vcmask 523264   ;;  %vm870_vm1 = vcmask 130048   ;;  %s3258_s18 = sshll.u32 %s4652_s29, 8 }
  0x6a   : > { %4421 = vsyncadd (%p5327_p8), [#allocation6], 4294962432  ;;  %v474_v1 = vld [vmem:[%s4656_s5] sm:$0xff]  ;;  %638 = vxpose.xlu1.b32.start [1/8] (short) (narrow) %v490_v0, 16  ;;  %v475_v3 = vld [vmem:[%s4656_s5 + $0x8] sm:$0xff]  ;;  %s5151_s20 = scalar_lea.vmem [#allocation8], %s3258_s18 }
  0x6b   : > { %522 = vxpose.xlu0.b32.start [1/8] (short) (narrow) %v474_v1, 16  ;;  %v476_v5 = vld [vmem:[%s4656_s5 + $0x10] sm:$0xff]  ;;  %v493_v6 = vld [vmem:[%s4656_s5 + $0x798] sm:$0xff]  ;;  %v482_v7 = vld [vmem:[%s4656_s5 + $0x40] sm:$0xff]  ;;  %s3378_s7 = sshll.u32 %s4492_s16, 12  ;;  %s3157_s8 = sshll.u32 %s5151_s20, 4  ;;  %s5263_s8 = int_to_ptr.vmem [resolvable:$true] %s3157_s8 }
  0x6c   : > { %v483_v8 = vld [vmem:[%s4656_s5 + $0x48] sm:$0xff]  ;;  %v498_v9 = vld [vmem:[%s4656_s5 + $0x7c0] sm:$0xff]  ;;  %v484_v12 = vld [vmem:[%s4656_s5 + $0x50] sm:$0xff]  ;;  %s5261_s28 = scalar_lea.hbm %s5314_s3, %s3378_s7  ;;  %s3144_s16 = scalar_lea.sflag [#allocation4], %s4652_s29 }
  0x6d   : > { %v3898_v10 = vpack.c.bf16 %v483_v8, %v482_v7  ;;  %v499_v11 = vld [vmem:[%s4656_s5 + $0x7c8] sm:$0xff]  ;;  %v485_v13 = vld [vmem:[%s4656_s5 + $0x58] sm:$0xff]  ;;  %v500_v17 = vld [vmem:[%s4656_s5 + $0x7d0] sm:$0xff]  ;;  %s4370_s22 = scalar_lea.vmem %s5263_s8, 4096  ;;  %p5328_p0 = scmp.ne.s32.totalorder %s5323_s6, 0 }
  0x6e   : > { %639 = vxpose.xlu1.b32.cont [2/8] (short) (narrow) %v491_v2, 16  ;;  %v477_v14 = vld [vmem:[%s4656_s5 + $0x18] sm:$0xff]  ;;  %v3914_v15 = vpack.c.bf16 %v499_v11, %v498_v9  ;;  %v3902_v16 = vpack.c.bf16 %v485_v13, %v484_v12  ;;  %v486_v20 = vld [vmem:[%s4656_s5 + $0x60] sm:$0xff]  ;;  %v487_v21 = vld [vmem:[%s4656_s5 + $0x68] sm:$0xff]  ;;  %p4371_p11 = scmp.ne.s32.totalorder %s5263_s8, %s4370_s22  ;;  %s4448_s25 = smov [#allocation8]  }
  0x6f   : > { %523 = vxpose.xlu0.b32.cont [2/8] (short) (narrow) %v475_v3, 16  ;;  %v501_v18 = vld [vmem:[%s4656_s5 + $0x7d8] sm:$0xff]  ;;  %3899 = vmatprep.subr.bf16.mxu0 %v3898_v10  ;;  %v502_v22 = vld [vmem:[%s4656_s5 + $0x7e0] sm:$0xff]  ;;  %v503_v23 = vld [vmem:[%s4656_s5 + $0x7e8] sm:$0xff]  ;;  %v3906_v26 = vpack.c.bf16 %v487_v21, %v486_v20  ;;  %s4374_s21 = sshll.u32 %s4448_s25, 4  ;;  %s4375_s21 = int_to_ptr.vmem [resolvable:$false] %s4374_s21 }
  0x70   : > { %v3918_v19 = vpack.c.bf16 %v501_v18, %v500_v17  ;;  %3915 = vmatprep.subr.bf16.mxu1 %v3914_v15  ;;  %3901 = vmatpush3.bf16.msra.mxu0 %v3898_v10  ;;  %v494_v24 = vld [vmem:[%s4656_s5 + $0x7a0] sm:$0xff]  ;;  %v3922_v27 = vpack.c.bf16 %v503_v23, %v502_v22  ;;  %v488_v28 = vld [vmem:[%s4656_s5 + $0x70] sm:$0xff]  ;;  %v489_v29 = vld [vmem:[%s4656_s5 + $0x78] sm:$0xff]  ;;  %p4372_p2 = pnand %p4371_p11, %p5328_p0  ;;  %s4376_s10 = scalar_lea.vmem %s4375_s21, 8192 }
  0x71   : > { %v478_v25 = vld [vmem:[%s4656_s5 + $0x20] sm:$0xff]  ;;  %3917 = vmatpush3.bf16.msra.mxu1 %v3914_v15  ;;  %3903 = vmatprep.subr.bf16.mxu0 %v3902_v16  ;;  %v504_v30 = vld [vmem:[%s4656_s5 + $0x7f0] sm:$0xff]  ;;  %v505_v31 = vld [vmem:[%s4656_s5 + $0x7f8] sm:$0xff]  ;;  %v3910_v34 = vpack.c.bf16 %v489_v29, %v488_v28  ;;  %p4377_p7 = scmp.lt.s32.totalorder %s5263_s8, %s4375_s21  ;;  %p4378_p9 = scmp.lt.s32.totalorder %s4376_s10, %s4370_s22 }
  0x72   : > { %640 = vxpose.xlu1.b32.cont [3/8] (short) (narrow) %v492_v4, 16  ;;  %3919 = vmatprep.subr.bf16.mxu1 %v3918_v19  ;;  %v495_v32 = vld [vmem:[%s4656_s5 + $0x7a8] sm:$0xff]  ;;  %v3926_v35 = vpack.c.bf16 %v505_v31, %v504_v30  ;;  %v514_v36 = vld [vmem:[%s4656_s5 + $0xc0] sm:$0xff]  ;;  %v496_v38 = vld [vmem:[%s4656_s5 + $0x7b0] sm:$0xff]  ;;  %p4373_p3 = pneg %p4372_p2 }
  0x73   : > { %524 = vxpose.xlu0.b32.cont [3/8] (short) (narrow) %v476_v5, 16  ;;  %v479_v33 = vld [vmem:[%s4656_s5 + $0x28] sm:$0xff]  ;;  %v480_v39 = vld [vmem:[%s4656_s5 + $0x30] sm:$0xff]  ;;  %v497_v41 = vld [vmem:[%s4656_s5 + $0x7b8] sm:$0xff]  ;;  %p4379_p12 = por %p4378_p9, %p4377_p7 }
  0x74   : > { %3905 = vmatpush3.bf16.msra.mxu0 %v3902_v16  ;;  %v515_v37 = vld [vmem:[%s4656_s5 + $0xc8] sm:$0xff]  ;;  %v481_v42 = vld [vmem:[%s4656_s5 + $0x38] sm:$0xff]  ;;  %v506_v43 = vld [vmem:[%s4656_s5 + $0x80] sm:$0xff] }
  0x75   : > { %3921 = vmatpush3.bf16.msra.mxu1 %v3918_v19  ;;  %3907 = vmatprep.subr.bf16.mxu0 %v3906_v26  ;;  %v3930_v40 = vpack.c.bf16 %v515_v37, %v514_v36  ;;  %v507_v44 = vld [vmem:[%s4656_s5 + $0x88] sm:$0xff]  ;;  %v508_v45 = vld [vmem:[%s4656_s5 + $0x90] sm:$0xff]  ;;  %v509_v46 = vld [vmem:[%s4656_s5 + $0x98] sm:$0xff]  ;;  %p4380_p1 = pnand %p4379_p12, %p4373_p3 }
  0x76   : > { %641 = vxpose.xlu1.b32.cont [4/8] (short) (narrow) %v493_v6, 16  ;;  %3923 = vmatprep.subr.bf16.mxu1 %v3922_v27  ;;  %v510_v47 = vld [vmem:[%s4656_s5 + $0xa0] sm:$0xff]  ;;  %v511_v48 = vld [vmem:[%s4656_s5 + $0xa8] sm:$0xff]  ;;  %v512_v49 = vld [vmem:[%s4656_s5 + $0xb0] sm:$0xff] }
  0x77   : > { %525 = vxpose.xlu0.b32.cont [4/8] (short) (narrow) %v477_v14, 16  ;;  %v513_v50 = vld [vmem:[%s4656_s5 + $0xb8] sm:$0xff]  ;;  %v516_v53 = vld [vmem:[%s4656_s5 + $0xd0] sm:$0xff]  ;;  %v518_v58 = vld [vmem:[%s4656_s5 + $0xe0] sm:$0xff] }
  0x78   : > { %3909 = vmatpush3.bf16.msra.mxu0 %v3906_v26  ;;  %v517_v54 = vld [vmem:[%s4656_s5 + $0xd8] sm:$0xff]  ;;  %v519_v59 = vld [vmem:[%s4656_s5 + $0xe8] sm:$0xff]  ;;  %v520_v61 = vld [vmem:[%s4656_s5 + $0xf0] sm:$0xff] }
  0x79   : > { %3925 = vmatpush3.bf16.msra.mxu1 %v3922_v27  ;;  %3911 = vmatprep.subr.bf16.mxu0 %v3910_v34  ;;  %v3934_v55 = vpack.c.bf16 %v517_v54, %v516_v53  ;;  %v3938_v60 = vpack.c.bf16 %v519_v59, %v518_v58  ;;  %v521_v62 = vld [vmem:[%s4656_s5 + $0xf8] sm:$0xff]  ;;  %v1343_v2 = vld [vmem:[%s4656_s5 + $0x100] sm:$0xff]  ;;  %v1344_v3 = vld [vmem:[%s4656_s5 + $0x108] sm:$0xff] }
  0x7a   : > { %642 = vxpose.xlu1.b32.cont [5/8] (short) (narrow) %v494_v24, 16  ;;  %3927 = vmatprep.subr.bf16.mxu1 %v3926_v35  ;;  %v3942_v63 = vpack.c.bf16 %v521_v62, %v520_v61  ;;  %v1345_v4 = vld [vmem:[%s4656_s5 + $0x110] sm:$0xff]  ;;  %v1346_v5 = vld [vmem:[%s4656_s5 + $0x118] sm:$0xff]  ;;  %v1347_v6 = vld [vmem:[%s4656_s5 + $0x120] sm:$0xff] }
  0x7b   : > { %526 = vxpose.xlu0.b32.cont [5/8] (short) (narrow) %v478_v25, 16  ;;  %v1359_v7 = vld [vmem:[%s4656_s5 + $0x880] sm:$0xff]  ;;  %v1348_v8 = vld [vmem:[%s4656_s5 + $0x128] sm:$0xff]  ;;  %v1349_v10 = vld [vmem:[%s4656_s5 + $0x130] sm:$0xff] }
  0x7c   : > { %3913 = vmatpush3.bf16.msra.mxu0 %v3910_v34  ;;  %v1360_v9 = vld [vmem:[%s4656_s5 + $0x888] sm:$0xff]  ;;  %v1361_v11 = vld [vmem:[%s4656_s5 + $0x890] sm:$0xff]  ;;  %v1350_v12 = vld [vmem:[%s4656_s5 + $0x138] sm:$0xff] }
  0x7d   : > { %3929 = vmatpush3.bf16.msra.mxu1 %v3926_v35  ;;  %3931 = vmatprep.subr.bf16.mxu0 %v3930_v40  ;;  %v1362_v13 = vld [vmem:[%s4656_s5 + $0x898] sm:$0xff]  ;;  %v1375_v14 = vld [vmem:[%s4656_s5 + $0x800] sm:$0xff]  ;;  %v1376_v16 = vld [vmem:[%s4656_s5 + $0x808] sm:$0xff] }
  0x7e   : > { %643 = vxpose.xlu1.b32.cont [6/8] (short) (narrow) %v495_v32, 16  ;;  %v1363_v15 = vld [vmem:[%s4656_s5 + $0x8a0] sm:$0xff]  ;;  %v1364_v17 = vld [vmem:[%s4656_s5 + $0x8a8] sm:$0xff]  ;;  %v1377_v18 = vld [vmem:[%s4656_s5 + $0x810] sm:$0xff] }
  0x7f   : > { %527 = vxpose.xlu0.b32.cont [6/8] (short) (narrow) %v479_v33, 16  ;;  %v1365_v19 = vld [vmem:[%s4656_s5 + $0x8b0] sm:$0xff]  ;;  %v1378_v20 = vld [vmem:[%s4656_s5 + $0x818] sm:$0xff]  ;;  %v1379_v22 = vld [vmem:[%s4656_s5 + $0x820] sm:$0xff] }
  0x80   : > { %v1366_v21 = vld [vmem:[%s4656_s5 + $0x8b8] sm:$0xff]  ;;  %v2211_v23 = vld [vmem:[%s4656_s5 + $0x180] sm:$0xff]  ;;  %v1380_v24 = vld [vmem:[%s4656_s5 + $0x828] sm:$0xff] }
  0x81   : > { %v2212_v25 = vld [vmem:[%s4656_s5 + $0x188] sm:$0xff]  ;;  %v1381_v26 = vld [vmem:[%s4656_s5 + $0x830] sm:$0xff]  ;;  %v1382_v28 = vld [vmem:[%s4656_s5 + $0x838] sm:$0xff] }
  0x82   : > { %644 = vxpose.xlu1.b32.cont [7/8] (short) (narrow) %v496_v38, 16  ;;  %v2213_v27 = vld [vmem:[%s4656_s5 + $0x190] sm:$0xff]  ;;  %v2214_v29 = vld [vmem:[%s4656_s5 + $0x198] sm:$0xff]  ;;  %v2227_v30 = vld [vmem:[%s4656_s5 + $0x900] sm:$0xff] }
  0x83   : > { %528 = vxpose.xlu0.b32.cont [7/8] (short) (narrow) %v480_v39, 16  ;;  %v2215_v31 = vld [vmem:[%s4656_s5 + $0x1a0] sm:$0xff]  ;;  %v2228_v32 = vld [vmem:[%s4656_s5 + $0x908] sm:$0xff]  ;;  %v2229_v34 = vld [vmem:[%s4656_s5 + $0x910] sm:$0xff] }
  0x84   : > { %v2216_v33 = vld [vmem:[%s4656_s5 + $0x1a8] sm:$0xff]  ;;  %v2217_v35 = vld [vmem:[%s4656_s5 + $0x1b0] sm:$0xff]  ;;  %v2230_v36 = vld [vmem:[%s4656_s5 + $0x918] sm:$0xff] }
  0x85   : > { %v2218_v37 = vld [vmem:[%s4656_s5 + $0x1b8] sm:$0xff]  ;;  %v2231_v38 = vld [vmem:[%s4656_s5 + $0x920] sm:$0xff] }
  0x86   : > { %645 = vxpose.xlu1.b32.end [8/8] (short) (narrow) %v497_v41, 16  ;;  %v2243_v39 = vld [vmem:[%s4656_s5 + $0x200] sm:$0xff]  ;;  %v2244_v41 = vld [vmem:[%s4656_s5 + $0x208] sm:$0xff] }
  0x87   : > { %529 = vxpose.xlu0.b32.end [8/8] (short) (narrow) %v481_v42, 16  ;;  %v2233_v42 = vld [vmem:[%s4656_s5 + $0x930] sm:$0xff] }
  0x8a   : > { %1391 = vxpose.xlu1.b32.start [1/8] (short) (narrow) %v1343_v2, 16 }
  0x8b   : > { %753 = vxpose.xlu0.b32.start [1/8] (short) (narrow) %v506_v43, 16  ;;  %v2245_v43 = vld [vmem:[%s4656_s5 + $0x210] sm:$0xff] }
  0x8e   : > { %1392 = vxpose.xlu1.b32.cont [2/8] (short) (narrow) %v1344_v3, 16 }
  0x8f   : > { %754 = vxpose.xlu0.b32.cont [2/8] (short) (narrow) %v507_v44, 16  ;;  %v958_v44 = vld [vmem:[%s4656_s5 + $0x280] sm:$0xff] }
  0x92   : > { %1393 = vxpose.xlu1.b32.cont [3/8] (short) (narrow) %v1345_v4, 16 }
  0x93   : > { %755 = vxpose.xlu0.b32.cont [3/8] (short) (narrow) %v508_v45, 16  ;;  %v2234_v45 = vld [vmem:[%s4656_s5 + $0x938] sm:$0xff] }
  0x96   : > { %1394 = vxpose.xlu1.b32.cont [4/8] (short) (narrow) %v1346_v5, 16 }
  0x97   : > { %756 = vxpose.xlu0.b32.cont [4/8] (short) (narrow) %v509_v46, 16  ;;  %v2246_v46 = vld [vmem:[%s4656_s5 + $0x218] sm:$0xff] }
  0x9a   : > { %1395 = vxpose.xlu1.b32.cont [5/8] (short) (narrow) %v1347_v6, 16 }
  0x9b   : > { %757 = vxpose.xlu0.b32.cont [5/8] (short) (narrow) %v510_v47, 16  ;;  %v2247_v47 = vld [vmem:[%s4656_s5 + $0x220] sm:$0xff] }
  0x9e   : > { %1396 = vxpose.xlu1.b32.cont [6/8] (short) (narrow) %v1348_v8, 16 }
  0x9f   : > { %758 = vxpose.xlu0.b32.cont [6/8] (short) (narrow) %v511_v48, 16  ;;  %v2248_v48 = vld [vmem:[%s4656_s5 + $0x228] sm:$0xff] }
  0xa2   : > { %1397 = vxpose.xlu1.b32.cont [7/8] (short) (narrow) %v1349_v10, 16 }
  0xa3   : > { %759 = vxpose.xlu0.b32.cont [7/8] (short) (narrow) %v512_v49, 16  ;;  %v2249_v49 = vld [vmem:[%s4656_s5 + $0x230] sm:$0xff] }
  0xa6   : > { %1398 = vxpose.xlu1.b32.end [8/8] (short) (narrow) %v1350_v12, 16 }
  0xa7   : > { %760 = vxpose.xlu0.b32.end [8/8] (short) (narrow) %v513_v50, 16  ;;  %v2250_v50 = vld [vmem:[%s4656_s5 + $0x238] sm:$0xff] }
  0xaa   : > { %1621 = vxpose.xlu1.b32.start [1/8] (short) (narrow) %v1375_v14, 16 }
  0xab   : > { %1506 = vxpose.xlu0.b32.start [1/8] (short) (narrow) %v1359_v7, 16 }
  0xae   : > { %1622 = vxpose.xlu1.b32.cont [2/8] (short) (narrow) %v1376_v16, 16 }
  0xaf   : > { %1507 = vxpose.xlu0.b32.cont [2/8] (short) (narrow) %v1360_v9, 16 }
  0xb2   : > { %1623 = vxpose.xlu1.b32.cont [3/8] (short) (narrow) %v1377_v18, 16 }
  0xb3   : > { %1508 = vxpose.xlu0.b32.cont [3/8] (short) (narrow) %v1361_v11, 16 }
  0xb6   : > { %1624 = vxpose.xlu1.b32.cont [4/8] (short) (narrow) %v1378_v20, 16 }
  0xb7   : > { %1509 = vxpose.xlu0.b32.cont [4/8] (short) (narrow) %v1362_v13, 16 }
  0xba   : > { %1625 = vxpose.xlu1.b32.cont [5/8] (short) (narrow) %v1379_v22, 16 }
  0xbb   : > { %1510 = vxpose.xlu0.b32.cont [5/8] (short) (narrow) %v1363_v15, 16 }
  0xbe   : > { %1626 = vxpose.xlu1.b32.cont [6/8] (short) (narrow) %v1380_v24, 16 }
  0xbf   : > { %1511 = vxpose.xlu0.b32.cont [6/8] (short) (narrow) %v1364_v17, 16 }
  0xc2   : > { %1627 = vxpose.xlu1.b32.cont [7/8] (short) (narrow) %v1381_v26, 16 }
  0xc3   : > { %1512 = vxpose.xlu0.b32.cont [7/8] (short) (narrow) %v1365_v19, 16 }
  0xc6   : > { %1628 = vxpose.xlu1.b32.end [8/8] (short) (narrow) %v1382_v28, 16 }
  0xc7   : > { %1513 = vxpose.xlu0.b32.end [8/8] (short) (narrow) %v1366_v21, 16 }
  0xca   : > { %2374 = vxpose.xlu1.b32.start [1/8] (short) (narrow) %v2227_v30, 16 }
  0xcb   : > { %2259 = vxpose.xlu0.b32.start [1/8] (short) (narrow) %v2211_v23, 16 }
  0xce   : > { %2375 = vxpose.xlu1.b32.cont [2/8] (short) (narrow) %v2228_v32, 16 }
  0xcf   : > { %2260 = vxpose.xlu0.b32.cont [2/8] (short) (narrow) %v2212_v25, 16 }
  0xd2   : > { %2376 = vxpose.xlu1.b32.cont [3/8] (short) (narrow) %v2229_v34, 16 }
  0xd3   : > { %2261 = vxpose.xlu0.b32.cont [3/8] (short) (narrow) %v2213_v27, 16 }
  0xd6   : > { %2377 = vxpose.xlu1.b32.cont [4/8] (short) (narrow) %v2230_v36, 16 }
  0xd7   : > { %2262 = vxpose.xlu0.b32.cont [4/8] (short) (narrow) %v2214_v29, 16 }
  0xda   : > { %2378 = vxpose.xlu1.b32.cont [5/8] (short) (narrow) %v2231_v38, 16  ;;  %v4447_v38 = vmov 0  }
  0xdb   : > { %2263 = vxpose.xlu0.b32.cont [5/8] (short) (narrow) %v2215_v31, 16 }
  0xdf   : > { %2264 = vxpose.xlu0.b32.cont [6/8] (short) (narrow) %v2216_v33, 16 }
  0xe3   : > { %2265 = vxpose.xlu0.b32.cont [7/8] (short) (narrow) %v2217_v35, 16  ;;  %v218_v35 = vld [vmem:[#allocation7] sm:$0xff] }
  0xe7   : > { %2266 = vxpose.xlu0.b32.end [8/8] (short) (narrow) %v2218_v37, 16 }
  0xea   : > { %v654_v51 = vpop.trf.xlu1 }
  0xeb   : > { %v538_v52 = vpop.trf.xlu0  ;;  %3606 = vmatprep.mubr.msk.f32.mxu1 %vm554_vm0, %v654_v51  ;;  %2489 = vxpose.xlu0.b32.start [1/8] (short) (narrow) %v2243_v39, 16 }
  0xec   : > { %3587 = vmatprep.mubr.msk.f32.mxu0 %vm554_vm0, %v538_v52 }
  0xee   : > { %v655_v56 = vpop.trf.xlu1 }
  0xef   : > { %v539_v57 = vpop.trf.xlu0  ;;  %3607 = vmatmul.mubr.msk.f32.vlgmr.msra.gmra.mrb[0].mxu1 %vm554_vm0, %v655_v56  ;;  %2490 = vxpose.xlu0.b32.cont [2/8] (short) (narrow) %v2244_v41, 16 }
  0xf0   : > { %3588 = vmatmul.mubr.msk.f32.vlgmr.msra.gmra.mrb[0].mxu0 %vm554_vm0, %v539_v57 }
  0xf1   : > { %3933 = vmatpush3.bf16.msra.mxu0 %v3930_v40  ;;  %v2232_v40 = vld [vmem:[%s4656_s5 + $0x928] sm:$0xff] }
  0xf2   : > { %3935 = vmatprep.subr.bf16.mxu0 %v3934_v55  ;;  %2379 = vxpose.xlu1.b32.cont [6/8] (short) (narrow) %v2232_v40, 16 }
  0xf3   : > { %2491 = vxpose.xlu0.b32.cont [3/8] (short) (narrow) %v2245_v43, 16 }
  0xf5   : > { %3937 = vmatpush3.bf16.msra.mxu0 %v3934_v55 }
  0xf6   : > { %3939 = vmatprep.subr.bf16.mxu0 %v3938_v60  ;;  %2380 = vxpose.xlu1.b32.cont [7/8] (short) (narrow) %v2233_v42, 16 }
  0xf7   : > { %2492 = vxpose.xlu0.b32.cont [4/8] (short) (narrow) %v2246_v46, 16 }
  0xf9   : > { %3941 = vmatpush3.bf16.msra.mxu0 %v3938_v60 }
  0xfa   : > { %3943 = vmatprep.subr.bf16.mxu0 %v3942_v63  ;;  %2381 = vxpose.xlu1.b32.end [8/8] (short) (narrow) %v2234_v45, 16 }
  0xfb   : > { %2493 = vxpose.xlu0.b32.cont [5/8] (short) (narrow) %v2247_v47, 16 }
  0xfd   : > { %3945 = vmatpush3.bf16.msra.mxu0 %v3942_v63 }
  0xff   : > { %2494 = vxpose.xlu0.b32.cont [6/8] (short) (narrow) %v2248_v48, 16 }
 0x103   : > { %2495 = vxpose.xlu0.b32.cont [7/8] (short) (narrow) %v2249_v49, 16 }
 0x107   : > { %2496 = vxpose.xlu0.b32.end [8/8] (short) (narrow) %v2250_v50, 16 }
 0x10b   : > { %v769_v0 = vpop.trf.xlu0 }
 0x10c   : > { %3625 = vmatprep.mubr.msk.f32.mxu0 %vm554_vm0, %v769_v0 }
 0x10f   : > { %v770_v1 = vpop.trf.xlu0 }
 0x110   : > { %3626 = vmatmul.mubr.msk.f32.vlgmr.msra.gmra.mrb[2].mxu0 %vm554_vm0, %v770_v1 }
 0x111   : > { %3632 = vmatprep.mubr.msk.f32.mxu0 %vm870_vm1, %v958_v44  ;;  %v219_v44 = vld [vmem:[#allocation7 + $0x8] sm:$0xff] }
 0x118   : > { %4228 = vset.pattern.permute.xlu1 %v4447_v38 }
 0x119   : > { %284 = vperm.xlu1 %4228, %v218_v35   ;;  %v232_v35 = vld [vmem:[#allocation7 + $0x70] sm:$0xff] }
 0x11d   : > { %289 = vperm.xlu1 %4228, %v219_v44   ;;  %v1352_v44 = vld [vmem:[%s4656_s5 + $0x148] sm:$0xff] }
 0x130   : > { %4229 = vset.pattern.permute.xlu0 %v4447_v38 }
 0x1c2   : > { %v3608_v52 = vpop.f32.mrb[0].mxu1 }
 0x1c3   : > { %v3589_v51 = vpop.f32.mrb[0].mxu0  ;;  %v752_v54 = vmul.f32 0.015625, %v3608_v52  ;;  %v742_v56 = vpop.f32.mrb[1].mxu1 }
 0x1c4   : > { %v637_v53 = vmul.f32 0.015625, %v3589_v51  ;;  %v627_v55 = vpop.f32.mrb[1].mxu0  ;;  %v751_v58 = vmul.f32 0.015625, %v742_v56  ;;  %v221_v51 = vld [vmem:[#allocation7 + $0x18] sm:$0xff] }
 0x1c5   : > { %v636_v57 = vmul.f32 0.015625, %v627_v55  ;;  %v901_v60 = vsel %vm870_vm1, %v752_v54, -inf  ;;  %299 = vperm.xlu1 %4228, %v221_v51   ;;  %v1354_v51 = vld [vmem:[%s4656_s5 + $0x158] sm:$0xff] }
 0x1c6   : > { %v872_v59 = vsel %vm870_vm1, %v637_v53, -inf  ;;  %v900_v62 = vsel %vm870_vm1, %v751_v58, -inf }
 0x1c7   : > { %v871_v61 = vsel %vm870_vm1, %v636_v57, -inf  ;;  %v902_v0 = vmax.f32 %v900_v62, %v901_v60 }
 0x1c8   : > { %v873_v63 = vmax.f32 %v871_v61, %v872_v59 }
 0x1c9   : > { %v903_v2 = vrot.slane %v902_v0, 4 }
 0x1ca   : > { %v874_v1 = vrot.slane %v873_v63, 4 }
 0x1cb   : > { %v904_v4 = vmax.f32 %v902_v0, %v903_v2  ;;  %v224_v2 = vld [vmem:[#allocation7 + $0x30] sm:$0xff] }
 0x1cc   : > { %v875_v3 = vmax.f32 %v873_v63, %v874_v1  ;;  %v223_v63 = vld [vmem:[#allocation7 + $0x28] sm:$0xff] }
 0x1cd   : > { %v905_v6 = vrot.slane %v904_v4, 2 }
 0x1ce   : > { %v876_v5 = vrot.slane %v875_v3, 2 }
 0x1cf   : > { %v906_v8 = vmax.f32 %v904_v4, %v905_v6  ;;  %v868_v4 = vld [vmem:[#allocation5] sm:$0xff]  ;;  %v225_v6 = vld [vmem:[#allocation7 + $0x38] sm:$0xff] }
 0x1d0   : > { %v877_v7 = vmax.f32 %v875_v3, %v876_v5  ;;  %v869_v5 = vld [vmem:[#allocation5 + $0x8] sm:$0xff] }
 0x1d1   : > { %v907_v10 = vrot.slane %v906_v8, 1 }
 0x1d2   : > { %v878_v9 = vrot.slane %v877_v7, 1 }
 0x1d3   : > { %v908_v12 = vmax.f32 %v906_v8, %v907_v10 }
 0x1d4   : > { %v879_v11 = vmax.f32 %v877_v7, %v878_v9  ;;  %v220_v9 = vld [vmem:[#allocation7 + $0x10] sm:$0xff] }
 0x1d5   : > { %v909_v15 = vsub.f32 %v751_v58, %v908_v12  ;;  %v910_v16 = vsub.f32 %v752_v54, %v908_v12  ;;  %v222_v58 = vld [vmem:[#allocation7 + $0x20] sm:$0xff]  ;;  %294 = vperm.xlu0 %4229, %v220_v9   ;;  %v969_v9 = vld [vmem:[%s4656_s5 + $0x2d8] sm:$0xff] }
 0x1d6   : > { %v880_v13 = vsub.f32 %v636_v57, %v879_v11  ;;  %v881_v14 = vsub.f32 %v637_v53, %v879_v11  ;;  %304 = vperm.xlu1 %4228, %v222_v58   ;;  %v961_v58 = vld [vmem:[%s4656_s5 + $0x298] sm:$0xff] }
 0x1d7   : > { %v911_v19 = vmul.f32 1.442695, %v909_v15  ;;  %v913_v20 = vmul.f32 1.442695, %v910_v16  ;;  %v226_v15 = vld [vmem:[#allocation7 + $0x40] sm:$0xff] }
 0x1d8   : > { %v882_v17 = vmul.f32 1.442695, %v880_v13  ;;  %v884_v18 = vmul.f32 1.442695, %v881_v14 }
 0x1da   : > { %4230 = vpow2.f32 %v882_v17  ;;  %309 = vperm.xlu1 %4228, %v223_v63   ;;  %v963_v63 = vld [vmem:[%s4656_s5 + $0x2a8] sm:$0xff] }
 0x1db   : > { %4232 = vpow2.f32 %v884_v18 }
 0x1dc   : > { %4234 = vpow2.f32 %v911_v19 }
 0x1dd   : > { %4236 = vpow2.f32 %v913_v20 }
 0x1de   : > { %314 = vperm.xlu1 %4228, %v224_v2   ;;  %v1367_v2 = vld [vmem:[%s4656_s5 + $0x8c0] sm:$0xff] }
 0x1e2   : > { %319 = vperm.xlu1 %4228, %v225_v6  }
 0x1e3   : > { %v3627_v21 = vpop.f32.mrb[2].mxu0 }
 0x1e4   : > { %v4231_v22 = vpop.eup %4230  ;;  %v867_v23 = vmul.f32 0.015625, %v3627_v21  ;;  %v857_v24 = vpop.f32.mrb[3].mxu0 }
 0x1e5   : > { %v4233_v25 = vpop.eup %4232  ;;  %v886_v26 = vsel %vm870_vm1, %v4231_v22, 0.0  ;;  %v866_v27 = vmul.f32 0.015625, %v857_v24 }
 0x1e6   : > { %v4775_v28 = vpop.eup %4234  ;;  %v887_v29 = vsel %vm870_vm1, %v4233_v25, 0.0  ;;  %v930_v30 = vsel %vm870_vm1, %v867_v23, -inf  ;;  %324 = vperm.xlu1 %4228, %v226_v15   ;;  %v975_v15 = vld [vmem:[%s4656_s5 + $0x308] sm:$0xff] }
 0x1e7   : > { %v4237_v31 = vpop.eup %4236  ;;  %v888_v32 = vadd.f32 %v887_v29, %v886_v26  ;;  %v915_v33 = vsel %vm870_vm1, %v4775_v28, 0.0  ;;  %v929_v34 = vsel %vm870_vm1, %v866_v27, -inf  ;;  %v228_v26 = vld [vmem:[#allocation7 + $0x50] sm:$0xff]  ;;  %v229_v29 = vld [vmem:[#allocation7 + $0x58] sm:$0xff] }
 0x1e8   : > { %v916_v36 = vsel %vm870_vm1, %v4237_v31, 0.0  ;;  %v931_v37 = vmax.f32 %v929_v34, %v930_v30  ;;  %v233_v34 = vld [vmem:[#allocation7 + $0x78] sm:$0xff] }
 0x1e9   : > { %v889_v39 = vrot.slane %v888_v32, 4  ;;  %v917_v40 = vadd.f32 %v916_v36, %v915_v33  ;;  %v230_v33 = vld [vmem:[#allocation7 + $0x60] sm:$0xff]  ;;  %v235_v36 = vld [vmem:[#allocation7 + $0x88] sm:$0xff] }
 0x1ea   : > { %v932_v41 = vrot.slane %v931_v37, 4 }
 0x1eb   : > { %v890_v42 = vadd.f32 %v889_v39, %v888_v32  ;;  %v918_v43 = vrot.slane %v917_v40, 4  ;;  %v231_v32 = vld [vmem:[#allocation7 + $0x68] sm:$0xff]  ;;  %v237_v39 = vld [vmem:[#allocation7 + $0x98] sm:$0xff] }
 0x1ec   : > { %v933_v45 = vmax.f32 %v931_v37, %v932_v41  ;;  %349 = vperm.xlu0 %4229, %v231_v32   ;;  %v234_v37 = vld [vmem:[#allocation7 + $0x80] sm:$0xff]  ;;  %v1383_v32 = vld [vmem:[%s4656_s5 + $0x840] sm:$0xff] }
 0x1ed   : > { %v891_v46 = vrot.slane %v890_v42, 2  ;;  %v919_v47 = vadd.f32 %v918_v43, %v917_v40  ;;  %v1351_v43 = vld [vmem:[%s4656_s5 + $0x140] sm:$0xff] }
 0x1ee   : > { %v934_v48 = vrot.slane %v933_v45, 2 }
 0x1ef   : > { %v892_v49 = vadd.f32 %v891_v46, %v890_v42  ;;  %v920_v50 = vrot.slane %v919_v47, 2  ;;  %v236_v42 = vld [vmem:[#allocation7 + $0x90] sm:$0xff] }
 0x1f0   : > { %v935_v52 = vmax.f32 %v933_v45, %v934_v48  ;;  %359 = vperm.xlu0 %4229, %v233_v34  }
 0x1f1   : > { %v893_v53 = vrot.slane %v892_v49, 1  ;;  %v921_v54 = vadd.f32 %v920_v50, %v919_v47  ;;  %v239_v47 = vld [vmem:[#allocation7 + $0xa8] sm:$0xff]  ;;  %v1353_v50 = vld [vmem:[%s4656_s5 + $0x150] sm:$0xff] }
 0x1f2   : > { %v936_v55 = vrot.slane %v935_v52, 1 }
 0x1f3   : > { %v894_v56 = vadd.f32 %v893_v53, %v892_v49  ;;  %v922_v57 = vrot.slane %v921_v54, 1  ;;  %v3950_v49 = vpack.c.bf16 %v1352_v44, %v1351_v43  ;;  %v959_v53 = vld [vmem:[%s4656_s5 + $0x288] sm:$0xff]  ;;  %v1389_v43 = vld [vmem:[%s4656_s5 + $0x870] sm:$0xff]  ;;  %v1390_v44 = vld [vmem:[%s4656_s5 + $0x878] sm:$0xff] }
 0x1f4   : > { %v937_v59 = vmax.f32 %v935_v52, %v936_v55  ;;  %369 = vperm.xlu0 %4229, %v235_v36   ;;  %v238_v52 = vld [vmem:[#allocation7 + $0xa0] sm:$0xff]  ;;  %v3954_v55 = vpack.c.bf16 %v1354_v51, %v1353_v50  ;;  %v1386_v36 = vld [vmem:[%s4656_s5 + $0x858] sm:$0xff] }
 0x1f5   : > { %4238 = vrcp.f32 %v894_v56  ;;  %v923_v60 = vadd.f32 %v922_v57, %v921_v54  ;;  %v960_v54 = vld [vmem:[%s4656_s5 + $0x290] sm:$0xff]  ;;  %v1355_v56 = vld [vmem:[%s4656_s5 + $0x160] sm:$0xff]  ;;  %v1356_v57 = vld [vmem:[%s4656_s5 + $0x168] sm:$0xff] }
 0x1f6   : > { %v938_v61 = vsub.f32 %v866_v27, %v937_v59  ;;  %v939_v62 = vsub.f32 %v867_v23, %v937_v59  ;;  %v227_v23 = vld [vmem:[#allocation7 + $0x48] sm:$0xff]  ;;  %v962_v59 = vld [vmem:[%s4656_s5 + $0x2a0] sm:$0xff] }
 0x1f7   : > { %4240 = vrcp.f32 %v923_v60  ;;  %329 = vperm.xlu1 %4228, %v227_v23   ;;  %v3958_v60 = vpack.c.bf16 %v1356_v57, %v1355_v56  ;;  %v2222_v50 = vld [vmem:[%s4656_s5 + $0x1d8] sm:$0xff]  ;;  %v2225_v57 = vld [vmem:[%s4656_s5 + $0x1f0] sm:$0xff] }
 0x1f8   : > { %v940_v0 = vmul.f32 1.442695, %v938_v61  ;;  %v942_v1 = vmul.f32 1.442695, %v939_v62  ;;  %379 = vperm.xlu0 %4229, %v237_v39   ;;  %v1357_v61 = vld [vmem:[%s4656_s5 + $0x170] sm:$0xff]  ;;  %v1358_v62 = vld [vmem:[%s4656_s5 + $0x178] sm:$0xff] }
 0x1fa   : > { %4242 = vpow2.f32 %v940_v0  ;;  %v964_v0 = vld [vmem:[%s4656_s5 + $0x2b0] sm:$0xff] }
 0x1fb   : > { %4244 = vpow2.f32 %v942_v1  ;;  %334 = vperm.xlu1 %4228, %v228_v26   ;;  %v3962_v1 = vpack.c.bf16 %v1358_v62, %v1357_v61  ;;  %v1371_v26 = vld [vmem:[%s4656_s5 + $0x8e0] sm:$0xff]  ;;  %v2236_v61 = vld [vmem:[%s4656_s5 + $0x948] sm:$0xff] }
 0x1fc   : > { %389 = vperm.xlu0 %4229, %v239_v47   ;;  %v2220_v47 = vld [vmem:[%s4656_s5 + $0x1c8] sm:$0xff] }
 0x1ff   : > { %v4239_v3 = vpop.eup %4238  ;;  %339 = vperm.xlu1 %4228, %v229_v29   ;;  %v1373_v29 = vld [vmem:[%s4656_s5 + $0x8f0] sm:$0xff] }
 0x200   : > { %v896_v7 = vmul.f32 %v4239_v3, %v4231_v22  ;;  %v897_v8 = vmul.f32 %v4239_v3, %v4233_v25  ;;  %v1368_v3 = vld [vmem:[%s4656_s5 + $0x8c8] sm:$0xff] }
 0x201   : > { %v4241_v10 = vpop.eup %4240  ;;  %v3966_v6 = vpack.c.bf16 %v1368_v3, %v1367_v2  ;;  %v2239_v3 = vld [vmem:[%s4656_s5 + $0x960] sm:$0xff] }
 0x202   : > { %v898_v11 = vadd.f32 %v896_v7, %v868_v4  ;;  %v899_v12 = vadd.f32 %v897_v8, %v869_v5  ;;  %v925_v13 = vmul.f32 %v4241_v10, %v4775_v28  ;;  %v926_v14 = vmul.f32 %v4241_v10, %v4237_v31  ;;  %v965_v4 = vld [vmem:[%s4656_s5 + $0x2b8] sm:$0xff]  ;;  %v966_v5 = vld [vmem:[%s4656_s5 + $0x2c0] sm:$0xff]  ;;  %v967_v7 = vld [vmem:[%s4656_s5 + $0x2c8] sm:$0xff] }
 0x203   : > { %344 = vperm.xlu1 %4228, %v230_v33   ;;  %v968_v8 = vld [vmem:[%s4656_s5 + $0x2d0] sm:$0xff]  ;;  %v970_v10 = vld [vmem:[%s4656_s5 + $0x2e0] sm:$0xff]  ;;  %v1384_v33 = vld [vmem:[%s4656_s5 + $0x848] sm:$0xff] }
 0x204   : > { %v4243_v16 = vpop.eup %4242  ;;  %v927_v17 = vadd.f32 %v925_v13, %v898_v11  ;;  %v928_v18 = vadd.f32 %v926_v14, %v899_v12  ;;  %v971_v11 = vld [vmem:[%s4656_s5 + $0x2e8] sm:$0xff]  ;;  %v972_v12 = vld [vmem:[%s4656_s5 + $0x2f0] sm:$0xff]  ;;  %v973_v13 = vld [vmem:[%s4656_s5 + $0x2f8] sm:$0xff]  ;;  %v3982_v34 = vpack.c.bf16 %v1384_v33, %v1383_v32 }
 0x205   : > { %v4245_v19 = vpop.eup %4244  ;;  %v944_v20 = vsel %vm870_vm1, %v4243_v16, 0.0  ;;  %v974_v14 = vld [vmem:[%s4656_s5 + $0x300] sm:$0xff]  ;;  %v984_v33 = vld [vmem:[%s4656_s5 + $0x350] sm:$0xff] }
 0x206   : > { %v945_v21 = vsel %vm870_vm1, %v4245_v19, 0.0 }
 0x207   : > { %v946_v22 = vadd.f32 %v945_v21, %v944_v20  ;;  %354 = vperm.xlu1 %4228, %v232_v35   ;;  %v979_v20 = vld [vmem:[%s4656_s5 + $0x328] sm:$0xff]  ;;  %v1369_v21 = vld [vmem:[%s4656_s5 + $0x8d0] sm:$0xff] }
 0x208   : > { %v1385_v35 = vld [vmem:[%s4656_s5 + $0x850] sm:$0xff] }
 0x209   : > { %v947_v24 = vrot.slane %v946_v22, 4 }
 0x20b   : > { %v948_v25 = vadd.f32 %v947_v24, %v946_v22  ;;  %364 = vperm.xlu1 %4228, %v234_v37   ;;  %v1370_v22 = vld [vmem:[%s4656_s5 + $0x8d8] sm:$0xff] }
 0x20c   : > { %v3970_v24 = vpack.c.bf16 %v1370_v22, %v1369_v21  ;;  %v2257_v21 = vld [vmem:[%s4656_s5 + $0x270] sm:$0xff]  ;;  %v2258_v22 = vld [vmem:[%s4656_s5 + $0x278] sm:$0xff] }
 0x20d   : > { %v949_v27 = vrot.slane %v948_v25, 2 }
 0x20f   : > { %v950_v28 = vadd.f32 %v949_v27, %v948_v25  ;;  %374 = vperm.xlu1 %4228, %v236_v42   ;;  %v1522_v25 = vpop.trf.xlu0  ;;  %v1372_v27 = vld [vmem:[%s4656_s5 + $0x8e8] sm:$0xff] }
 0x211   : > { %v951_v30 = vrot.slane %v950_v28, 1 }
 0x213   : > { %v952_v31 = vadd.f32 %v951_v30, %v950_v28  ;;  %384 = vperm.xlu1 %4228, %v238_v52   ;;  %v3974_v28 = vpack.c.bf16 %v1372_v27, %v1371_v26  ;;  %v1374_v30 = vld [vmem:[%s4656_s5 + $0x8f8] sm:$0xff]  ;;  %v1523_v37 = vpop.trf.xlu0 }
 0x214   : > { %v981_v26 = vld [vmem:[%s4656_s5 + $0x338] sm:$0xff] }
 0x215   : > { %4246 = vrcp.f32 %v952_v31  ;;  %v3978_v31 = vpack.c.bf16 %v1374_v30, %v1373_v29  ;;  %v982_v29 = vld [vmem:[%s4656_s5 + $0x340] sm:$0xff]  ;;  %v983_v30 = vld [vmem:[%s4656_s5 + $0x348] sm:$0xff] }
 0x21f   : > { %v4247_v38 = vpop.eup %4246 }
 0x220   : > { %v954_v40 = vmul.f32 %v4247_v38, %v4243_v16  ;;  %v955_v41 = vmul.f32 %v4247_v38, %v4245_v19  ;;  %v976_v16 = vld [vmem:[%s4656_s5 + $0x310] sm:$0xff]  ;;  %v1407_v19 = vpop.trf.xlu1  ;;  %v3986_v38 = vpack.c.bf16 %v1386_v36, %v1385_v35 }
 0x222   : > { %v956_v45 = vadd.f32 %v954_v40, %v927_v17  ;;  %v957_v46 = vadd.f32 %v955_v41, %v928_v18  ;;  %v977_v17 = vld [vmem:[%s4656_s5 + $0x318] sm:$0xff]  ;;  %v978_v18 = vld [vmem:[%s4656_s5 + $0x320] sm:$0xff]  ;;  %v1388_v41 = vld [vmem:[%s4656_s5 + $0x868] sm:$0xff] }
 0x223   : > { %v1387_v40 = vld [vmem:[%s4656_s5 + $0x860] sm:$0xff] }
 0x224   : > { %v3946_v48 = vpack.c.bf16 %v957_v46, %v956_v45  ;;  %v1408_v23 = vpop.trf.xlu1  ;;  %v3990_v42 = vpack.c.bf16 %v1388_v41, %v1387_v40  ;;  %v3994_v45 = vpack.c.bf16 %v1390_v44, %v1389_v43  ;;  %v2219_v46 = vld [vmem:[%s4656_s5 + $0x1c0] sm:$0xff]  ;;  %v988_v41 = vld [vmem:[%s4656_s5 + $0x370] sm:$0xff] }
 0x226   : > { %3947 = vmatprep.subr.bf16.mxu0 %v3946_v48  ;;  %4054 = vmatprep.subr.bf16.mxu1 %v3946_v48 }
 0x227   : > { %3949 = vmatpush3.bf16.msra.mxu0 %v3946_v48  ;;  %4055 = vmatpush3.bf16.msra.mxu1 %v3946_v48  ;;  %v4002_v48 = vpack.c.bf16 %v2220_v47, %v2219_v46 }
 0x228   : > { %3951 = vmatprep.subr.bf16.mxu0 %v3950_v49  ;;  %v1637_v39 = vpop.trf.xlu1 }
 0x22a   : > { %3633 = vmatmul.mubr.msk.f32.vlgmr.msra.gmra.mrb[4].mxu0 %vm870_vm1, %v959_v53  ;;  %v2223_v53 = vld [vmem:[%s4656_s5 + $0x1e0] sm:$0xff] }
 0x22b   : > { %3635 = vmatprep.mubr.msk.f32.mxu0 %vm870_vm1, %v960_v54  ;;  %3953 = vmatpush3.bf16.msra.mxu0 %v3950_v49  ;;  %v2221_v49 = vld [vmem:[%s4656_s5 + $0x1d0] sm:$0xff]  ;;  %v2224_v54 = vld [vmem:[%s4656_s5 + $0x1e8] sm:$0xff] }
 0x22c   : > { %3955 = vmatprep.subr.bf16.mxu0 %v3954_v55  ;;  %v1638_v51 = vpop.trf.xlu1  ;;  %v4006_v52 = vpack.c.bf16 %v2222_v50, %v2221_v49  ;;  %v4010_v56 = vpack.c.bf16 %v2224_v54, %v2223_v53 }
 0x22e   : > { %3636 = vmatmul.mubr.msk.f32.gmra.mrb[6].mxu0 %vm870_vm1, %v961_v58  ;;  %v2226_v58 = vld [vmem:[%s4656_s5 + $0x1f8] sm:$0xff] }
 0x22f   : > { %3638 = vmatprep.mubr.msk.f32.mxu0 %vm870_vm1, %v962_v59  ;;  %3957 = vmatpush3.bf16.msra.mxu0 %v3954_v55  ;;  %v2275_v55 = vpop.trf.xlu0  ;;  %v4014_v59 = vpack.c.bf16 %v2226_v58, %v2225_v57 }
 0x230   : > { %3959 = vmatprep.subr.bf16.mxu0 %v3958_v60 }
 0x232   : > { %3639 = vmatmul.mubr.msk.f32.gmra.mrb[8].mxu0 %vm870_vm1, %v963_v63  ;;  %v2237_v63 = vld [vmem:[%s4656_s5 + $0x950] sm:$0xff] }
 0x233   : > { %3641 = vmatprep.mubr.msk.f32.mxu0 %vm870_vm1, %v964_v0  ;;  %3961 = vmatpush3.bf16.msra.mxu0 %v3958_v60  ;;  %v2235_v60 = vld [vmem:[%s4656_s5 + $0x940] sm:$0xff]  ;;  %v2238_v0 = vld [vmem:[%s4656_s5 + $0x958] sm:$0xff] }
 0x234   : > { %3963 = vmatprep.subr.bf16.mxu0 %v3962_v1  ;;  %v4018_v62 = vpack.c.bf16 %v2236_v61, %v2235_v60  ;;  %v4022_v2 = vpack.c.bf16 %v2238_v0, %v2237_v63 }
 0x236   : > { %3642 = vmatmul.mubr.msk.f32.gmra.mrb[10].mxu0 %vm870_vm1, %v965_v4  ;;  %v2240_v4 = vld [vmem:[%s4656_s5 + $0x968] sm:$0xff] }
 0x237   : > { %3644 = vmatprep.mubr.msk.f32.mxu0 %vm870_vm1, %v966_v5  ;;  %3965 = vmatpush3.bf16.msra.mxu0 %v3962_v1  ;;  %v2276_v1 = vpop.trf.xlu0  ;;  %v2390_v5 = vpop.trf.xlu1 }
 0x238   : > { %3967 = vmatprep.subr.bf16.mxu0 %v3966_v6 }
 0x23a   : > { %3645 = vmatmul.mubr.msk.f32.gmra.mrb[12].mxu0 %vm870_vm1, %v967_v7  ;;  %v2241_v7 = vld [vmem:[%s4656_s5 + $0x970] sm:$0xff] }
 0x23b   : > { %3647 = vmatprep.mubr.msk.f32.mxu0 %vm870_vm1, %v968_v8  ;;  %v2242_v8 = vld [vmem:[%s4656_s5 + $0x978] sm:$0xff] }
 0x23e   : > { %3648 = vmatmul.mubr.msk.f32.gmra.mrb[14].mxu0 %vm870_vm1, %v969_v9  ;;  %v4030_v9 = vpack.c.bf16 %v2242_v8, %v2241_v7 }
 0x23f   : > { %3650 = vmatprep.mubr.msk.f32.mxu0 %vm870_vm1, %v970_v10  ;;  %v2251_v10 = vld [vmem:[%s4656_s5 + $0x240] sm:$0xff] }
 0x242   : > { %3651 = vmatmul.mubr.msk.f32.gmra.mrb[16].mxu0 %vm870_vm1, %v971_v11  ;;  %v2252_v11 = vld [vmem:[%s4656_s5 + $0x248] sm:$0xff] }
 0x243   : > { %3653 = vmatprep.mubr.msk.f32.mxu0 %vm870_vm1, %v972_v12  ;;  %v4034_v12 = vpack.c.bf16 %v2252_v11, %v2251_v10 }
 0x246   : > { %3654 = vmatmul.mubr.msk.f32.gmra.mrb[18].mxu0 %vm870_vm1, %v973_v13  ;;  %v2253_v13 = vld [vmem:[%s4656_s5 + $0x250] sm:$0xff] }
 0x247   : > { %3656 = vmatprep.mubr.msk.f32.mxu0 %vm870_vm1, %v974_v14  ;;  %v2254_v14 = vld [vmem:[%s4656_s5 + $0x258] sm:$0xff] }
 0x24a   : > { %3657 = vmatmul.mubr.msk.f32.gmra.mrb[20].mxu0 %vm870_vm1, %v975_v15  ;;  %v2391_v15 = vpop.trf.xlu1 }
 0x24b   : > { %3659 = vmatprep.mubr.msk.f32.mxu0 %vm870_vm1, %v976_v16  ;;  %v4038_v16 = vpack.c.bf16 %v2254_v14, %v2253_v13 }
 0x24e   : > { %3660 = vmatmul.mubr.msk.f32.gmra.mrb[22].mxu0 %vm870_vm1, %v977_v17  ;;  %v2255_v17 = vld [vmem:[%s4656_s5 + $0x260] sm:$0xff] }
 0x24f   : > { %3662 = vmatprep.mubr.msk.f32.mxu0 %vm870_vm1, %v978_v18  ;;  %v2256_v18 = vld [vmem:[%s4656_s5 + $0x268] sm:$0xff] }
 0x252   : > { %3663 = vmatmul.mubr.msk.f32.gmra.mrb[24].mxu0 %vm870_vm1, %v979_v20  ;;  %v4042_v20 = vpack.c.bf16 %v2256_v18, %v2255_v17 }
 0x253   : > { %3696 = vmatprep.mubr.msk.f32.mxu0 %vm554_vm0, %v1407_v19  ;;  %v2505_v19 = vpop.trf.xlu0 }
 0x256   : > { %3697 = vmatmul.mubr.msk.f32.vlgmr.msra.gmra.mrb[26].mxu0 %vm554_vm0, %v1408_v23  ;;  %v4046_v23 = vpack.c.bf16 %v2258_v22, %v2257_v21 }
 0x257   : > { %3969 = vmatpush3.bf16.msra.mxu0 %v3966_v6  ;;  %3715 = vmatprep.mubr.msk.f32.mxu0 %vm554_vm0, %v1522_v25  ;;  %v4026_v6 = vpack.c.bf16 %v2240_v4, %v2239_v3  ;;  %v980_v25 = vld [vmem:[%s4656_s5 + $0x330] sm:$0xff] }
 0x258   : > { %3971 = vmatprep.subr.bf16.mxu0 %v3970_v24  ;;  %3665 = vmatprep.mubr.msk.f32.mxu1 %vm870_vm1, %v980_v25 }
 0x259   : > { %3666 = vmatmul.mubr.msk.f32.vlgmr.msra.gmra.mrb[2].mxu1 %vm870_vm1, %v981_v26 }
 0x25a   : > { %3668 = vmatprep.mubr.msk.f32.mxu1 %vm870_vm1, %v982_v29 }
 0x25b   : > { %3973 = vmatpush3.bf16.msra.mxu0 %v3970_v24  ;;  %v2506_v24 = vpop.trf.xlu0 }
 0x25c   : > { %3975 = vmatprep.subr.bf16.mxu0 %v3974_v28 }
 0x25d   : > { %3669 = vmatmul.mubr.msk.f32.gmra.mrb[4].mxu1 %vm870_vm1, %v983_v30 }
 0x25e   : > { %3671 = vmatprep.mubr.msk.f32.mxu1 %vm870_vm1, %v984_v33 }
 0x25f   : > { %3977 = vmatpush3.bf16.msra.mxu0 %v3974_v28 }
 0x260   : > { %3979 = vmatprep.subr.bf16.mxu0 %v3978_v31 }
 0x263   : > { %3981 = vmatpush3.bf16.msra.mxu0 %v3978_v31 }
 0x264   : > { %3983 = vmatprep.subr.bf16.mxu0 %v3982_v34 }
 0x266   : > { %3716 = vmatmul.mubr.msk.f32.vlgmr.msra.gmra.mrb[28].mxu0 %vm554_vm0, %v1523_v37  ;;  %v986_v37 = vld [vmem:[%s4656_s5 + $0x360] sm:$0xff] }
 0x267   : > { %3985 = vmatpush3.bf16.msra.mxu0 %v3982_v34  ;;  %3734 = vmatprep.mubr.msk.f32.mxu0 %vm554_vm0, %v1637_v39  ;;  %v985_v34 = vld [vmem:[%s4656_s5 + $0x358] sm:$0xff] }
 0x268   : > { %3987 = vmatprep.subr.bf16.mxu0 %v3986_v38  ;;  %3672 = vmatmul.mubr.msk.f32.gmra.mrb[6].mxu1 %vm870_vm1, %v985_v34 }
 0x269   : > { %3674 = vmatprep.mubr.msk.f32.mxu1 %vm870_vm1, %v986_v37 }
 0x26b   : > { %3989 = vmatpush3.bf16.msra.mxu0 %v3986_v38  ;;  %v987_v38 = vld [vmem:[%s4656_s5 + $0x368] sm:$0xff] }
 0x26c   : > { %3991 = vmatprep.subr.bf16.mxu0 %v3990_v42  ;;  %3675 = vmatmul.mubr.msk.f32.gmra.mrb[8].mxu1 %vm870_vm1, %v987_v38 }
 0x26d   : > { %3677 = vmatprep.mubr.msk.f32.mxu1 %vm870_vm1, %v988_v41 }
 0x26f   : > { %3993 = vmatpush3.bf16.msra.mxu0 %v3990_v42  ;;  %v989_v42 = vld [vmem:[%s4656_s5 + $0x378] sm:$0xff] }
 0x270   : > { %3995 = vmatprep.subr.bf16.mxu0 %v3994_v45  ;;  %3678 = vmatmul.mubr.msk.f32.gmra.mrb[10].mxu1 %vm870_vm1, %v989_v42 }
 0x273   : > { %3997 = vmatpush3.bf16.msra.mxu0 %v3994_v45  ;;  %v1826_v45 = vld [vmem:[%s4656_s5 + $0x380] sm:$0xff] }
 0x274   : > { %4003 = vmatprep.subr.bf16.mxu0 %v4002_v48  ;;  %3741 = vmatprep.mubr.msk.f32.mxu1 %vm870_vm1, %v1826_v45 }
 0x276   : > { %3735 = vmatmul.mubr.msk.f32.vlgmr.msra.gmra.mrb[30].mxu0 %vm554_vm0, %v1638_v51 }
 0x277   : > { %4005 = vmatpush3.bf16.msra.mxu0 %v4002_v48  ;;  %3805 = vmatprep.mubr.msk.f32.mxu0 %vm554_vm0, %v2275_v55 }
 0x278   : > { %4007 = vmatprep.subr.bf16.mxu0 %v4006_v52 }
 0x27b   : > { %4009 = vmatpush3.bf16.msra.mxu0 %v4006_v52 }
 0x27c   : > { %4011 = vmatprep.subr.bf16.mxu0 %v4010_v56 }
 0x27f   : > { %4013 = vmatpush3.bf16.msra.mxu0 %v4010_v56 }
 0x280   : > { %4015 = vmatprep.subr.bf16.mxu0 %v4014_v59 }
 0x283   : > { %4017 = vmatpush3.bf16.msra.mxu0 %v4014_v59 }
 0x284   : > { %4019 = vmatprep.subr.bf16.mxu0 %v4018_v62 }
 0x286   : > { %3806 = vmatmul.mubr.msk.f32.vlgmr.msra.gmra.mrb[32].mxu0 %vm554_vm0, %v2276_v1 }
 0x287   : > { %4021 = vmatpush3.bf16.msra.mxu0 %v4018_v62  ;;  %3824 = vmatprep.mubr.msk.f32.mxu0 %vm554_vm0, %v2390_v5 }
 0x288   : > { %4023 = vmatprep.subr.bf16.mxu0 %v4022_v2 }
 0x28b   : > { %4025 = vmatpush3.bf16.msra.mxu0 %v4022_v2 }
 0x28c   : > { %4027 = vmatprep.subr.bf16.mxu0 %v4026_v6 }
 0x28f   : > { %4029 = vmatpush3.bf16.msra.mxu0 %v4026_v6 }
 0x290   : > { %4031 = vmatprep.subr.bf16.mxu0 %v4030_v9 }
 0x293   : > { %4033 = vmatpush3.bf16.msra.mxu0 %v4030_v9 }
 0x294   : > { %4035 = vmatprep.subr.bf16.mxu0 %v4034_v12 }
 0x296   : > { %3825 = vmatmul.mubr.msk.f32.vlgmr.msra.gmra.mrb[34].mxu0 %vm554_vm0, %v2391_v15 }
 0x297   : > { %4037 = vmatpush3.bf16.msra.mxu0 %v4034_v12  ;;  %3843 = vmatprep.mubr.msk.f32.mxu0 %vm554_vm0, %v2505_v19 }
 0x298   : > { %4039 = vmatprep.subr.bf16.mxu0 %v4038_v16 }
 0x29b   : > { %4041 = vmatpush3.bf16.msra.mxu0 %v4038_v16 }
 0x29c   : > { %4043 = vmatprep.subr.bf16.mxu0 %v4042_v20 }
 0x29f   : > { %4045 = vmatpush3.bf16.msra.mxu0 %v4042_v20 }
 0x2a0   : > { %4047 = vmatprep.subr.bf16.mxu0 %v4046_v23 }
 0x2a3   : > { %4049 = vmatpush3.bf16.msra.mxu0 %v4046_v23 }
 0x2a6   : > { %3844 = vmatmul.mubr.msk.f32.vlgmr.msra.gmra.mrb[36].mxu0 %vm554_vm0, %v2506_v24 }
 0x2fd   : > { %v4892_v27 = vpop.f32.mrb[4].mxu0 }
 0x2fe   : > { %v4894_v28 = vpop.f32.mrb[5].mxu0 }
 0x301   : > { %v4900_v31 = vpop.f32.mrb[6].mxu0 }
 0x302   : > { %v4902_v32 = vpop.f32.mrb[7].mxu0 }
 0x305   : > { %v4908_v35 = vpop.f32.mrb[8].mxu0 }
 0x306   : > { %v4910_v36 = vpop.f32.mrb[9].mxu0 }
 0x309   : > { %v4916_v39 = vpop.f32.mrb[10].mxu0 }
 0x30a   : > { %v4918_v40 = vpop.f32.mrb[11].mxu0 }
 0x30d   : > { %v4924_v43 = vpop.f32.mrb[12].mxu0 }
 0x30e   : > { %v4926_v44 = vpop.f32.mrb[13].mxu0 }
 0x311   : > { %v4930_v46 = vpop.f32.mrb[14].mxu0 }
 0x312   : > { %v4932_v47 = vpop.f32.mrb[15].mxu0 }
 0x315   : > { %v4934_v48 = vpop.f32.mrb[16].mxu0 }
 0x316   : > { %v4936_v49 = vpop.f32.mrb[17].mxu0 }
 0x319   : > { %v4938_v50 = vpop.f32.mrb[18].mxu0 }
 0x31a   : > { %v4940_v51 = vpop.f32.mrb[19].mxu0 }
 0x31d   : > { %v4942_v52 = vpop.f32.mrb[20].mxu0 }
 0x31e   : > { %v4944_v53 = vpop.f32.mrb[21].mxu0 }
 0x321   : > { %v4946_v54 = vpop.f32.mrb[22].mxu0 }
 0x322   : > { %v4948_v55 = vpop.f32.mrb[23].mxu0 }
 0x325   : > { %v4950_v56 = vpop.f32.mrb[24].mxu0 }
 0x326   : > { %v4952_v57 = vpop.f32.mrb[25].mxu0 }
 0x329   : > { %v3698_v58 = vpop.f32.mrb[26].mxu0 }
 0x32a   : > { %v1505_v59 = vmul.f32 0.015625, %v3698_v58  ;;  %v1495_v60 = vpop.f32.mrb[27].mxu0 }
 0x32b   : > { %v1504_v61 = vmul.f32 0.015625, %v1495_v60 }
 0x32c   : > { %v1740_v62 = vsel %vm870_vm1, %v1505_v59, -inf }
 0x32d   : > { %v1739_v63 = vsel %vm870_vm1, %v1504_v61, -inf }
 0x32e   : > { %v1741_v0 = vmax.f32 %v1739_v63, %v1740_v62 }
 0x330   : > { %v1742_v1 = vrot.slane %v1741_v0, 4 }
 0x332   : > { %v1743_v2 = vmax.f32 %v1741_v0, %v1742_v1 }
 0x334   : > { %v1744_v3 = vrot.slane %v1743_v2, 2 }
 0x336   : > { %v1745_v4 = vmax.f32 %v1743_v2, %v1744_v3 }
 0x338   : > { %v1746_v5 = vrot.slane %v1745_v4, 1 }
 0x339   : > { %v3717_v6 = vpop.f32.mrb[28].mxu0 }
 0x33a   : > { %v1747_v7 = vmax.f32 %v1745_v4, %v1746_v5  ;;  %v1620_v8 = vmul.f32 0.015625, %v3717_v6  ;;  %v1610_v9 = vpop.f32.mrb[29].mxu0 }
 0x33b   : > { %v1619_v10 = vmul.f32 0.015625, %v1610_v9 }
 0x33c   : > { %v1748_v11 = vsub.f32 %v1504_v61, %v1747_v7  ;;  %v1749_v12 = vsub.f32 %v1505_v59, %v1747_v7  ;;  %v1769_v13 = vsel %vm870_vm1, %v1620_v8, -inf }
 0x33d   : > { %v1768_v14 = vsel %vm870_vm1, %v1619_v10, -inf }
 0x33e   : > { %v1750_v15 = vmul.f32 1.442695, %v1748_v11  ;;  %v1752_v16 = vmul.f32 1.442695, %v1749_v12  ;;  %v1770_v17 = vmax.f32 %v1768_v14, %v1769_v13 }
 0x340   : > { %4248 = vpow2.f32 %v1750_v15  ;;  %v1771_v18 = vrot.slane %v1770_v17, 4 }
 0x341   : > { %4250 = vpow2.f32 %v1752_v16 }
 0x342   : > { %v1772_v19 = vmax.f32 %v1770_v17, %v1771_v18 }
 0x344   : > { %v1773_v20 = vrot.slane %v1772_v19, 2 }
 0x346   : > { %v1774_v21 = vmax.f32 %v1772_v19, %v1773_v20 }
 0x348   : > { %v1775_v22 = vrot.slane %v1774_v21, 1 }
 0x349   : > { %v3736_v23 = vpop.f32.mrb[30].mxu0 }
 0x34a   : > { %v4249_v24 = vpop.eup %4248  ;;  %v1776_v25 = vmax.f32 %v1774_v21, %v1775_v22  ;;  %v1735_v26 = vmul.f32 0.015625, %v3736_v23  ;;  %v1725_v29 = vpop.f32.mrb[31].mxu0 }
 0x34b   : > { %v4251_v30 = vpop.eup %4250  ;;  %v1754_v33 = vsel %vm870_vm1, %v4249_v24, 0.0  ;;  %v1734_v34 = vmul.f32 0.015625, %v1725_v29 }
 0x34c   : > { %v1755_v37 = vsel %vm870_vm1, %v4251_v30, 0.0  ;;  %v1777_v38 = vsub.f32 %v1619_v10, %v1776_v25  ;;  %v1778_v41 = vsub.f32 %v1620_v8, %v1776_v25  ;;  %v1798_v42 = vsel %vm870_vm1, %v1735_v26, -inf }
 0x34d   : > { %v1756_v45 = vadd.f32 %v1755_v37, %v1754_v33  ;;  %v1797_v58 = vsel %vm870_vm1, %v1734_v34, -inf }
 0x34e   : > { %v1779_v59 = vmul.f32 1.442695, %v1777_v38  ;;  %v1781_v60 = vmul.f32 1.442695, %v1778_v41  ;;  %v1799_v61 = vmax.f32 %v1797_v58, %v1798_v42 }
 0x34f   : > { %v1757_v62 = vrot.slane %v1756_v45, 4 }
 0x350   : > { %4252 = vpow2.f32 %v1779_v59  ;;  %v1800_v63 = vrot.slane %v1799_v61, 4 }
 0x351   : > { %v1758_v0 = vadd.f32 %v1757_v62, %v1756_v45  ;;  %4254 = vpow2.f32 %v1781_v60 }
 0x352   : > { %v1801_v1 = vmax.f32 %v1799_v61, %v1800_v63 }
 0x353   : > { %v1759_v2 = vrot.slane %v1758_v0, 2 }
 0x354   : > { %v1802_v3 = vrot.slane %v1801_v1, 2 }
 0x355   : > { %v1760_v4 = vadd.f32 %v1759_v2, %v1758_v0 }
 0x356   : > { %v1803_v5 = vmax.f32 %v1801_v1, %v1802_v3 }
 0x357   : > { %v1761_v6 = vrot.slane %v1760_v4, 1 }
 0x358   : > { %v1804_v7 = vrot.slane %v1803_v5, 1 }
 0x359   : > { %v1762_v8 = vadd.f32 %v1761_v6, %v1760_v4  ;;  %v3807_v9 = vpop.f32.mrb[32].mxu0 }
 0x35a   : > { %v4962_v10 = vpop.eup %4252  ;;  %v1805_v11 = vmax.f32 %v1803_v5, %v1804_v7  ;;  %v2373_v12 = vmul.f32 0.015625, %v3807_v9  ;;  %v2363_v13 = vpop.f32.mrb[33].mxu0 }
 0x35b   : > { %v4964_v14 = vpop.eup %4254  ;;  %4256 = vrcp.f32 %v1762_v8  ;;  %v1783_v15 = vsel %vm870_vm1, %v4962_v10, 0.0  ;;  %v2372_v16 = vmul.f32 0.015625, %v2363_v13 }
 0x35c   : > { %v1784_v17 = vsel %vm870_vm1, %v4964_v14, 0.0  ;;  %v1806_v18 = vsub.f32 %v1734_v34, %v1805_v11  ;;  %v1807_v19 = vsub.f32 %v1735_v26, %v1805_v11  ;;  %v2608_v20 = vsel %vm870_vm1, %v2373_v12, -inf }
 0x35d   : > { %v1785_v21 = vadd.f32 %v1784_v17, %v1783_v15  ;;  %v2607_v22 = vsel %vm870_vm1, %v2372_v16, -inf }
 0x35e   : > { %v1808_v23 = vmul.f32 1.442695, %v1806_v18  ;;  %v1810_v25 = vmul.f32 1.442695, %v1807_v19  ;;  %v2609_v29 = vmax.f32 %v2607_v22, %v2608_v20 }
 0x35f   : > { %v1786_v33 = vrot.slane %v1785_v21, 4 }
 0x360   : > { %4258 = vpow2.f32 %v1808_v23  ;;  %v2610_v37 = vrot.slane %v2609_v29, 4  ;;  %v1737_v23 = vld [vmem:[#allocation5 + $0x10] sm:$0xff] }
 0x361   : > { %v1787_v38 = vadd.f32 %v1786_v33, %v1785_v21  ;;  %4260 = vpow2.f32 %v1810_v25 }
 0x362   : > { %v2611_v41 = vmax.f32 %v2609_v29, %v2610_v37  ;;  %v1738_v29 = vld [vmem:[#allocation5 + $0x18] sm:$0xff] }
 0x363   : > { %v1788_v42 = vrot.slane %v1787_v38, 2 }
 0x364   : > { %v2612_v45 = vrot.slane %v2611_v41, 2 }
 0x365   : > { %v4257_v58 = vpop.eup %4256  ;;  %v1789_v59 = vadd.f32 %v1788_v42, %v1787_v38 }
 0x366   : > { %v2613_v34 = vmax.f32 %v2611_v41, %v2612_v45  ;;  %v1764_v26 = vmul.f32 %v4257_v58, %v4249_v24  ;;  %v1765_v60 = vmul.f32 %v4257_v58, %v4251_v30 }
 0x367   : > { %v1790_v61 = vrot.slane %v1789_v59, 1 }
 0x368   : > { %v2614_v62 = vrot.slane %v2613_v34, 1  ;;  %v1766_v37 = vadd.f32 %v1764_v26, %v1737_v23  ;;  %v1767_v41 = vadd.f32 %v1765_v60, %v1738_v29  ;;  %v242_v23 = vld [vmem:[#allocation7 + $0xc0] sm:$0xff] }
 0x369   : > { %v3826_v63 = vpop.f32.mrb[34].mxu0  ;;  %v1791_v0 = vadd.f32 %v1790_v61, %v1789_v59 }
 0x36a   : > { %v4972_v1 = vpop.eup %4258  ;;  %v2615_v2 = vmax.f32 %v2613_v34, %v2614_v62  ;;  %v2488_v3 = vmul.f32 0.015625, %v3826_v63  ;;  %v2478_v4 = vpop.f32.mrb[35].mxu0 }
 0x36b   : > { %v4974_v5 = vpop.eup %4260  ;;  %v1812_v6 = vsel %vm870_vm1, %v4972_v1, 0.0  ;;  %v2487_v7 = vmul.f32 0.015625, %v2478_v4  ;;  %4262 = vrcp.f32 %v1791_v0 }
 0x36c   : > { %v1813_v24 = vsel %vm870_vm1, %v4974_v5, 0.0  ;;  %v2616_v30 = vsub.f32 %v2372_v16, %v2615_v2  ;;  %v2617_v8 = vsub.f32 %v2373_v12, %v2615_v2  ;;  %v2637_v9 = vsel %vm870_vm1, %v2488_v3, -inf }
 0x36d   : > { %v1814_v11 = vadd.f32 %v1813_v24, %v1812_v6  ;;  %v2636_v13 = vsel %vm870_vm1, %v2487_v7, -inf }
 0x36e   : > { %v2618_v15 = vmul.f32 1.442695, %v2616_v30  ;;  %v2620_v17 = vmul.f32 1.442695, %v2617_v8  ;;  %v2638_v18 = vmax.f32 %v2636_v13, %v2637_v9 }
 0x36f   : > { %v1815_v19 = vrot.slane %v1814_v11, 4 }
 0x370   : > { %4264 = vpow2.f32 %v2618_v15  ;;  %v2639_v20 = vrot.slane %v2638_v18, 4 }
 0x371   : > { %v1816_v21 = vadd.f32 %v1815_v19, %v1814_v11  ;;  %4266 = vpow2.f32 %v2620_v17 }
 0x372   : > { %v2640_v22 = vmax.f32 %v2638_v18, %v2639_v20  ;;  %v240_v18 = vld [vmem:[#allocation7 + $0xb0] sm:$0xff] }
 0x373   : > { %v1817_v25 = vrot.slane %v1816_v21, 2  ;;  %394 = vperm.xlu1 %4228, %v240_v18   ;;  %v245_v18 = vld [vmem:[#allocation7 + $0xd8] sm:$0xff] }
 0x374   : > { %v2641_v33 = vrot.slane %v2640_v22, 2 }
 0x375   : > { %v4263_v16 = vpop.eup %4262  ;;  %v1818_v12 = vadd.f32 %v1817_v25, %v1816_v21 }
 0x376   : > { %v2642_v38 = vmax.f32 %v2640_v22, %v2641_v33  ;;  %v1793_v42 = vmul.f32 %v4263_v16, %v4962_v10  ;;  %v1794_v45 = vmul.f32 %v4263_v16, %v4964_v14 }
 0x377   : > { %v1819_v58 = vrot.slane %v1818_v12, 1  ;;  %404 = vperm.xlu1 %4228, %v242_v23   ;;  %v1832_v23 = vld [vmem:[%s4656_s5 + $0x3b0] sm:$0xff] }
 0x378   : > { %v2643_v59 = vrot.slane %v2642_v38, 1  ;;  %v1795_v34 = vadd.f32 %v1793_v42, %v1766_v37  ;;  %v1796_v61 = vadd.f32 %v1794_v45, %v1767_v41  ;;  %v244_v37 = vld [vmem:[#allocation7 + $0xd0] sm:$0xff] }
 0x379   : > { %v3845_v62 = vpop.f32.mrb[36].mxu0  ;;  %v1820_v63 = vadd.f32 %v1819_v58, %v1818_v12 }
 0x37a   : > { %v4984_v0 = vpop.eup %4264  ;;  %v2644_v2 = vmax.f32 %v2642_v38, %v2643_v59  ;;  %v2603_v4 = vmul.f32 0.015625, %v3845_v62  ;;  %v2593_v6 = vpop.f32.mrb[37].mxu0 }
 0x37b   : > { %v4986_v24 = vpop.eup %4266  ;;  %v2622_v26 = vsel %vm870_vm1, %v4984_v0, 0.0  ;;  %v2602_v60 = vmul.f32 0.015625, %v2593_v6  ;;  %4268 = vrcp.f32 %v1820_v63  ;;  %414 = vperm.xlu1 %4228, %v244_v37   ;;  %v1834_v37 = vld [vmem:[%s4656_s5 + $0x3c0] sm:$0xff] }
 0x37c   : > { %v2623_v10 = vsel %vm870_vm1, %v4986_v24, 0.0  ;;  %v2645_v14 = vsub.f32 %v2487_v7, %v2644_v2  ;;  %v2646_v30 = vsub.f32 %v2488_v3, %v2644_v2  ;;  %v2666_v8 = vsel %vm870_vm1, %v2603_v4, -inf  ;;  %v246_v2 = vld [vmem:[#allocation7 + $0xe0] sm:$0xff] }
 0x37d   : > { %v2624_v9 = vadd.f32 %v2623_v10, %v2622_v26  ;;  %v2665_v11 = vsel %vm870_vm1, %v2602_v60, -inf  ;;  %v248_v26 = vld [vmem:[#allocation7 + $0xf0] sm:$0xff]  ;;  %v241_v10 = vld [vmem:[#allocation7 + $0xb8] sm:$0xff] }
 0x37e   : > { %v2647_v13 = vmul.f32 1.442695, %v2645_v14  ;;  %v2649_v15 = vmul.f32 1.442695, %v2646_v30  ;;  %v2667_v17 = vmax.f32 %v2665_v11, %v2666_v8  ;;  %v1827_v30 = vld [vmem:[%s4656_s5 + $0x388] sm:$0xff]  ;;  %399 = vperm.xlu0 %4229, %v241_v10   ;;  %v1828_v11 = vld [vmem:[%s4656_s5 + $0x390] sm:$0xff] }
 0x37f   : > { %v2625_v19 = vrot.slane %v2624_v9, 4  ;;  %424 = vperm.xlu1 %4228, %v246_v2   ;;  %v1837_v2 = vld [vmem:[%s4656_s5 + $0x3d8] sm:$0xff] }
 0x380   : > { %4270 = vpow2.f32 %v2647_v13  ;;  %v2668_v20 = vrot.slane %v2667_v17, 4  ;;  %v243_v13 = vld [vmem:[#allocation7 + $0xc8] sm:$0xff] }
 0x381   : > { %v2626_v21 = vadd.f32 %v2625_v19, %v2624_v9  ;;  %4272 = vpow2.f32 %v2649_v15 }
 0x382   : > { %v2669_v22 = vmax.f32 %v2667_v17, %v2668_v20  ;;  %409 = vperm.xlu0 %4229, %v243_v13   ;;  %v1830_v17 = vld [vmem:[%s4656_s5 + $0x3a0] sm:$0xff] }
 0x383   : > { %v2627_v25 = vrot.slane %v2626_v21, 2  ;;  %434 = vperm.xlu1 %4228, %v248_v26  }
 0x384   : > { %v2670_v3 = vrot.slane %v2669_v22, 2 }
 0x385   : > { %v4269_v7 = vpop.eup %4268  ;;  %v2628_v29 = vadd.f32 %v2627_v25, %v2626_v21 }
 0x386   : > { %v2671_v33 = vmax.f32 %v2669_v22, %v2670_v3  ;;  %v1822_v16 = vmul.f32 %v4269_v7, %v4972_v1  ;;  %v1823_v12 = vmul.f32 %v4269_v7, %v4974_v5  ;;  %v1831_v22 = vld [vmem:[%s4656_s5 + $0x3a8] sm:$0xff]  ;;  %419 = vperm.xlu0 %4229, %v245_v18   ;;  %v247_v7 = vld [vmem:[#allocation7 + $0xe8] sm:$0xff] }
 0x387   : > { %v2629_v38 = vrot.slane %v2628_v29, 1 }
 0x388   : > { %v2672_v41 = vrot.slane %v2671_v33, 1  ;;  %v1824_v42 = vadd.f32 %v1822_v16, %v1795_v34  ;;  %v1825_v45 = vadd.f32 %v1823_v12, %v1796_v61 }
 0x389   : > { %v2630_v58 = vadd.f32 %v2629_v38, %v2628_v29  ;;  %v249_v38 = vld [vmem:[#allocation7 + $0xf8] sm:$0xff] }
 0x38a   : > { %v4996_v59 = vpop.eup %4270  ;;  %v2673_v62 = vmax.f32 %v2671_v33, %v2672_v41  ;;  %v3998_v63 = vpack.c.bf16 %v1825_v45, %v1824_v42  ;;  %v1833_v33 = vld [vmem:[%s4656_s5 + $0x3b8] sm:$0xff]  ;;  %429 = vperm.xlu0 %4229, %v247_v7   ;;  %v1835_v45 = vld [vmem:[%s4656_s5 + $0x3c8] sm:$0xff] }
 0x38b   : > { %v4998_v6 = vpop.eup %4272  ;;  %4274 = vrcp.f32 %v2630_v58  ;;  %v2651_v1 = vsel %vm870_vm1, %v4996_v59, 0.0  ;;  %v1836_v58 = vld [vmem:[%s4656_s5 + $0x3d0] sm:$0xff] }
 0x38c   : > { %v2652_v5 = vsel %vm870_vm1, %v4998_v6, 0.0  ;;  %v2674_v34 = vsub.f32 %v2602_v60, %v2673_v62  ;;  %v2675_v61 = vsub.f32 %v2603_v4, %v2673_v62  ;;  %3999 = vmatprep.subr.bf16.mxu1 %v3998_v63  ;;  %v1829_v60 = vld [vmem:[%s4656_s5 + $0x398] sm:$0xff] }
 0x38d   : > { %v2653_v14 = vadd.f32 %v2652_v5, %v2651_v1  ;;  %4001 = vmatpush3.bf16.msra.mxu1 %v3998_v63  ;;  %v1838_v1 = vld [vmem:[%s4656_s5 + $0x3e0] sm:$0xff] }
 0x38e   : > { %v2676_v8 = vmul.f32 1.442695, %v2674_v34  ;;  %v2678_v9 = vmul.f32 1.442695, %v2675_v61  ;;  %439 = vperm.xlu0 %4229, %v249_v38   ;;  %v2605_v34 = vld [vmem:[#allocation5 + $0x20] sm:$0xff]  ;;  %v2606_v61 = vld [vmem:[#allocation5 + $0x28] sm:$0xff] }
 0x38f   : > { %v2654_v15 = vrot.slane %v2653_v14, 4  ;;  %v1850_v38 = vld [vmem:[%s4656_s5 + $0x440] sm:$0xff] }
 0x390   : > { %4276 = vpow2.f32 %v2676_v8  ;;  %3742 = vmatmul.mubr.msk.f32.vlgmr.msra.gmra.mrb[12].mxu1 %vm870_vm1, %v1827_v30  ;;  %v1840_v30 = vld [vmem:[%s4656_s5 + $0x3f0] sm:$0xff] }
 0x391   : > { %v2655_v4 = vadd.f32 %v2654_v15, %v2653_v14  ;;  %4278 = vpow2.f32 %v2678_v9  ;;  %3744 = vmatprep.mubr.msk.f32.mxu1 %vm870_vm1, %v1828_v11  ;;  %v1839_v14 = vld [vmem:[%s4656_s5 + $0x3e8] sm:$0xff] }
 0x393   : > { %v2656_v19 = vrot.slane %v2655_v4, 2 }
 0x394   : > { %3745 = vmatmul.mubr.msk.f32.gmra.mrb[14].mxu1 %vm870_vm1, %v1829_v60 }
 0x395   : > { %v4275_v20 = vpop.eup %4274  ;;  %v2657_v21 = vadd.f32 %v2656_v19, %v2655_v4  ;;  %3747 = vmatprep.mubr.msk.f32.mxu1 %vm870_vm1, %v1830_v17  ;;  %v1841_v17 = vld [vmem:[%s4656_s5 + $0x3f8] sm:$0xff]  ;;  %v1842_v19 = vld [vmem:[%s4656_s5 + $0x400] sm:$0xff] }
 0x396   : > { %v2632_v25 = vmul.f32 %v4275_v20, %v4984_v0  ;;  %v2633_v3 = vmul.f32 %v4275_v20, %v4986_v24  ;;  %v1845_v20 = vld [vmem:[%s4656_s5 + $0x418] sm:$0xff] }
 0x397   : > { %v2658_v29 = vrot.slane %v2657_v21, 1 }
 0x398   : > { %3748 = vmatmul.mubr.msk.f32.gmra.mrb[16].mxu1 %vm870_vm1, %v1831_v22  ;;  %v2634_v8 = vadd.f32 %v2632_v25, %v2605_v34  ;;  %v2635_v9 = vadd.f32 %v2633_v3, %v2606_v61  ;;  %v1848_v25 = vld [vmem:[%s4656_s5 + $0x430] sm:$0xff]  ;;  %v2699_v34 = vld [vmem:[%s4656_s5 + $0x4a8] sm:$0xff] }
 0x399   : > { %3750 = vmatprep.mubr.msk.f32.mxu1 %vm870_vm1, %v1832_v23  ;;  %v2659_v16 = vadd.f32 %v2658_v29, %v2657_v21  ;;  %v1846_v21 = vld [vmem:[%s4656_s5 + $0x420] sm:$0xff]  ;;  %v1847_v23 = vld [vmem:[%s4656_s5 + $0x428] sm:$0xff]  ;;  %v2700_v61 = vld [vmem:[%s4656_s5 + $0x4b0] sm:$0xff] }
 0x39a   : > { %v4277_v12 = vpop.eup %4276 }
 0x39b   : > { %v4279_v41 = vpop.eup %4278  ;;  %v2680_v0 = vsel %vm870_vm1, %v4277_v12, 0.0  ;;  %4280 = vrcp.f32 %v2659_v16  ;;  %v1849_v16 = vld [vmem:[%s4656_s5 + $0x438] sm:$0xff] }
 0x39c   : > { %v2681_v24 = vsel %vm870_vm1, %v4279_v41, 0.0  ;;  %3751 = vmatmul.mubr.msk.f32.gmra.mrb[18].mxu1 %vm870_vm1, %v1833_v33 }
 0x39d   : > { %v2682_v42 = vadd.f32 %v2681_v24, %v2680_v0  ;;  %3753 = vmatprep.mubr.msk.f32.mxu1 %vm870_vm1, %v1834_v37  ;;  %v1853_v0 = vld [vmem:[%s4656_s5 + $0x458] sm:$0xff]  ;;  %v1854_v24 = vld [vmem:[%s4656_s5 + $0x460] sm:$0xff] }
 0x39f   : > { %v2683_v62 = vrot.slane %v2682_v42, 4 }
 0x3a0   : > { %3754 = vmatmul.mubr.msk.f32.gmra.mrb[20].mxu1 %vm870_vm1, %v1835_v45  ;;  %v1856_v45 = vld [vmem:[%s4656_s5 + $0x470] sm:$0xff] }
 0x3a1   : > { %v2684_v63 = vadd.f32 %v2683_v62, %v2682_v42  ;;  %3756 = vmatprep.mubr.msk.f32.mxu1 %vm870_vm1, %v1836_v58  ;;  %v1855_v42 = vld [vmem:[%s4656_s5 + $0x468] sm:$0xff]  ;;  %v1857_v58 = vld [vmem:[%s4656_s5 + $0x478] sm:$0xff]  ;;  %v2694_v62 = vld [vmem:[%s4656_s5 + $0x480] sm:$0xff] }
 0x3a3   : > { %v2685_v5 = vrot.slane %v2684_v63, 2 }
 0x3a4   : > { %3757 = vmatmul.mubr.msk.f32.gmra.mrb[22].mxu1 %vm870_vm1, %v1837_v2  ;;  %v2696_v2 = vld [vmem:[%s4656_s5 + $0x490] sm:$0xff] }
 0x3a5   : > { %v4281_v26 = vpop.eup %4280  ;;  %v2686_v10 = vadd.f32 %v2685_v5, %v2684_v63  ;;  %3759 = vmatprep.mubr.msk.f32.mxu1 %vm870_vm1, %v1838_v1  ;;  %v2695_v63 = vld [vmem:[%s4656_s5 + $0x488] sm:$0xff]  ;;  %v2697_v1 = vld [vmem:[%s4656_s5 + $0x498] sm:$0xff]  ;;  %v2698_v5 = vld [vmem:[%s4656_s5 + $0x4a0] sm:$0xff] }
 0x3a6   : > { %v2661_v11 = vmul.f32 %v4281_v26, %v4996_v59  ;;  %v2662_v13 = vmul.f32 %v4281_v26, %v4998_v6  ;;  %v1843_v59 = vld [vmem:[%s4656_s5 + $0x408] sm:$0xff]  ;;  %v1844_v6 = vld [vmem:[%s4656_s5 + $0x410] sm:$0xff]  ;;  %v2701_v26 = vld [vmem:[%s4656_s5 + $0x4b8] sm:$0xff] }
 0x3a7   : > { %v2687_v15 = vrot.slane %v2686_v10, 1 }
 0x3a8   : > { %3760 = vmatmul.mubr.msk.f32.gmra.mrb[24].mxu1 %vm870_vm1, %v1839_v14  ;;  %v2663_v4 = vadd.f32 %v2661_v11, %v2634_v8  ;;  %v2664_v60 = vadd.f32 %v2662_v13, %v2635_v9  ;;  %v2703_v14 = vld [vmem:[%s4656_s5 + $0x4c8] sm:$0xff]  ;;  %v2705_v8 = vld [vmem:[%s4656_s5 + $0x4d8] sm:$0xff]  ;;  %v2706_v9 = vld [vmem:[%s4656_s5 + $0x4e0] sm:$0xff] }
 0x3a9   : > { %3762 = vmatprep.mubr.msk.f32.mxu1 %vm870_vm1, %v1840_v30  ;;  %v2688_v18 = vadd.f32 %v2687_v15, %v2686_v10  ;;  %v2702_v10 = vld [vmem:[%s4656_s5 + $0x4c0] sm:$0xff]  ;;  %v2704_v30 = vld [vmem:[%s4656_s5 + $0x4d0] sm:$0xff]  ;;  %v2707_v11 = vld [vmem:[%s4656_s5 + $0x4e8] sm:$0xff] }
 0x3aa   : > { %v2708_v13 = vld [vmem:[%s4656_s5 + $0x4f0] sm:$0xff]  ;;  %v2709_v15 = vld [vmem:[%s4656_s5 + $0x4f8] sm:$0xff] }
 0x3ab   : > { %4282 = vrcp.f32 %v2688_v18  ;;  %v2713_v18 = vld [vmem:[%s4656_s5 + $0x518] sm:$0xff] }
 0x3ac   : > { %3763 = vmatmul.mubr.msk.f32.gmra.mrb[26].mxu1 %vm870_vm1, %v1841_v17  ;;  %v2712_v17 = vld [vmem:[%s4656_s5 + $0x510] sm:$0xff] }
 0x3ad   : > { %3765 = vmatprep.mubr.msk.f32.mxu1 %vm870_vm1, %v1842_v19  ;;  %v2714_v19 = vld [vmem:[%s4656_s5 + $0x520] sm:$0xff] }
 0x3b0   : > { %3766 = vmatmul.mubr.msk.f32.gmra.mrb[28].mxu1 %vm870_vm1, %v1843_v59  ;;  %v2715_v59 = vld [vmem:[%s4656_s5 + $0x528] sm:$0xff] }
 0x3b1   : > { %3768 = vmatprep.mubr.msk.f32.mxu1 %vm870_vm1, %v1844_v6  ;;  %v2716_v6 = vld [vmem:[%s4656_s5 + $0x530] sm:$0xff] }
 0x3b4   : > { %3769 = vmatmul.mubr.msk.f32.gmra.mrb[30].mxu1 %vm870_vm1, %v1845_v20  ;;  %v2717_v20 = vld [vmem:[%s4656_s5 + $0x538] sm:$0xff] }
 0x3b5   : > { %v4283_v22 = vpop.eup %4282  ;;  %3771 = vmatprep.mubr.msk.f32.mxu1 %vm870_vm1, %v1846_v21  ;;  %v2718_v21 = vld [vmem:[%s4656_s5 + $0x540] sm:$0xff] }
 0x3b6   : > { %v2690_v3 = vmul.f32 %v4283_v22, %v4277_v12  ;;  %v2691_v7 = vmul.f32 %v4283_v22, %v4279_v41  ;;  %v1851_v12 = vld [vmem:[%s4656_s5 + $0x448] sm:$0xff]  ;;  %v1852_v41 = vld [vmem:[%s4656_s5 + $0x450] sm:$0xff] }
 0x3b7   : > { %v2719_v22 = vld [vmem:[%s4656_s5 + $0x548] sm:$0xff] }
 0x3b8   : > { %3772 = vmatmul.mubr.msk.f32.gmra.mrb[32].mxu1 %vm870_vm1, %v1847_v23  ;;  %v2692_v29 = vadd.f32 %v2690_v3, %v2663_v4  ;;  %v2693_v33 = vadd.f32 %v2691_v7, %v2664_v60  ;;  %v2710_v4 = vld [vmem:[%s4656_s5 + $0x500] sm:$0xff]  ;;  %v2711_v60 = vld [vmem:[%s4656_s5 + $0x508] sm:$0xff]  ;;  %v2720_v23 = vld [vmem:[%s4656_s5 + $0x550] sm:$0xff] }
 0x3b9   : > { %3774 = vmatprep.mubr.msk.f32.mxu1 %vm870_vm1, %v1848_v25  ;;  %v2721_v25 = vld [vmem:[%s4656_s5 + $0x558] sm:$0xff]  ;;  %v2722_v3 = vld [vmem:[%s4656_s5 + $0x560] sm:$0xff]  ;;  %v2723_v7 = vld [vmem:[%s4656_s5 + $0x568] sm:$0xff] }
 0x3ba   : > { %v4050_v37 = vpack.c.bf16 %v2693_v33, %v2692_v29  ;;  %v2724_v29 = vld [vmem:[%s4656_s5 + $0x570] sm:$0xff]  ;;  %v2725_v33 = vld [vmem:[%s4656_s5 + $0x578] sm:$0xff] }
 0x3bc   : > { %3775 = vmatmul.mubr.msk.f32.gmra.mrb[2].mxu1 %vm870_vm1, %v1849_v16  ;;  %4051 = vmatprep.subr.bf16.mxu1 %v4050_v37  ;;  %v285_v16 = vpop.permute.xlu1 %284 }
 0x3bd   : > { %4053 = vmatpush3.bf16.msra.mxu1 %v4050_v37  ;;  %3777 = vmatprep.mubr.msk.f32.mxu1 %vm870_vm1, %v1850_v38 }
 0x3c0   : > { %3778 = vmatmul.mubr.msk.f32.gmra.mrb[4].mxu1 %vm870_vm1, %v1851_v12  ;;  %v290_v37 = vpop.permute.xlu1 %289 }
 0x3c1   : > { %3780 = vmatprep.mubr.msk.f32.mxu1 %vm870_vm1, %v1852_v41 }
 0x3c4   : > { %3781 = vmatmul.mubr.msk.f32.gmra.mrb[6].mxu1 %vm870_vm1, %v1853_v0  ;;  %v300_v38 = vpop.permute.xlu1 %299 }
 0x3c5   : > { %3783 = vmatprep.mubr.msk.f32.mxu1 %vm870_vm1, %v1854_v24 }
 0x3c8   : > { %3784 = vmatmul.mubr.msk.f32.gmra.mrb[8].mxu1 %vm870_vm1, %v1855_v42  ;;  %v305_v12 = vpop.permute.xlu1 %304 }
 0x3c9   : > { %3786 = vmatprep.mubr.msk.f32.mxu1 %vm870_vm1, %v1856_v45 }
 0x3cc   : > { %3787 = vmatmul.mubr.msk.f32.gmra.mrb[10].mxu1 %vm870_vm1, %v1857_v58  ;;  %v310_v41 = vpop.permute.xlu1 %309  ;;  %v251_v58 = vld [vmem:[%s4656_s5 + $0x588] sm:$0xff] }
 0x3cd   : > { %3850 = vmatprep.mubr.msk.f32.mxu1 %vm870_vm1, %v2694_v62  ;;  %v250_v62 = vld [vmem:[%s4656_s5 + $0x580] sm:$0xff] }
 0x3d0   : > { %3851 = vmatmul.mubr.msk.f32.vlgmr.msra.gmra.mrb[12].mxu1 %vm870_vm1, %v2695_v63  ;;  %v315_v0 = vpop.permute.xlu1 %314 }
 0x3d1   : > { %3853 = vmatprep.mubr.msk.f32.mxu1 %vm870_vm1, %v2696_v2  ;;  %v443_v2 = vadd.f32 %v290_v37, %v251_v58  ;;  %v259_v37 = vld [vmem:[%s4656_s5 + $0x5c8] sm:$0xff] }
 0x3d4   : > { %3854 = vmatmul.mubr.msk.f32.gmra.mrb[14].mxu1 %vm870_vm1, %v2697_v1  ;;  %v320_v24 = vpop.permute.xlu1 %319  ;;  %v442_v1 = vadd.f32 %v285_v16, %v250_v62 }
 0x3d5   : > { %3856 = vmatprep.mubr.msk.f32.mxu1 %vm870_vm1, %v2698_v5  ;;  %v253_v5 = vld [vmem:[%s4656_s5 + $0x598] sm:$0xff] }
 0x3d8   : > { %3857 = vmatmul.mubr.msk.f32.gmra.mrb[16].mxu1 %vm870_vm1, %v2699_v34  ;;  %v325_v42 = vpop.permute.xlu1 %324  ;;  %v252_v34 = vld [vmem:[%s4656_s5 + $0x590] sm:$0xff] }
 0x3d9   : > { %3859 = vmatprep.mubr.msk.f32.mxu1 %vm870_vm1, %v2700_v61  ;;  %v295_v61 = vpop.permute.xlu0 %294 }
 0x3dc   : > { %3860 = vmatmul.mubr.msk.f32.gmra.mrb[18].mxu1 %vm870_vm1, %v2701_v26  ;;  %v330_v45 = vpop.permute.xlu1 %329  ;;  %v445_v26 = vadd.f32 %v300_v38, %v253_v5 }
 0x3dd   : > { %3862 = vmatprep.mubr.msk.f32.mxu1 %vm870_vm1, %v2702_v10  ;;  %v1312_v10 = vadd.f32 %v4892_v27, %v443_v2 }
 0x3e0   : > { %3863 = vmatmul.mubr.msk.f32.gmra.mrb[20].mxu1 %vm870_vm1, %v2703_v14  ;;  %v5138_v63 = vpop.permute.xlu1 %334 }
 0x3e1   : > { %3865 = vmatprep.mubr.msk.f32.mxu1 %vm870_vm1, %v2704_v30  ;;  %v255_v30 = vld [vmem:[%s4656_s5 + $0x5a8] sm:$0xff] }
 0x3e4   : > { %3866 = vmatmul.mubr.msk.f32.gmra.mrb[22].mxu1 %vm870_vm1, %v2705_v8  ;;  %v340_v14 = vpop.permute.xlu1 %339  ;;  %v1311_v8 = vadd.f32 %v4894_v28, %v442_v1  ;;  %v256_v28 = vld [vmem:[%s4656_s5 + $0x5b0] sm:$0xff] }
 0x3e5   : > { %3868 = vmatprep.mubr.msk.f32.mxu1 %vm870_vm1, %v2706_v9  ;;  %v444_v9 = vadd.f32 %v295_v61, %v252_v34  ;;  %v261_v61 = vld [vmem:[%s4656_s5 + $0x5d8] sm:$0xff] }
 0x3e7   : > { %v1313_v27 = vadd.f32 %v4902_v32, %v444_v9 }
 0x3e8   : > { %3869 = vmatmul.mubr.msk.f32.gmra.mrb[24].mxu1 %vm870_vm1, %v2707_v11 }
 0x3e9   : > { %3871 = vmatprep.mubr.msk.f32.mxu1 %vm870_vm1, %v2708_v13  ;;  %v254_v13 = vld [vmem:[%s4656_s5 + $0x5a0] sm:$0xff] }
 0x3ec   : > { %3872 = vmatmul.mubr.msk.f32.gmra.mrb[26].mxu1 %vm870_vm1, %v2709_v15 }
 0x3ed   : > { %3874 = vmatprep.mubr.msk.f32.mxu1 %vm870_vm1, %v2710_v4 }
 0x3f0   : > { %3875 = vmatmul.mubr.msk.f32.gmra.mrb[28].mxu1 %vm870_vm1, %v2711_v60 }
 0x3f1   : > { %3877 = vmatprep.mubr.msk.f32.mxu1 %vm870_vm1, %v2712_v17  ;;  %v447_v17 = vadd.f32 %v310_v41, %v255_v30  ;;  %v258_v41 = vld [vmem:[%s4656_s5 + $0x5c0] sm:$0xff]  ;;  %v260_v30 = vld [vmem:[%s4656_s5 + $0x5d0] sm:$0xff] }
 0x3f2   : > { %v450_v5 = vadd.f32 %v325_v42, %v258_v41  ;;  %v453_v42 = vadd.f32 %v340_v14, %v261_v61  ;;  %v266_v41 = vld [vmem:[%s4656_s5 + $0x600] sm:$0xff]  ;;  %v268_v61 = vld [vmem:[%s4656_s5 + $0x610] sm:$0xff] }
 0x3f4   : > { %3878 = vmatmul.mubr.msk.f32.gmra.mrb[30].mxu1 %vm870_vm1, %v2713_v18  ;;  %v1314_v18 = vadd.f32 %v4900_v31, %v445_v26 }
 0x3f5   : > { %3880 = vmatprep.mubr.msk.f32.mxu1 %vm870_vm1, %v2714_v19 }
 0x3f8   : > { %3881 = vmatmul.mubr.msk.f32.gmra.mrb[32].mxu1 %vm870_vm1, %v2715_v59  ;;  %v446_v59 = vadd.f32 %v305_v12, %v254_v13  ;;  %v1319_v13 = vadd.f32 %v4926_v44, %v450_v5 }
 0x3f9   : > { %3883 = vmatprep.mubr.msk.f32.mxu1 %vm870_vm1, %v2716_v6  ;;  %v257_v6 = vld [vmem:[%s4656_s5 + $0x5b8] sm:$0xff] }
 0x3fa   : > { %v1315_v16 = vadd.f32 %v4910_v36, %v446_v59 }
 0x3fc   : > { %3884 = vmatmul.mubr.msk.f32.gmra.mrb[2].mxu1 %vm870_vm1, %v2717_v20  ;;  %v350_v20 = vpop.permute.xlu0 %349 }
 0x3fd   : > { %3886 = vmatprep.mubr.msk.f32.mxu1 %vm870_vm1, %v2718_v21 }
 0x400   : > { %3887 = vmatmul.mubr.msk.f32.gmra.mrb[4].mxu1 %vm870_vm1, %v2719_v22  ;;  %v360_v2 = vpop.permute.xlu0 %359 }
 0x401   : > { %3889 = vmatprep.mubr.msk.f32.mxu1 %vm870_vm1, %v2720_v23  ;;  %v345_v23 = vpop.permute.xlu1 %344 }
 0x404   : > { %3890 = vmatmul.mubr.msk.f32.gmra.mrb[6].mxu1 %vm870_vm1, %v2721_v25 }
 0x405   : > { %3892 = vmatprep.mubr.msk.f32.mxu1 %vm870_vm1, %v2722_v3  ;;  %v449_v3 = vadd.f32 %v320_v24, %v257_v6  ;;  %v451_v24 = vadd.f32 %v330_v45, %v259_v37  ;;  %v355_v36 = vpop.permute.xlu1 %354  ;;  %v267_v37 = vld [vmem:[%s4656_s5 + $0x608] sm:$0xff] }
 0x407   : > { %v1320_v45 = vadd.f32 %v4924_v43, %v451_v24 }
 0x408   : > { %3893 = vmatmul.mubr.msk.f32.gmra.mrb[8].mxu1 %vm870_vm1, %v2723_v7  ;;  %v1316_v7 = vadd.f32 %v4908_v35, %v447_v17 }
 0x409   : > { %3895 = vmatprep.mubr.msk.f32.mxu1 %vm870_vm1, %v2724_v29 }
 0x40c   : > { %3896 = vmatmul.mubr.msk.f32.gmra.mrb[10].mxu1 %vm870_vm1, %v2725_v33  ;;  %v448_v33 = vadd.f32 %v315_v0, %v256_v28  ;;  %v1318_v0 = vadd.f32 %v4916_v39, %v449_v3 }
 0x40e   : > { %v1317_v34 = vadd.f32 %v4918_v40, %v448_v33  ;;  %v452_v40 = vadd.f32 %v5138_v63, %v260_v30  ;;  %v1322_v63 = vadd.f32 %v4930_v46, %v453_v42  ;;  %v271_v42 = vld [vmem:[%s4656_s5 + $0x628] sm:$0xff] }
 0x4a3   : > { %v3852_v11 = vpop.f32.mrb[12].mxu1 }
 0x4a4   : > { %v4057_v15 = vadd.f32 %v3852_v11, %v1312_v10  ;;  %v2888_v4 = vpop.f32.mrb[13].mxu1 }
 0x4a5   : > { %v4059_v60 = vadd.f32 %v2888_v4, %v1311_v8  ;;  %v370_v4 = vpop.permute.xlu0 %369 }
 0x4a6   : > { %v3080_v19 = vmax.f32 %v4057_v15, 0.0  ;;  %v263_v15 = vld [vmem:[%s4656_s5 + $0x5e8] sm:$0xff] }
 0x4a7   : > { %v3079_v21 = vmax.f32 %v4059_v60, 0.0  ;;  %v3855_v22 = vpop.f32.mrb[14].mxu1  ;;  %v455_v44 = vadd.f32 %v350_v20, %v263_v15  ;;  %v270_v15 = vld [vmem:[%s4656_s5 + $0x620] sm:$0xff] }
 0x4a8   : > { %3112 = vst.msk [vmem:[%s5151_s20 + $0x8] sm:$0xff] %vm870_vm1, %v3080_v19  ;;  %v4061_v31 = vadd.f32 %v3855_v22, %v1314_v18  ;;  %v2898_v25 = vpop.f32.mrb[15].mxu1  ;;  %v262_v18 = vld [vmem:[%s4656_s5 + $0x5e0] sm:$0xff]  ;;  %v365_v19 = vpop.permute.xlu1 %364  ;;  %v265_v22 = vld [vmem:[%s4656_s5 + $0x5f8] sm:$0xff] }
 0x4a9   : > { %3111 = vst.msk [vmem:[%s5151_s20] sm:$0xff] %vm870_vm1, %v3079_v21  ;;  %v4063_v32 = vadd.f32 %v2898_v25, %v1313_v27  ;;  %v1321_v27 = vadd.f32 %v4932_v47, %v452_v40  ;;  %v454_v21 = vadd.f32 %v345_v23, %v262_v18  ;;  %v264_v25 = vld [vmem:[%s4656_s5 + $0x5f0] sm:$0xff]  ;;  %v1324_v20 = vadd.f32 %v4934_v48, %v455_v44 }
 0x4aa   : > { %v3082_v29 = vmax.f32 %v4061_v31, 0.0  ;;  %v457_v47 = vadd.f32 %v360_v2, %v265_v22 }
 0x4ab   : > { %v3081_v38 = vmax.f32 %v4063_v32, 0.0  ;;  %v3858_v12 = vpop.f32.mrb[16].mxu1  ;;  %v1323_v33 = vadd.f32 %v4936_v49, %v454_v21 }
 0x4ac   : > { %3114 = vst.msk [vmem:[%s5151_s20 + $0x18] sm:$0xff] %vm870_vm1, %v3082_v29  ;;  %v4065_v58 = vadd.f32 %v3858_v12, %v1316_v7  ;;  %v2908_v62 = vpop.f32.mrb[17].mxu1  ;;  %v380_v7 = vpop.permute.xlu0 %379  ;;  %v1326_v2 = vadd.f32 %v4938_v50, %v457_v47 }
 0x4ad   : > { %3113 = vst.msk [vmem:[%s5151_s20 + $0x10] sm:$0xff] %vm870_vm1, %v3081_v38  ;;  %v4067_v35 = vadd.f32 %v2908_v62, %v1315_v16  ;;  %v375_v23 = vpop.permute.xlu1 %374  ;;  %v456_v16 = vadd.f32 %v355_v36, %v264_v25  ;;  %v269_v36 = vld [vmem:[%s4656_s5 + $0x618] sm:$0xff] }
 0x4ae   : > { %v3084_v1 = vmax.f32 %v4065_v58, 0.0 }
 0x4af   : > { %v3083_v26 = vmax.f32 %v4067_v35, 0.0  ;;  %v3861_v10 = vpop.f32.mrb[18].mxu1  ;;  %v459_v35 = vadd.f32 %v370_v4, %v267_v37  ;;  %v1325_v24 = vadd.f32 %v4940_v51, %v456_v16  ;;  %v274_v37 = vld [vmem:[%s4656_s5 + $0x640] sm:$0xff] }
 0x4b0   : > { %3116 = vst.msk [vmem:[%s5151_s20 + $0x28] sm:$0xff] %vm870_vm1, %v3084_v1  ;;  %v4069_v8 = vadd.f32 %v3861_v10, %v1318_v0  ;;  %v2918_v9 = vpop.f32.mrb[19].mxu1  ;;  %v458_v0 = vadd.f32 %v365_v19, %v266_v41  ;;  %v390_v1 = vpop.permute.xlu0 %389 }
 0x4b1   : > { %3115 = vst.msk [vmem:[%s5151_s20 + $0x20] sm:$0xff] %vm870_vm1, %v3083_v26  ;;  %v4071_v39 = vadd.f32 %v2918_v9, %v1317_v34  ;;  %v385_v26 = vpop.permute.xlu1 %384  ;;  %v1328_v51 = vadd.f32 %v4942_v52, %v459_v35  ;;  %v463_v19 = vadd.f32 %v390_v1, %v271_v42 }
 0x4b2   : > { %v3086_v11 = vmax.f32 %v4069_v8, 0.0  ;;  %v461_v8 = vadd.f32 %v380_v7, %v269_v36 }
 0x4b3   : > { %v3085_v60 = vmax.f32 %v4071_v39, 0.0  ;;  %v3864_v17 = vpop.f32.mrb[20].mxu1  ;;  %v1327_v39 = vadd.f32 %v4944_v53, %v458_v0  ;;  %v276_v0 = vld [vmem:[%s4656_s5 + $0x650] sm:$0xff] }
 0x4b4   : > { %3118 = vst.msk [vmem:[%s5151_s20 + $0x38] sm:$0xff] %vm870_vm1, %v3086_v11  ;;  %v4073_v59 = vadd.f32 %v3864_v17, %v1320_v45  ;;  %v2928_v6 = vpop.f32.mrb[21].mxu1  ;;  %v460_v45 = vadd.f32 %v375_v23, %v268_v61  ;;  %v1330_v18 = vadd.f32 %v4946_v54, %v461_v8  ;;  %v1332_v54 = vadd.f32 %v4950_v56, %v463_v19  ;;  %v279_v8 = vld [vmem:[%s4656_s5 + $0x668] sm:$0xff] }
 0x4b5   : > { %3117 = vst.msk [vmem:[%s5151_s20 + $0x30] sm:$0xff] %vm870_vm1, %v3085_v60  ;;  %v4075_v43 = vadd.f32 %v2928_v6, %v1319_v13  ;;  %v400_v13 = vpop.permute.xlu0 %399  ;;  %v395_v4 = vpop.permute.xlu1 %394  ;;  %v462_v6 = vadd.f32 %v385_v26, %v270_v15 }
 0x4b6   : > { %v3088_v14 = vmax.f32 %v4073_v59, 0.0  ;;  %v1329_v59 = vadd.f32 %v4948_v55, %v460_v45 }
 0x4b7   : > { %v3087_v28 = vmax.f32 %v4075_v43, 0.0  ;;  %v3867_v31 = vpop.f32.mrb[22].mxu1  ;;  %v1331_v55 = vadd.f32 %v4952_v57, %v462_v6 }
 0x4b8   : > { %3120 = vst.msk [vmem:[%s5151_s20 + $0x48] sm:$0xff] %vm870_vm1, %v3088_v14  ;;  %v4077_v32 = vadd.f32 %v3867_v31, %v1322_v63  ;;  %v2938_v3 = vpop.f32.mrb[23].mxu1 }
 0x4b9   : > { %3119 = vst.msk [vmem:[%s5151_s20 + $0x40] sm:$0xff] %vm870_vm1, %v3087_v28  ;;  %v4079_v46 = vadd.f32 %v2938_v3, %v1321_v27  ;;  %v410_v21 = vpop.permute.xlu0 %409  ;;  %v405_v22 = vpop.permute.xlu1 %404  ;;  %v272_v3 = vld [vmem:[%s4656_s5 + $0x630] sm:$0xff] }
 0x4ba   : > { %v3090_v29 = vmax.f32 %v4077_v32, 0.0  ;;  %v273_v32 = vld [vmem:[%s4656_s5 + $0x638] sm:$0xff]  ;;  %v464_v23 = vadd.f32 %v395_v4, %v272_v3 }
 0x4bb   : > { %v3089_v38 = vmax.f32 %v4079_v46, 0.0  ;;  %v3870_v12 = vpop.f32.mrb[24].mxu1  ;;  %v465_v47 = vadd.f32 %v400_v13, %v273_v32 }
 0x4bc   : > { %3122 = vst.msk [vmem:[%s5151_s20 + $0x58] sm:$0xff] %vm870_vm1, %v3090_v29  ;;  %v4081_v58 = vadd.f32 %v3870_v12, %v1324_v20  ;;  %v2948_v62 = vpop.f32.mrb[25].mxu1 }
 0x4bd   : > { %3121 = vst.msk [vmem:[%s5151_s20 + $0x50] sm:$0xff] %vm870_vm1, %v3089_v38  ;;  %v4083_v48 = vadd.f32 %v2948_v62, %v1323_v33  ;;  %v275_v33 = vld [vmem:[%s4656_s5 + $0x648] sm:$0xff]  ;;  %v420_v16 = vpop.permute.xlu0 %419  ;;  %v415_v38 = vpop.permute.xlu1 %414 }
 0x4be   : > { %v3092_v49 = vmax.f32 %v4081_v58, 0.0 }
 0x4bf   : > { %v3091_v5 = vmax.f32 %v4083_v48, 0.0  ;;  %v3873_v34 = vpop.f32.mrb[26].mxu1  ;;  %v467_v48 = vadd.f32 %v410_v21, %v275_v33 }
 0x4c0   : > { %3124 = vst.msk [vmem:[%s5151_s20 + $0x68] sm:$0xff] %vm870_vm1, %v3092_v49  ;;  %v4085_v10 = vadd.f32 %v3873_v34, %v1326_v2  ;;  %v2958_v30 = vpop.f32.mrb[27].mxu1  ;;  %v466_v2 = vadd.f32 %v405_v22, %v274_v37 }
 0x4c1   : > { %3123 = vst.msk [vmem:[%s5151_s20 + $0x60] sm:$0xff] %vm870_vm1, %v3091_v5  ;;  %v4087_v50 = vadd.f32 %v2958_v30, %v1325_v24  ;;  %v277_v24 = vld [vmem:[%s4656_s5 + $0x658] sm:$0xff]  ;;  %v430_v34 = vpop.permute.xlu0 %429  ;;  %v425_v61 = vpop.permute.xlu1 %424  ;;  %v468_v30 = vadd.f32 %v415_v38, %v276_v0 }
 0x4c2   : > { %v3094_v9 = vmax.f32 %v4085_v10, 0.0  ;;  %v469_v10 = vadd.f32 %v420_v16, %v277_v24 }
 0x4c3   : > { %v3093_v11 = vmax.f32 %v4087_v50, 0.0  ;;  %v3876_v40 = vpop.f32.mrb[28].mxu1 }
 0x4c4   : > { %3126 = vst.msk [vmem:[%s5151_s20 + $0x78] sm:$0xff] %vm870_vm1, %v3094_v9  ;;  %v4089_v60 = vadd.f32 %v3876_v40, %v1328_v51  ;;  %v2968_v17 = vpop.f32.mrb[29].mxu1  ;;  %v278_v9 = vld [vmem:[%s4656_s5 + $0x660] sm:$0xff]  ;;  %v471_v40 = vadd.f32 %v430_v34, %v279_v8 }
 0x4c5   : > { %3125 = vst.msk [vmem:[%s5151_s20 + $0x70] sm:$0xff] %vm870_vm1, %v3093_v11  ;;  %v4091_v52 = vadd.f32 %v2968_v17, %v1327_v39  ;;  %v470_v13 = vadd.f32 %v425_v61, %v278_v9  ;;  %v440_v17 = vpop.permute.xlu0 %439 }
 0x4c6   : > { %v3096_v53 = vmax.f32 %v4089_v60, 0.0  ;;  %v281_v60 = vld [vmem:[%s4656_s5 + $0x678] sm:$0xff] }
 0x4c7   : > { %v3095_v43 = vmax.f32 %v4091_v52, 0.0  ;;  %v3879_v63 = vpop.f32.mrb[30].mxu1  ;;  %v280_v52 = vld [vmem:[%s4656_s5 + $0x670] sm:$0xff] }
 0x4c8   : > { %3128 = vst.msk [vmem:[%s5151_s20 + $0x88] sm:$0xff] %vm870_vm1, %v3096_v53  ;;  %v4093_v44 = vadd.f32 %v3879_v63, %v1330_v18  ;;  %v2978_v14 = vpop.f32.mrb[31].mxu1  ;;  %v435_v18 = vpop.permute.xlu1 %434 }
 0x4c9   : > { %3127 = vst.msk [vmem:[%s5151_s20 + $0x80] sm:$0xff] %vm870_vm1, %v3095_v43  ;;  %v4095_v27 = vadd.f32 %v2978_v14, %v1329_v59  ;;  %v473_v43 = vadd.f32 %v440_v17, %v281_v60  ;;  %v472_v63 = vadd.f32 %v435_v18, %v280_v52 }
 0x4ca   : > { %v3098_v28 = vmax.f32 %v4093_v44, 0.0 }
 0x4cb   : > { %v3097_v31 = vmax.f32 %v4095_v27, 0.0  ;;  %v3882_v25 = vpop.f32.mrb[32].mxu1 }
 0x4cc   : > { %3130 = vst.msk [vmem:[%s5151_s20 + $0x98] sm:$0xff] %vm870_vm1, %v3098_v28  ;;  %v4097_v7 = vadd.f32 %v3882_v25, %v1332_v54  ;;  %v2988_v46 = vpop.f32.mrb[33].mxu1 }
 0x4cd   : > { %3129 = vst.msk [vmem:[%s5151_s20 + $0x90] sm:$0xff] %vm870_vm1, %v3097_v31  ;;  %v4099_v20 = vadd.f32 %v2988_v46, %v1331_v55 }
 0x4ce   : > { %v3100_v56 = vmax.f32 %v4097_v7, 0.0 }
 0x4cf   : > { %v3099_v29 = vmax.f32 %v4099_v20, 0.0  ;;  %v3885_v57 = vpop.f32.mrb[2].mxu1 }
 0x4d0   : > { %3132 = vst.msk [vmem:[%s5151_s20 + $0xa8] sm:$0xff] %vm870_vm1, %v3100_v56  ;;  %v4100_v12 = vadd.f32 %v3885_v57, %v465_v47  ;;  %v2998_v41 = vpop.f32.mrb[3].mxu1 }
 0x4d1   : > { %3131 = vst.msk [vmem:[%s5151_s20 + $0xa0] sm:$0xff] %vm870_vm1, %v3099_v29  ;;  %v4101_v58 = vadd.f32 %v2998_v41, %v464_v23 }
 0x4d2   : > { %v3102_v62 = vmax.f32 %v4100_v12, 0.0 }
 0x4d3   : > { %v3101_v35 = vmax.f32 %v4101_v58, 0.0  ;;  %v3888_v49 = vpop.f32.mrb[4].mxu1 }
 0x4d4   : > { %3134 = vst.msk [vmem:[%s5151_s20 + $0xb8] sm:$0xff] %vm870_vm1, %v3102_v62  ;;  %v4102_v36 = vadd.f32 %v3888_v49, %v467_v48  ;;  %v3008_v1 = vpop.f32.mrb[5].mxu1 }
 0x4d5   : > { %3133 = vst.msk [vmem:[%s5151_s20 + $0xb0] sm:$0xff] %vm870_vm1, %v3101_v35  ;;  %v4103_v5 = vadd.f32 %v3008_v1, %v466_v2 }
 0x4d6   : > { %v3104_v26 = vmax.f32 %v4102_v36, 0.0 }
 0x4d7   : > { %v3103_v50 = vmax.f32 %v4103_v5, 0.0  ;;  %v3891_v51 = vpop.f32.mrb[6].mxu1 }
 0x4d8   : > { %3136 = vst.msk [vmem:[%s5151_s20 + $0xc8] sm:$0xff] %vm870_vm1, %v3104_v26  ;;  %v4104_v39 = vadd.f32 %v3891_v51, %v469_v10  ;;  %v3018_v45 = vpop.f32.mrb[7].mxu1 }
 0x4d9   : > { %3135 = vst.msk [vmem:[%s5151_s20 + $0xc0] sm:$0xff] %vm870_vm1, %v3103_v50  ;;  %v4105_v42 = vadd.f32 %v3018_v45, %v468_v30 }
 0x4da   : > { %v3106_v11 = vmax.f32 %v4104_v39, 0.0 }
 0x4db   : > { %v3105_v15 = vmax.f32 %v4105_v42, 0.0  ;;  %v3894_v4 = vpop.f32.mrb[8].mxu1 }
 0x4dc   : > { %3138 = vst.msk [vmem:[%s5151_s20 + $0xd8] sm:$0xff] %vm870_vm1, %v3106_v11  ;;  %v4106_v19 = vadd.f32 %v3894_v4, %v471_v40  ;;  %v3028_v53 = vpop.f32.mrb[9].mxu1 }
 0x4dd   : > { %3137 = vst.msk [vmem:[%s5151_s20 + $0xd0] sm:$0xff] %vm870_vm1, %v3105_v15  ;;  %v4107_v59 = vadd.f32 %v3028_v53, %v470_v13 }
 0x4de   : > { %v3108_v6 = vmax.f32 %v4106_v19, 0.0 }
 0x4df   : > { %v3107_v44 = vmax.f32 %v4107_v59, 0.0  ;;  %v3897_v14 = vpop.f32.mrb[10].mxu1 }
 0x4e0   : > { %3140 = vst.msk [vmem:[%s5151_s20 + $0xe8] sm:$0xff] %vm870_vm1, %v3108_v6  ;;  %v4108_v27 = vadd.f32 %v3897_v14, %v473_v43  ;;  %v3038_v21 = vpop.f32.mrb[11].mxu1 }
 0x4e1   : > { %3139 = vst.msk [vmem:[%s5151_s20 + $0xe0] sm:$0xff] %vm870_vm1, %v3107_v44  ;;  %v4109_v54 = vadd.f32 %v3038_v21, %v472_v63 }
 0x4e2   : > { %v3110_v22 = vmax.f32 %v4108_v27, 0.0 }
 0x4e3   : > { %v3109_v28 = vmax.f32 %v4109_v54, 0.0 }
 0x4e4   : > { %3142 = vst.msk [vmem:[%s5151_s20 + $0xf8] sm:$0xff] %vm870_vm1, %v3110_v22 }
 0x4e5   : > { %3141 = vst.msk [vmem:[%s5151_s20 + $0xf0] sm:$0xff] %vm870_vm1, %v3109_v28 }
 0x4e6   : > { %4383 = shalt.err (!%p4380_p1)
}
 0x4e7   : > { %s4384_s11 = scalar_lea.hbm %s5261_s28, 4096  ;;  %s4388_s30 = scalar_lea.hbm %s5314_s3, 8192 }
 0x4e8   : > { %p4385_p13 = scmp.ne.s32.totalorder %s5261_s28, %s4384_s11  ;;  %p4389_p4 = scmp.lt.u32.totalorder %s5261_s28, %s5314_s3 }
 0x4e9   : > { %p4390_p5 = scmp.lt.u32.totalorder %s4388_s30, %s4384_s11  ;;  %p4392_p11 = scmp.lt.u32.totalorder %s4384_s11, %s5261_s28 }
 0x4ea   : > { %p4386_p6 = pnand %p4385_p13, %p5328_p0 }
 0x4eb   : > { %p4391_p8 = por %p4390_p5, %p4389_p4 }
 0x4ec   : > { %p4387_p10 = pneg %p4386_p6 }
 0x4ed   : > { %p4393_p2 = por %p4392_p11, %p4391_p8 }
 0x4ef   : > { %p4394_p3 = pnand %p4393_p2, %p4387_p10 }
 0x4f1   : > { %4397 = shalt.err (!%p4394_p3)
}
 0x4f2   : > { %s4449_s18 = smov 128   ;;  %s4450_s20 = smov 8  }
 0x4f3   : > { %4165 = dma.vmem_to_hbm [thread:$0]  (%p5328_p0), %s5263_s8, 4096, %s5261_s28, %s3144_s16, %s4449_s18, %s4449_s18, %s4450_s20  }
 0x4f4 PF: > { %s3172_s7 = sand.u32 1, %s4428_s12   ;;  %p5329_p7 = scmp.ne.s32.totalorder %s5319_s19, 0 }
 0x4f5   : > { %p5330_p9 = scmp.ge.s32.totalorder %s4440_s15, 2  ;;  %s3173_s17 = scalar_lea.sflag [#allocation4], %s3172_s7 }
 0x4f7   : > { %p4179_p12 = pnand %p5330_p9, %p5329_p7 }
 0x4f9   : > { %4423 = dma.done.wait (!%p4179_p12), %s3173_s17, 4096  }
 0x4fa   : > { %4425 = vsyncadd (!%p4179_p12), %s3173_s17, 4294963200  ;;  %p17_p1 = scmp.ge.s32.totalorder %s4587_s23, 4   ;;  %s5331_s12 = smov %s4432_s13 }
 0x4fb   : > { %s5332_s13 = smov %s4436_s14  ;;  %s5333_s14 = smov %s4603_s9 }
 0x4fc   : > { %s5334_s15 = smov %s4587_s23  ;;  %19 = sbr.rel (!%p17_p1) target bundleno = 6 (0x6), region = 87 }
 0x503   :  { %3178 = vsyncpa [#allocation3], 1 }
 0x504   :  { %3180 = vsyncpa [#allocation3 + $0x1], 1 }
 0x505   :  { %3181 = vsyncpa [#allocation6], 1 }
 0x506   :  { %3182 = vsyncpa [#allocation4], 1 }
 0x507   :  { %3184 = vsyncpa [#allocation4 + $0x1], 1 }

</bundles_post_ra>
